<compile_context>
chip_gen: v7x
topology: tpu7x:2x2x1
jax: 0.10.0
libtpu: 0.0.40
codegen_flags: <defaults>
</compile_context>

<pallas_src>
import jax
import jax.numpy as jnp
from jax.experimental import pallas as pl
from jax.experimental.pallas import tpu as pltpu


C_IN = 2
C1, C2, C3 = 16, 32, 64          # conv1 / conv2 / (mean, log_var) out channels
K1, S1 = 10, 5                   # conv1 kernel / stride   (K1 == 2 * S1)
K2, S2 = 5, 2                    # conv2 kernel / stride
K3, S3 = 5, 2                    # conv_mean / conv_log_var kernel / stride


def _pad_half(n_out1):
    """Parity-split half size, rounded up to a multiple of 4 so 2*half is 8-aligned."""
    return ((n_out1 + 1) // 2 + 3) // 4 * 4


def _check_split_axis(n_valid, half, k, n_out):
    """Static proof that conv2's stride-2 reads never touch a padded h1 row/col."""
    for p in (0, 1):
        ks = [kk for kk in range(k) if kk % 2 == p]
        if not ks:
            continue
        n_p = (n_valid - p + 1) // 2          # valid parity-p entries
        assert n_p <= half, (n_p, half)
        assert max(ks) // 2 + n_out <= n_p, (
            "stride-2 conv2 would read a padded parity-split h1 row/col",
            n_valid, half, k, n_out)


# ----------------------------- fused Pallas kernel --------------------------

def make_encoder_kernel(hhalf, whalf, oh2, ow2, oh3, ow3):
    """Fused per-image kernel; all loop bounds / offsets are static Python ints."""
    m2 = oh2 * ow2
    m3 = oh3 * ow3

    def kernel(a1_ref, w1_ref, b1_ref, w2_ref, b2_ref, wh_ref, bh_ref, eps_ref,
               ml_ref, z_ref, h1_scr, h2_scr):
        # ---------------- conv1 + ReLU: ONE GEMM, one scratch write ----------
        h1 = jnp.dot(a1_ref[...], w1_ref[...], preferred_element_type=jnp.float32)
        h1 = jnp.maximum(h1 + b1_ref[...], 0.0)                     # (m1, C1)
        h1_scr[...] = h1.reshape(2 * hhalf, 2 * whalf, C1)          # 8-aligned split

        # ------- conv2 + ReLU: 25 taps, each one (m2, C1)x(C1, C2) GEMM ------
        # h1 is parity-split in H and W, so each stride-2 tap slab is one
        # contiguous (oh2, ow2, C1) window of the scratch.
        acc2 = jnp.zeros((m2, C2), jnp.float32)
        for kh in range(K2):
            hoff = (kh % 2) * hhalf + kh // 2
            for kw in range(K2):
                woff = (kw % 2) * whalf + kw // 2
                taps = h1_scr[pl.ds(hoff, oh2), pl.ds(woff, ow2), :]   # (oh2, ow2, C1)
                acc2 = acc2 + jnp.dot(taps.reshape(m2, C1), w2_ref[kh * K2 + kw],
                                      preferred_element_type=jnp.float32)
        h2_scr[...] = jnp.maximum(acc2 + b2_ref[...], 0.0)           # (m2, C2)

        # ---- fused conv_mean || conv_log_var (lane-dense N=128) + reparam ---
        acc3 = jnp.zeros((m3, 2 * C3), jnp.float32)
        for kh in range(K3):
            for kw in range(K3):
                rows = [h2_scr[pl.ds((kh + S3 * y3) * ow2 + kw, ow3, stride=S3), :]
                        for y3 in range(oh3)]                       # oh3 x (ow3, C2)
                taps = jnp.concatenate(rows, axis=0)                 # (m3, C2)
                acc3 = acc3 + jnp.dot(taps, wh_ref[kh * K3 + kw],
                                      preferred_element_type=jnp.float32)
        out = acc3 + bh_ref[...]                                     # (m3, 2*C3)
        mean = out[:, :C3]
        logvar = out[:, C3:]
        ml_ref[...] = out                                            # 128-lane store
        z_ref[...] = mean + jnp.exp(0.5 * logvar) * eps_ref[...]

    return kernel


# ------------------------------- host-side glue -----------------------------

def torch_w_to_gemm(w):
    """(OC, IC, KH, KW) torch conv weight -> (KH*KW*IC, OC), K order (kh, kw, c)."""
    OC, IC, KH, KW = w.shape
    return jnp.transpose(w, (2, 3, 1, 0)).reshape(KH * KW * IC, OC)


def torch_w_to_taps(w):
    """(OC, IC, KH, KW) -> (KH*KW, IC, OC): one (IC, OC) GEMM weight per tap."""
    OC, IC, KH, KW = w.shape
    return jnp.transpose(w, (2, 3, 1, 0)).reshape(KH * KW, IC, OC)


def build_conv1_patches(x_nhwc, oh1, ow1, hhalf, whalf):
    """(B,H,W,C) NHWC -> (B, (2*hhalf)*(2*whalf), K1*K1*C) conv1 im2col rows.

    Rows are ordered with BOTH spatial axes parity-split
    (index = (pos % 2) * half + pos // 2, halves padded to `half`) so the
    kernel's stride-2 conv2 reads are contiguous slabs.  Patch (K) order is
    (kh, kw, c) to match torch_w_to_gemm.  Padded rows yield relu(b1) in h1
    and are provably never read (see _check_split_axis).
    """
    B, H, W, C = x_nhwc.shape
    assert K1 == 2 * S1 and H % S1 == 0 and W % S1 == 0
    kdim = K1 * K1 * C
    x6 = x_nhwc.reshape(B, H // S1, S1, W // S1, S1, C)
    # output position (h, w) covers coarse rows {h, h+1} x coarse cols {w, w+1}
    parts = [x6[:, i:i + oh1, :, j:j + ow1, :, :] for i in range(2) for j in range(2)]
    p = jnp.stack(parts, axis=0).reshape(2, 2, B, oh1, S1, ow1, S1, C)
    # -> (b, h, w, i, hr, j, wr, c); flattening (i,hr,j,wr,c) gives K index
    #    kh*(K1*C) + kw*C + c with kh = S1*i + hr, kw = S1*j + wr.
    a1 = jnp.transpose(p, (2, 3, 5, 0, 4, 1, 6, 7)).reshape(B, oh1, ow1, kdim)
    # pad natural H, W up to 2*hhalf / 2*whalf, then parity-split each axis
    a1 = jnp.pad(a1, ((0, 0), (0, 2 * hhalf - oh1), (0, 2 * whalf - ow1), (0, 0)))
    a1 = a1.reshape(B, 2 * hhalf, whalf, 2, kdim).transpose(0, 1, 3, 2, 4)
    a1 = a1.reshape(B, 2 * hhalf, 2 * whalf, kdim)
    a1 = a1.reshape(B, hhalf, 2, 2 * whalf, kdim).transpose(0, 2, 1, 3, 4)
    # flatten spatial rows for the single conv1 GEMM
    return a1.reshape(B, (2 * hhalf) * (2 * whalf), kdim)


def init_params(key):
    def conv_init(k, oc, ic, kh, kw):
        kw_, kb_ = jax.random.split(k)
        fan_in = ic * kh * kw
        w = jax.random.normal(kw_, (oc, ic, kh, kw), jnp.float32) / jnp.sqrt(fan_in)
        b = jax.random.normal(kb_, (oc,), jnp.float32) * 0.01
        return w, b

    k1, k2, k3, k4 = jax.random.split(key, 4)
    w1, b1 = conv_init(k1, C1, C_IN, K1, K1)
    w2, b2 = conv_init(k2, C2, C1, K2, K2)
    wm, bm = conv_init(k3, C3, C2, K3, K3)
    wv, bv = conv_init(k4, C3, C2, K3, K3)
    wh = jnp.concatenate([wm, wv], axis=0)               # (128, 32, 5, 5)
    bh = jnp.concatenate([bm, bv], axis=0)               # (128,)
    return {
        "w1": torch_w_to_gemm(w1), "b1": b1.reshape(1, -1),
        "w2": torch_w_to_taps(w2), "b2": b2.reshape(1, -1),
        "wh": torch_w_to_taps(wh), "bh": bh.reshape(1, -1),
        # NCHW-layout originals kept for the pure-JAX reference check
        "_raw": {"w1": w1, "b1": b1, "w2": w2, "b2": b2,
                 "wm": wm, "bm": bm, "wv": wv, "bv": bv},
    }


@jax.jit
def encoder_conv_forward(params, Tmag, Tphase, eps):
    # Tmag, Tphase: (B, H, W) f32;  eps: (B, C3, OH3, OW3) f32 (NCHW, like randn_like(mean))
    B, H, W = Tmag.shape
    oh1, ow1 = (H - K1) // S1 + 1, (W - K1) // S1 + 1
    oh2, ow2 = (oh1 - K2) // S2 + 1, (ow1 - K2) // S2 + 1
    oh3, ow3 = (oh2 - K3) // S3 + 1, (ow2 - K3) // S3 + 1
    hhalf, whalf = _pad_half(oh1), _pad_half(ow1)
    m1 = (2 * hhalf) * (2 * whalf)
    m3 = oh3 * ow3
    kdim = K1 * K1 * C_IN

    # static proof the parity-split padding is never read (fragile-invariant check)
    _check_split_axis(oh1, hhalf, K2, oh2)
    _check_split_axis(ow1, whalf, K2, ow2)

    x = jnp.stack([Tmag, Tphase], axis=-1)                    # (B, H, W, 2) NHWC
    a1 = build_conv1_patches(x, oh1, ow1, hhalf, whalf)       # (B, m1, kdim)
    eps_rows = jnp.transpose(eps, (0, 2, 3, 1)).reshape(B, m3, C3)

    kernel = make_encoder_kernel(hhalf, whalf, oh2, ow2, oh3, ow3)

    grid_spec = pltpu.PrefetchScalarGridSpec(
        num_scalar_prefetch=0,
        grid=(B,),                                            # one image per step
        in_specs=[
            pl.BlockSpec((None, m1, kdim), lambda b: (b, 0, 0)),
            pl.BlockSpec((kdim, C1), lambda b: (0, 0)),
            pl.BlockSpec((1, C1), lambda b: (0, 0)),
            pl.BlockSpec((K2 * K2, C1, C2), lambda b: (0, 0, 0)),
            pl.BlockSpec((1, C2), lambda b: (0, 0)),
            pl.BlockSpec((K3 * K3, C2, 2 * C3), lambda b: (0, 0, 0)),
            pl.BlockSpec((1, 2 * C3), lambda b: (0, 0)),
            pl.BlockSpec((None, m3, C3), lambda b: (b, 0, 0)),
        ],
        out_specs=[
            pl.BlockSpec((None, m3, 2 * C3), lambda b: (b, 0, 0)),   # mean || log_var
            pl.BlockSpec((None, m3, C3), lambda b: (b, 0, 0)),       # z
        ],
        scratch_shapes=[
            pltpu.VMEM((2 * hhalf, 2 * whalf, C1), jnp.float32),     # h1 (parity-split)
            pltpu.VMEM((oh2 * ow2, C2), jnp.float32),                # h2
        ],
    )

    ml, z = pl.pallas_call(
        kernel,
        out_shape=(jax.ShapeDtypeStruct((B, m3, 2 * C3), jnp.float32),
                   jax.ShapeDtypeStruct((B, m3, C3), jnp.float32)),
        grid_spec=grid_spec,
        compiler_params=pltpu.CompilerParams(
            dimension_semantics=("parallel",)),               # megacore: images across TCs
    )(a1, params["w1"], params["b1"], params["w2"], params["b2"],
      params["wh"], params["bh"], eps_rows)

    def to_nchw(t):
        return jnp.transpose(t.reshape(B, oh3, ow3, C3), (0, 3, 1, 2))

    return to_nchw(z), to_nchw(ml[:, :, :C3]), to_nchw(ml[:, :, C3:])


def reference_forward(params, Tmag, Tphase, eps):
    """Pure-JAX (lax.conv) reference for all three outputs."""
    raw = params["_raw"]
    x = jnp.stack([Tmag, Tphase], axis=1)                     # NCHW

    def conv(x, w, b, stride):
        y = jax.lax.conv_general_dilated(
            x, w, window_strides=(stride, stride), padding="VALID",
            dimension_numbers=("NCHW", "OIHW", "NCHW"))
        return y + b[None, :, None, None]

    h = jax.nn.relu(conv(x, raw["w1"], raw["b1"], S1))
    h = jax.nn.relu(conv(h, raw["w2"], raw["b2"], S2))
    mean = conv(h, raw["wm"], raw["bm"], S3)
    logvar = conv(h, raw["wv"], raw["bv"], S3)
    z = mean + jnp.exp(0.5 * logvar) * eps
    return z, mean, logvar


# ------------------------------------ main -----------------------------------

if __name__ == "__main__":
    key = jax.random.PRNGKey(0)
    kp, kx1, kx2, keps = jax.random.split(key, 4)

    B, H, W = 2, 100, 100            # conv stack needs H, W >= 70 and divisible by 5
    Tmag = jax.random.normal(kx1, (B, H, W), jnp.float32)
    Tphase = jax.random.normal(kx2, (B, H, W), jnp.float32)
    params = init_params(kp)

    eps = jax.random.normal(keps, (B, C3, 2, 2), jnp.float32)

    z, mean, log_var = encoder_conv_forward(params, Tmag, Tphase, eps)
    jax.block_until_ready((z, mean, log_var))

    assert z.shape == (B, C3, 2, 2) and mean.shape == (B, C3, 2, 2) \
        and log_var.shape == (B, C3, 2, 2)

    z_ref, mean_ref, lv_ref = reference_forward(params, Tmag, Tphase, eps)
    for got, ref, name in ((mean, mean_ref, "mean"),
                           (log_var, lv_ref, "log_var"),
                           (z, z_ref, "z")):
        err = float(jnp.max(jnp.abs(got - ref)))
        assert jnp.allclose(got, ref, atol=2e-3, rtol=2e-3), (name, err)

    print("KERNEL_OK")
</pallas_src>

<mosaic_0001>
module attributes {stable_mosaic.version = 11 : i64} {
  func.func @kernel(%arg0: i32, %arg1: memref<1x576x200xf32, #tpu.memory_space<vmem>>, %arg2: memref<200x16xf32, #tpu.memory_space<vmem>>, %arg3: memref<1x16xf32, #tpu.memory_space<vmem>>, %arg4: memref<25x16x32xf32, #tpu.memory_space<vmem>>, %arg5: memref<1x32xf32, #tpu.memory_space<vmem>>, %arg6: memref<25x32x128xf32, #tpu.memory_space<vmem>>, %arg7: memref<1x128xf32, #tpu.memory_space<vmem>>, %arg8: memref<1x4x64xf32, #tpu.memory_space<vmem>>, %arg9: memref<1x4x128xf32, #tpu.memory_space<vmem>>, %arg10: memref<1x4x64xf32, #tpu.memory_space<vmem>>, %arg11: memref<24x24x16xf32, #tpu.memory_space<vmem>>, %arg12: memref<64x32xf32, #tpu.memory_space<vmem>>) attributes {dimension_semantics = [#tpu.dimension_semantics<parallel>], iteration_bounds = array<i64: 2>, scalar_prefetch = 0 : i64, scratch_operands = 2 : i64, tpu.core_type = #tpu.core_type<tc>, window_params = [{transform_indices = @transform_0, window_bounds = array<i64: 1, 576, 200>}, {pipeline_mode = #tpu.pipeline_mode<synchronous>, transform_indices = @transform_1, window_bounds = array<i64: 200, 16>}, {pipeline_mode = #tpu.pipeline_mode<synchronous>, transform_indices = @transform_2, window_bounds = array<i64: 1, 16>}, {pipeline_mode = #tpu.pipeline_mode<synchronous>, transform_indices = @transform_3, window_bounds = array<i64: 25, 16, 32>}, {pipeline_mode = #tpu.pipeline_mode<synchronous>, transform_indices = @transform_4, window_bounds = array<i64: 1, 32>}, {pipeline_mode = #tpu.pipeline_mode<synchronous>, transform_indices = @transform_5, window_bounds = array<i64: 25, 32, 128>}, {pipeline_mode = #tpu.pipeline_mode<synchronous>, transform_indices = @transform_6, window_bounds = array<i64: 1, 128>}, {transform_indices = @transform_7, window_bounds = array<i64: 1, 4, 64>}, {transform_indices = @transform_8, window_bounds = array<i64: 1, 4, 128>}, {transform_indices = @transform_9, window_bounds = array<i64: 1, 4, 64>}]} {
    %c0 = arith.constant 0 : index
    %c0_0 = arith.constant 0 : index
    %c0_1 = arith.constant 0 : index
    %0 = vector.load %arg1[%c0, %c0_0, %c0_1] : memref<1x576x200xf32, #tpu.memory_space<vmem>>, vector<1x576x200xf32>
    %1 = vector.shape_cast %0 : vector<1x576x200xf32> to vector<576x200xf32>
    %c0_2 = arith.constant 0 : index
    %c0_3 = arith.constant 0 : index
    %2 = vector.load %arg2[%c0_2, %c0_3] : memref<200x16xf32, #tpu.memory_space<vmem>>, vector<200x16xf32>
    %cst = arith.constant dense<0.000000e+00> : vector<576x16xf32>
    %3 = tpu.matmul %1, %2, %cst {dimension_numbers = #tpu.dot_dimension_numbers<[1], [0], [0], [1], [0, 0, 1, 1], [], []>} : vector<576x200xf32>, vector<200x16xf32>, vector<576x16xf32> -> vector<576x16xf32>
    %c0_4 = arith.constant 0 : index
    %c0_5 = arith.constant 0 : index
    %4 = vector.load %arg3[%c0_4, %c0_5] : memref<1x16xf32, #tpu.memory_space<vmem>>, vector<1x16xf32>
    %5 = vector.broadcast %4 : vector<1x16xf32> to vector<576x16xf32>
    %6 = arith.addf %3, %5 : vector<576x16xf32>
    %cst_6 = arith.constant 0.000000e+00 : f32
    %7 = vector.broadcast %cst_6 : f32 to vector<576x16xf32>
    %8 = arith.maximumf %6, %7 : vector<576x16xf32>
    %9 = vector.shape_cast %8 : vector<576x16xf32> to vector<24x24x16xf32>
    %c0_7 = arith.constant 0 : index
    %c0_8 = arith.constant 0 : index
    %c0_9 = arith.constant 0 : index
    %10 = vector.load %arg11[%c0_7, %c0_8, %c0_9] : memref<24x24x16xf32, #tpu.memory_space<vmem>>, vector<24x24x16xf32>
    tpu.vector_store %arg11[%c0_7, %c0_8, %c0_9], %9 {strides = array<i32>} : memref<24x24x16xf32, #tpu.memory_space<vmem>>, vector<24x24x16xf32>,
    %cst_10 = arith.constant 0.000000e+00 : f32
    %11 = vector.broadcast %cst_10 : f32 to vector<64x32xf32>
    %c0_11 = arith.constant 0 : index
    %c0_12 = arith.constant 0 : index
    %c0_13 = arith.constant 0 : index
    %12 = vector.load %arg11[%c0_11, %c0_12, %c0_13] : memref<24x24x16xf32, #tpu.memory_space<vmem>>, vector<8x8x16xf32>
    %13 = vector.shape_cast %12 : vector<8x8x16xf32> to vector<64x16xf32>
    %c0_14 = arith.constant 0 : index
    %c0_15 = arith.constant 0 : index
    %c0_16 = arith.constant 0 : index
    %14 = vector.load %arg4[%c0_14, %c0_15, %c0_16] : memref<25x16x32xf32, #tpu.memory_space<vmem>>, vector<1x16x32xf32>
    %15 = vector.shape_cast %14 : vector<1x16x32xf32> to vector<16x32xf32>
    %cst_17 = arith.constant dense<0.000000e+00> : vector<64x32xf32>
    %16 = tpu.matmul %13, %15, %cst_17 {dimension_numbers = #tpu.dot_dimension_numbers<[1], [0], [0], [1], [0, 0, 1, 1], [], []>} : vector<64x16xf32>, vector<16x32xf32>, vector<64x32xf32> -> vector<64x32xf32>
    %17 = arith.addf %11, %16 : vector<64x32xf32>
    %c0_18 = arith.constant 0 : index
    %c12 = arith.constant 12 : index
    %c0_19 = arith.constant 0 : index
    %18 = vector.load %arg11[%c0_18, %c12, %c0_19] : memref<24x24x16xf32, #tpu.memory_space<vmem>>, vector<8x8x16xf32>
    %19 = vector.shape_cast %18 : vector<8x8x16xf32> to vector<64x16xf32>
    %c1 = arith.constant 1 : index
    %c0_20 = arith.constant 0 : index
    %c0_21 = arith.constant 0 : index
    %20 = vector.load %arg4[%c1, %c0_20, %c0_21] : memref<25x16x32xf32, #tpu.memory_space<vmem>>, vector<1x16x32xf32>
    %21 = vector.shape_cast %20 : vector<1x16x32xf32> to vector<16x32xf32>
    %cst_22 = arith.constant dense<0.000000e+00> : vector<64x32xf32>
    %22 = tpu.matmul %19, %21, %cst_22 {dimension_numbers = #tpu.dot_dimension_numbers<[1], [0], [0], [1], [0, 0, 1, 1], [], []>} : vector<64x16xf32>, vector<16x32xf32>, vector<64x32xf32> -> vector<64x32xf32>
    %23 = arith.addf %17, %22 : vector<64x32xf32>
    %c0_23 = arith.constant 0 : index
    %c1_24 = arith.constant 1 : index
    %c0_25 = arith.constant 0 : index
    %24 = vector.load %arg11[%c0_23, %c1_24, %c0_25] : memref<24x24x16xf32, #tpu.memory_space<vmem>>, vector<8x8x16xf32>
    %25 = vector.shape_cast %24 : vector<8x8x16xf32> to vector<64x16xf32>
    %c2 = arith.constant 2 : index
    %c0_26 = arith.constant 0 : index
    %c0_27 = arith.constant 0 : index
    %26 = vector.load %arg4[%c2, %c0_26, %c0_27] : memref<25x16x32xf32, #tpu.memory_space<vmem>>, vector<1x16x32xf32>
    %27 = vector.shape_cast %26 : vector<1x16x32xf32> to vector<16x32xf32>
    %cst_28 = arith.constant dense<0.000000e+00> : vector<64x32xf32>
    %28 = tpu.matmul %25, %27, %cst_28 {dimension_numbers = #tpu.dot_dimension_numbers<[1], [0], [0], [1], [0, 0, 1, 1], [], []>} : vector<64x16xf32>, vector<16x32xf32>, vector<64x32xf32> -> vector<64x32xf32>
    %29 = arith.addf %23, %28 : vector<64x32xf32>
    %c0_29 = arith.constant 0 : index
    %c13 = arith.constant 13 : index
    %c0_30 = arith.constant 0 : index
    %30 = vector.load %arg11[%c0_29, %c13, %c0_30] : memref<24x24x16xf32, #tpu.memory_space<vmem>>, vector<8x8x16xf32>
    %31 = vector.shape_cast %30 : vector<8x8x16xf32> to vector<64x16xf32>
    %c3 = arith.constant 3 : index
    %c0_31 = arith.constant 0 : index
    %c0_32 = arith.constant 0 : index
    %32 = vector.load %arg4[%c3, %c0_31, %c0_32] : memref<25x16x32xf32, #tpu.memory_space<vmem>>, vector<1x16x32xf32>
    %33 = vector.shape_cast %32 : vector<1x16x32xf32> to vector<16x32xf32>
    %cst_33 = arith.constant dense<0.000000e+00> : vector<64x32xf32>
    %34 = tpu.matmul %31, %33, %cst_33 {dimension_numbers = #tpu.dot_dimension_numbers<[1], [0], [0], [1], [0, 0, 1, 1], [], []>} : vector<64x16xf32>, vector<16x32xf32>, vector<64x32xf32> -> vector<64x32xf32>
    %35 = arith.addf %29, %34 : vector<64x32xf32>
    %c0_34 = arith.constant 0 : index
    %c2_35 = arith.constant 2 : index
    %c0_36 = arith.constant 0 : index
    %36 = vector.load %arg11[%c0_34, %c2_35, %c0_36] : memref<24x24x16xf32, #tpu.memory_space<vmem>>, vector<8x8x16xf32>
    %37 = vector.shape_cast %36 : vector<8x8x16xf32> to vector<64x16xf32>
    %c4 = arith.constant 4 : index
    %c0_37 = arith.constant 0 : index
    %c0_38 = arith.constant 0 : index
    %38 = vector.load %arg4[%c4, %c0_37, %c0_38] : memref<25x16x32xf32, #tpu.memory_space<vmem>>, vector<1x16x32xf32>
    %39 = vector.shape_cast %38 : vector<1x16x32xf32> to vector<16x32xf32>
    %cst_39 = arith.constant dense<0.000000e+00> : vector<64x32xf32>
    %40 = tpu.matmul %37, %39, %cst_39 {dimension_numbers = #tpu.dot_dimension_numbers<[1], [0], [0], [1], [0, 0, 1, 1], [], []>} : vector<64x16xf32>, vector<16x32xf32>, vector<64x32xf32> -> vector<64x32xf32>
    %41 = arith.addf %35, %40 : vector<64x32xf32>
    %c12_40 = arith.constant 12 : index
    %c0_41 = arith.constant 0 : index
    %c0_42 = arith.constant 0 : index
    %42 = vector.load %arg11[%c12_40, %c0_41, %c0_42] : memref<24x24x16xf32, #tpu.memory_space<vmem>>, vector<8x8x16xf32>
    %43 = vector.shape_cast %42 : vector<8x8x16xf32> to vector<64x16xf32>
    %c5 = arith.constant 5 : index
    %c0_43 = arith.constant 0 : index
    %c0_44 = arith.constant 0 : index
    %44 = vector.load %arg4[%c5, %c0_43, %c0_44] : memref<25x16x32xf32, #tpu.memory_space<vmem>>, vector<1x16x32xf32>
    %45 = vector.shape_cast %44 : vector<1x16x32xf32> to vector<16x32xf32>
    %cst_45 = arith.constant dense<0.000000e+00> : vector<64x32xf32>
    %46 = tpu.matmul %43, %45, %cst_45 {dimension_numbers = #tpu.dot_dimension_numbers<[1], [0], [0], [1], [0, 0, 1, 1], [], []>} : vector<64x16xf32>, vector<16x32xf32>, vector<64x32xf32> -> vector<64x32xf32>
    %47 = arith.addf %41, %46 : vector<64x32xf32>
    %c12_46 = arith.constant 12 : index
    %c12_47 = arith.constant 12 : index
    %c0_48 = arith.constant 0 : index
    %48 = vector.load %arg11[%c12_46, %c12_47, %c0_48] : memref<24x24x16xf32, #tpu.memory_space<vmem>>, vector<8x8x16xf32>
    %49 = vector.shape_cast %48 : vector<8x8x16xf32> to vector<64x16xf32>
    %c6 = arith.constant 6 : index
    %c0_49 = arith.constant 0 : index
    %c0_50 = arith.constant 0 : index
    %50 = vector.load %arg4[%c6, %c0_49, %c0_50] : memref<25x16x32xf32, #tpu.memory_space<vmem>>, vector<1x16x32xf32>
    %51 = vector.shape_cast %50 : vector<1x16x32xf32> to vector<16x32xf32>
    %cst_51 = arith.constant dense<0.000000e+00> : vector<64x32xf32>
    %52 = tpu.matmul %49, %51, %cst_51 {dimension_numbers = #tpu.dot_dimension_numbers<[1], [0], [0], [1], [0, 0, 1, 1], [], []>} : vector<64x16xf32>, vector<16x32xf32>, vector<64x32xf32> -> vector<64x32xf32>
    %53 = arith.addf %47, %52 : vector<64x32xf32>
    %c12_52 = arith.constant 12 : index
    %c1_53 = arith.constant 1 : index
    %c0_54 = arith.constant 0 : index
    %54 = vector.load %arg11[%c12_52, %c1_53, %c0_54] : memref<24x24x16xf32, #tpu.memory_space<vmem>>, vector<8x8x16xf32>
    %55 = vector.shape_cast %54 : vector<8x8x16xf32> to vector<64x16xf32>
    %c7 = arith.constant 7 : index
    %c0_55 = arith.constant 0 : index
    %c0_56 = arith.constant 0 : index
    %56 = vector.load %arg4[%c7, %c0_55, %c0_56] : memref<25x16x32xf32, #tpu.memory_space<vmem>>, vector<1x16x32xf32>
    %57 = vector.shape_cast %56 : vector<1x16x32xf32> to vector<16x32xf32>
    %cst_57 = arith.constant dense<0.000000e+00> : vector<64x32xf32>
    %58 = tpu.matmul %55, %57, %cst_57 {dimension_numbers = #tpu.dot_dimension_numbers<[1], [0], [0], [1], [0, 0, 1, 1], [], []>} : vector<64x16xf32>, vector<16x32xf32>, vector<64x32xf32> -> vector<64x32xf32>
    %59 = arith.addf %53, %58 : vector<64x32xf32>
    %c12_58 = arith.constant 12 : index
    %c13_59 = arith.constant 13 : index
    %c0_60 = arith.constant 0 : index
    %60 = vector.load %arg11[%c12_58, %c13_59, %c0_60] : memref<24x24x16xf32, #tpu.memory_space<vmem>>, vector<8x8x16xf32>
    %61 = vector.shape_cast %60 : vector<8x8x16xf32> to vector<64x16xf32>
    %c8 = arith.constant 8 : index
    %c0_61 = arith.constant 0 : index
    %c0_62 = arith.constant 0 : index
    %62 = vector.load %arg4[%c8, %c0_61, %c0_62] : memref<25x16x32xf32, #tpu.memory_space<vmem>>, vector<1x16x32xf32>
    %63 = vector.shape_cast %62 : vector<1x16x32xf32> to vector<16x32xf32>
    %cst_63 = arith.constant dense<0.000000e+00> : vector<64x32xf32>
    %64 = tpu.matmul %61, %63, %cst_63 {dimension_numbers = #tpu.dot_dimension_numbers<[1], [0], [0], [1], [0, 0, 1, 1], [], []>} : vector<64x16xf32>, vector<16x32xf32>, vector<64x32xf32> -> vector<64x32xf32>
    %65 = arith.addf %59, %64 : vector<64x32xf32>
    %c12_64 = arith.constant 12 : index
    %c2_65 = arith.constant 2 : index
    %c0_66 = arith.constant 0 : index
    %66 = vector.load %arg11[%c12_64, %c2_65, %c0_66] : memref<24x24x16xf32, #tpu.memory_space<vmem>>, vector<8x8x16xf32>
    %67 = vector.shape_cast %66 : vector<8x8x16xf32> to vector<64x16xf32>
    %c9 = arith.constant 9 : index
    %c0_67 = arith.constant 0 : index
    %c0_68 = arith.constant 0 : index
    %68 = vector.load %arg4[%c9, %c0_67, %c0_68] : memref<25x16x32xf32, #tpu.memory_space<vmem>>, vector<1x16x32xf32>
    %69 = vector.shape_cast %68 : vector<1x16x32xf32> to vector<16x32xf32>
    %cst_69 = arith.constant dense<0.000000e+00> : vector<64x32xf32>
    %70 = tpu.matmul %67, %69, %cst_69 {dimension_numbers = #tpu.dot_dimension_numbers<[1], [0], [0], [1], [0, 0, 1, 1], [], []>} : vector<64x16xf32>, vector<16x32xf32>, vector<64x32xf32> -> vector<64x32xf32>
    %71 = arith.addf %65, %70 : vector<64x32xf32>
    %c1_70 = arith.constant 1 : index
    %c0_71 = arith.constant 0 : index
    %c0_72 = arith.constant 0 : index
    %72 = vector.load %arg11[%c1_70, %c0_71, %c0_72] : memref<24x24x16xf32, #tpu.memory_space<vmem>>, vector<8x8x16xf32>
    %73 = vector.shape_cast %72 : vector<8x8x16xf32> to vector<64x16xf32>
    %c10 = arith.constant 10 : index
    %c0_73 = arith.constant 0 : index
    %c0_74 = arith.constant 0 : index
    %74 = vector.load %arg4[%c10, %c0_73, %c0_74] : memref<25x16x32xf32, #tpu.memory_space<vmem>>, vector<1x16x32xf32>
    %75 = vector.shape_cast %74 : vector<1x16x32xf32> to vector<16x32xf32>
    %cst_75 = arith.constant dense<0.000000e+00> : vector<64x32xf32>
    %76 = tpu.matmul %73, %75, %cst_75 {dimension_numbers = #tpu.dot_dimension_numbers<[1], [0], [0], [1], [0, 0, 1, 1], [], []>} : vector<64x16xf32>, vector<16x32xf32>, vector<64x32xf32> -> vector<64x32xf32>
    %77 = arith.addf %71, %76 : vector<64x32xf32>
    %c1_76 = arith.constant 1 : index
    %c12_77 = arith.constant 12 : index
    %c0_78 = arith.constant 0 : index
    %78 = vector.load %arg11[%c1_76, %c12_77, %c0_78] : memref<24x24x16xf32, #tpu.memory_space<vmem>>, vector<8x8x16xf32>
    %79 = vector.shape_cast %78 : vector<8x8x16xf32> to vector<64x16xf32>
    %c11 = arith.constant 11 : index
    %c0_79 = arith.constant 0 : index
    %c0_80 = arith.constant 0 : index
    %80 = vector.load %arg4[%c11, %c0_79, %c0_80] : memref<25x16x32xf32, #tpu.memory_space<vmem>>, vector<1x16x32xf32>
    %81 = vector.shape_cast %80 : vector<1x16x32xf32> to vector<16x32xf32>
    %cst_81 = arith.constant dense<0.000000e+00> : vector<64x32xf32>
    %82 = tpu.matmul %79, %81, %cst_81 {dimension_numbers = #tpu.dot_dimension_numbers<[1], [0], [0], [1], [0, 0, 1, 1], [], []>} : vector<64x16xf32>, vector<16x32xf32>, vector<64x32xf32> -> vector<64x32xf32>
    %83 = arith.addf %77, %82 : vector<64x32xf32>
    %c1_82 = arith.constant 1 : index
    %c1_83 = arith.constant 1 : index
    %c0_84 = arith.constant 0 : index
    %84 = vector.load %arg11[%c1_82, %c1_83, %c0_84] : memref<24x24x16xf32, #tpu.memory_space<vmem>>, vector<8x8x16xf32>
    %85 = vector.shape_cast %84 : vector<8x8x16xf32> to vector<64x16xf32>
    %c12_85 = arith.constant 12 : index
    %c0_86 = arith.constant 0 : index
    %c0_87 = arith.constant 0 : index
    %86 = vector.load %arg4[%c12_85, %c0_86, %c0_87] : memref<25x16x32xf32, #tpu.memory_space<vmem>>, vector<1x16x32xf32>
    %87 = vector.shape_cast %86 : vector<1x16x32xf32> to vector<16x32xf32>
    %cst_88 = arith.constant dense<0.000000e+00> : vector<64x32xf32>
    %88 = tpu.matmul %85, %87, %cst_88 {dimension_numbers = #tpu.dot_dimension_numbers<[1], [0], [0], [1], [0, 0, 1, 1], [], []>} : vector<64x16xf32>, vector<16x32xf32>, vector<64x32xf32> -> vector<64x32xf32>
    %89 = arith.addf %83, %88 : vector<64x32xf32>
    %c1_89 = arith.constant 1 : index
    %c13_90 = arith.constant 13 : index
    %c0_91 = arith.constant 0 : index
    %90 = vector.load %arg11[%c1_89, %c13_90, %c0_91] : memref<24x24x16xf32, #tpu.memory_space<vmem>>, vector<8x8x16xf32>
    %91 = vector.shape_cast %90 : vector<8x8x16xf32> to vector<64x16xf32>
    %c13_92 = arith.constant 13 : index
    %c0_93 = arith.constant 0 : index
    %c0_94 = arith.constant 0 : index
    %92 = vector.load %arg4[%c13_92, %c0_93, %c0_94] : memref<25x16x32xf32, #tpu.memory_space<vmem>>, vector<1x16x32xf32>
    %93 = vector.shape_cast %92 : vector<1x16x32xf32> to vector<16x32xf32>
    %cst_95 = arith.constant dense<0.000000e+00> : vector<64x32xf32>
    %94 = tpu.matmul %91, %93, %cst_95 {dimension_numbers = #tpu.dot_dimension_numbers<[1], [0], [0], [1], [0, 0, 1, 1], [], []>} : vector<64x16xf32>, vector<16x32xf32>, vector<64x32xf32> -> vector<64x32xf32>
    %95 = arith.addf %89, %94 : vector<64x32xf32>
    %c1_96 = arith.constant 1 : index
    %c2_97 = arith.constant 2 : index
    %c0_98 = arith.constant 0 : index
    %96 = vector.load %arg11[%c1_96, %c2_97, %c0_98] : memref<24x24x16xf32, #tpu.memory_space<vmem>>, vector<8x8x16xf32>
    %97 = vector.shape_cast %96 : vector<8x8x16xf32> to vector<64x16xf32>
    %c14 = arith.constant 14 : index
    %c0_99 = arith.constant 0 : index
    %c0_100 = arith.constant 0 : index
    %98 = vector.load %arg4[%c14, %c0_99, %c0_100] : memref<25x16x32xf32, #tpu.memory_space<vmem>>, vector<1x16x32xf32>
    %99 = vector.shape_cast %98 : vector<1x16x32xf32> to vector<16x32xf32>
    %cst_101 = arith.constant dense<0.000000e+00> : vector<64x32xf32>
    %100 = tpu.matmul %97, %99, %cst_101 {dimension_numbers = #tpu.dot_dimension_numbers<[1], [0], [0], [1], [0, 0, 1, 1], [], []>} : vector<64x16xf32>, vector<16x32xf32>, vector<64x32xf32> -> vector<64x32xf32>
    %101 = arith.addf %95, %100 : vector<64x32xf32>
    %c13_102 = arith.constant 13 : index
    %c0_103 = arith.constant 0 : index
    %c0_104 = arith.constant 0 : index
    %102 = vector.load %arg11[%c13_102, %c0_103, %c0_104] : memref<24x24x16xf32, #tpu.memory_space<vmem>>, vector<8x8x16xf32>
    %103 = vector.shape_cast %102 : vector<8x8x16xf32> to vector<64x16xf32>
    %c15 = arith.constant 15 : index
    %c0_105 = arith.constant 0 : index
    %c0_106 = arith.constant 0 : index
    %104 = vector.load %arg4[%c15, %c0_105, %c0_106] : memref<25x16x32xf32, #tpu.memory_space<vmem>>, vector<1x16x32xf32>
    %105 = vector.shape_cast %104 : vector<1x16x32xf32> to vector<16x32xf32>
    %cst_107 = arith.constant dense<0.000000e+00> : vector<64x32xf32>
    %106 = tpu.matmul %103, %105, %cst_107 {dimension_numbers = #tpu.dot_dimension_numbers<[1], [0], [0], [1], [0, 0, 1, 1], [], []>} : vector<64x16xf32>, vector<16x32xf32>, vector<64x32xf32> -> vector<64x32xf32>
    %107 = arith.addf %101, %106 : vector<64x32xf32>
    %c13_108 = arith.constant 13 : index
    %c12_109 = arith.constant 12 : index
    %c0_110 = arith.constant 0 : index
    %108 = vector.load %arg11[%c13_108, %c12_109, %c0_110] : memref<24x24x16xf32, #tpu.memory_space<vmem>>, vector<8x8x16xf32>
    %109 = vector.shape_cast %108 : vector<8x8x16xf32> to vector<64x16xf32>
    %c16 = arith.constant 16 : index
    %c0_111 = arith.constant 0 : index
    %c0_112 = arith.constant 0 : index
    %110 = vector.load %arg4[%c16, %c0_111, %c0_112] : memref<25x16x32xf32, #tpu.memory_space<vmem>>, vector<1x16x32xf32>
    %111 = vector.shape_cast %110 : vector<1x16x32xf32> to vector<16x32xf32>
    %cst_113 = arith.constant dense<0.000000e+00> : vector<64x32xf32>
    %112 = tpu.matmul %109, %111, %cst_113 {dimension_numbers = #tpu.dot_dimension_numbers<[1], [0], [0], [1], [0, 0, 1, 1], [], []>} : vector<64x16xf32>, vector<16x32xf32>, vector<64x32xf32> -> vector<64x32xf32>
    %113 = arith.addf %107, %112 : vector<64x32xf32>
    %c13_114 = arith.constant 13 : index
    %c1_115 = arith.constant 1 : index
    %c0_116 = arith.constant 0 : index
    %114 = vector.load %arg11[%c13_114, %c1_115, %c0_116] : memref<24x24x16xf32, #tpu.memory_space<vmem>>, vector<8x8x16xf32>
    %115 = vector.shape_cast %114 : vector<8x8x16xf32> to vector<64x16xf32>
    %c17 = arith.constant 17 : index
    %c0_117 = arith.constant 0 : index
    %c0_118 = arith.constant 0 : index
    %116 = vector.load %arg4[%c17, %c0_117, %c0_118] : memref<25x16x32xf32, #tpu.memory_space<vmem>>, vector<1x16x32xf32>
    %117 = vector.shape_cast %116 : vector<1x16x32xf32> to vector<16x32xf32>
    %cst_119 = arith.constant dense<0.000000e+00> : vector<64x32xf32>
    %118 = tpu.matmul %115, %117, %cst_119 {dimension_numbers = #tpu.dot_dimension_numbers<[1], [0], [0], [1], [0, 0, 1, 1], [], []>} : vector<64x16xf32>, vector<16x32xf32>, vector<64x32xf32> -> vector<64x32xf32>
    %119 = arith.addf %113, %118 : vector<64x32xf32>
    %c13_120 = arith.constant 13 : index
    %c13_121 = arith.constant 13 : index
    %c0_122 = arith.constant 0 : index
    %120 = vector.load %arg11[%c13_120, %c13_121, %c0_122] : memref<24x24x16xf32, #tpu.memory_space<vmem>>, vector<8x8x16xf32>
    %121 = vector.shape_cast %120 : vector<8x8x16xf32> to vector<64x16xf32>
    %c18 = arith.constant 18 : index
    %c0_123 = arith.constant 0 : index
    %c0_124 = arith.constant 0 : index
    %122 = vector.load %arg4[%c18, %c0_123, %c0_124] : memref<25x16x32xf32, #tpu.memory_space<vmem>>, vector<1x16x32xf32>
    %123 = vector.shape_cast %122 : vector<1x16x32xf32> to vector<16x32xf32>
    %cst_125 = arith.constant dense<0.000000e+00> : vector<64x32xf32>
    %124 = tpu.matmul %121, %123, %cst_125 {dimension_numbers = #tpu.dot_dimension_numbers<[1], [0], [0], [1], [0, 0, 1, 1], [], []>} : vector<64x16xf32>, vector<16x32xf32>, vector<64x32xf32> -> vector<64x32xf32>
    %125 = arith.addf %119, %124 : vector<64x32xf32>
    %c13_126 = arith.constant 13 : index
    %c2_127 = arith.constant 2 : index
    %c0_128 = arith.constant 0 : index
    %126 = vector.load %arg11[%c13_126, %c2_127, %c0_128] : memref<24x24x16xf32, #tpu.memory_space<vmem>>, vector<8x8x16xf32>
    %127 = vector.shape_cast %126 : vector<8x8x16xf32> to vector<64x16xf32>
    %c19 = arith.constant 19 : index
    %c0_129 = arith.constant 0 : index
    %c0_130 = arith.constant 0 : index
    %128 = vector.load %arg4[%c19, %c0_129, %c0_130] : memref<25x16x32xf32, #tpu.memory_space<vmem>>, vector<1x16x32xf32>
    %129 = vector.shape_cast %128 : vector<1x16x32xf32> to vector<16x32xf32>
    %cst_131 = arith.constant dense<0.000000e+00> : vector<64x32xf32>
    %130 = tpu.matmul %127, %129, %cst_131 {dimension_numbers = #tpu.dot_dimension_numbers<[1], [0], [0], [1], [0, 0, 1, 1], [], []>} : vector<64x16xf32>, vector<16x32xf32>, vector<64x32xf32> -> vector<64x32xf32>
    %131 = arith.addf %125, %130 : vector<64x32xf32>
    %c2_132 = arith.constant 2 : index
    %c0_133 = arith.constant 0 : index
    %c0_134 = arith.constant 0 : index
    %132 = vector.load %arg11[%c2_132, %c0_133, %c0_134] : memref<24x24x16xf32, #tpu.memory_space<vmem>>, vector<8x8x16xf32>
    %133 = vector.shape_cast %132 : vector<8x8x16xf32> to vector<64x16xf32>
    %c20 = arith.constant 20 : index
    %c0_135 = arith.constant 0 : index
    %c0_136 = arith.constant 0 : index
    %134 = vector.load %arg4[%c20, %c0_135, %c0_136] : memref<25x16x32xf32, #tpu.memory_space<vmem>>, vector<1x16x32xf32>
    %135 = vector.shape_cast %134 : vector<1x16x32xf32> to vector<16x32xf32>
    %cst_137 = arith.constant dense<0.000000e+00> : vector<64x32xf32>
    %136 = tpu.matmul %133, %135, %cst_137 {dimension_numbers = #tpu.dot_dimension_numbers<[1], [0], [0], [1], [0, 0, 1, 1], [], []>} : vector<64x16xf32>, vector<16x32xf32>, vector<64x32xf32> -> vector<64x32xf32>
    %137 = arith.addf %131, %136 : vector<64x32xf32>
    %c2_138 = arith.constant 2 : index
    %c12_139 = arith.constant 12 : index
    %c0_140 = arith.constant 0 : index
    %138 = vector.load %arg11[%c2_138, %c12_139, %c0_140] : memref<24x24x16xf32, #tpu.memory_space<vmem>>, vector<8x8x16xf32>
    %139 = vector.shape_cast %138 : vector<8x8x16xf32> to vector<64x16xf32>
    %c21 = arith.constant 21 : index
    %c0_141 = arith.constant 0 : index
    %c0_142 = arith.constant 0 : index
    %140 = vector.load %arg4[%c21, %c0_141, %c0_142] : memref<25x16x32xf32, #tpu.memory_space<vmem>>, vector<1x16x32xf32>
    %141 = vector.shape_cast %140 : vector<1x16x32xf32> to vector<16x32xf32>
    %cst_143 = arith.constant dense<0.000000e+00> : vector<64x32xf32>
    %142 = tpu.matmul %139, %141, %cst_143 {dimension_numbers = #tpu.dot_dimension_numbers<[1], [0], [0], [1], [0, 0, 1, 1], [], []>} : vector<64x16xf32>, vector<16x32xf32>, vector<64x32xf32> -> vector<64x32xf32>
    %143 = arith.addf %137, %142 : vector<64x32xf32>
    %c2_144 = arith.constant 2 : index
    %c1_145 = arith.constant 1 : index
    %c0_146 = arith.constant 0 : index
    %144 = vector.load %arg11[%c2_144, %c1_145, %c0_146] : memref<24x24x16xf32, #tpu.memory_space<vmem>>, vector<8x8x16xf32>
    %145 = vector.shape_cast %144 : vector<8x8x16xf32> to vector<64x16xf32>
    %c22 = arith.constant 22 : index
    %c0_147 = arith.constant 0 : index
    %c0_148 = arith.constant 0 : index
    %146 = vector.load %arg4[%c22, %c0_147, %c0_148] : memref<25x16x32xf32, #tpu.memory_space<vmem>>, vector<1x16x32xf32>
    %147 = vector.shape_cast %146 : vector<1x16x32xf32> to vector<16x32xf32>
    %cst_149 = arith.constant dense<0.000000e+00> : vector<64x32xf32>
    %148 = tpu.matmul %145, %147, %cst_149 {dimension_numbers = #tpu.dot_dimension_numbers<[1], [0], [0], [1], [0, 0, 1, 1], [], []>} : vector<64x16xf32>, vector<16x32xf32>, vector<64x32xf32> -> vector<64x32xf32>
    %149 = arith.addf %143, %148 : vector<64x32xf32>
    %c2_150 = arith.constant 2 : index
    %c13_151 = arith.constant 13 : index
    %c0_152 = arith.constant 0 : index
    %150 = vector.load %arg11[%c2_150, %c13_151, %c0_152] : memref<24x24x16xf32, #tpu.memory_space<vmem>>, vector<8x8x16xf32>
    %151 = vector.shape_cast %150 : vector<8x8x16xf32> to vector<64x16xf32>
    %c23 = arith.constant 23 : index
    %c0_153 = arith.constant 0 : index
    %c0_154 = arith.constant 0 : index
    %152 = vector.load %arg4[%c23, %c0_153, %c0_154] : memref<25x16x32xf32, #tpu.memory_space<vmem>>, vector<1x16x32xf32>
    %153 = vector.shape_cast %152 : vector<1x16x32xf32> to vector<16x32xf32>
    %cst_155 = arith.constant dense<0.000000e+00> : vector<64x32xf32>
    %154 = tpu.matmul %151, %153, %cst_155 {dimension_numbers = #tpu.dot_dimension_numbers<[1], [0], [0], [1], [0, 0, 1, 1], [], []>} : vector<64x16xf32>, vector<16x32xf32>, vector<64x32xf32> -> vector<64x32xf32>
    %155 = arith.addf %149, %154 : vector<64x32xf32>
    %c2_156 = arith.constant 2 : index
    %c2_157 = arith.constant 2 : index
    %c0_158 = arith.constant 0 : index
    %156 = vector.load %arg11[%c2_156, %c2_157, %c0_158] : memref<24x24x16xf32, #tpu.memory_space<vmem>>, vector<8x8x16xf32>
    %157 = vector.shape_cast %156 : vector<8x8x16xf32> to vector<64x16xf32>
    %c24 = arith.constant 24 : index
    %c0_159 = arith.constant 0 : index
    %c0_160 = arith.constant 0 : index
    %158 = vector.load %arg4[%c24, %c0_159, %c0_160] : memref<25x16x32xf32, #tpu.memory_space<vmem>>, vector<1x16x32xf32>
    %159 = vector.shape_cast %158 : vector<1x16x32xf32> to vector<16x32xf32>
    %cst_161 = arith.constant dense<0.000000e+00> : vector<64x32xf32>
    %160 = tpu.matmul %157, %159, %cst_161 {dimension_numbers = #tpu.dot_dimension_numbers<[1], [0], [0], [1], [0, 0, 1, 1], [], []>} : vector<64x16xf32>, vector<16x32xf32>, vector<64x32xf32> -> vector<64x32xf32>
    %161 = arith.addf %155, %160 : vector<64x32xf32>
    %c0_162 = arith.constant 0 : index
    %c0_163 = arith.constant 0 : index
    %162 = vector.load %arg5[%c0_162, %c0_163] : memref<1x32xf32, #tpu.memory_space<vmem>>, vector<1x32xf32>
    %163 = vector.broadcast %162 : vector<1x32xf32> to vector<64x32xf32>
    %164 = arith.addf %161, %163 : vector<64x32xf32>
    %cst_164 = arith.constant 0.000000e+00 : f32
    %165 = vector.broadcast %cst_164 : f32 to vector<64x32xf32>
    %166 = arith.maximumf %164, %165 : vector<64x32xf32>
    %c0_165 = arith.constant 0 : index
    %c0_166 = arith.constant 0 : index
    %167 = vector.load %arg12[%c0_165, %c0_166] : memref<64x32xf32, #tpu.memory_space<vmem>>, vector<64x32xf32>
    tpu.vector_store %arg12[%c0_165, %c0_166], %166 {strides = array<i32>} : memref<64x32xf32, #tpu.memory_space<vmem>>, vector<64x32xf32>,
    %cst_167 = arith.constant 0.000000e+00 : f32
    %168 = vector.broadcast %cst_167 : f32 to vector<4x128xf32>
    %c0_168 = arith.constant 0 : index
    %c0_169 = arith.constant 0 : index
    %169 = tpu.strided_load %arg12[%c0_168, %c0_169] {strides = array<i32: 2, 1>} : memref<64x32xf32, #tpu.memory_space<vmem>>, vector<2x32xf32>
    %c16_170 = arith.constant 16 : index
    %c0_171 = arith.constant 0 : index
    %170 = tpu.strided_load %arg12[%c16_170, %c0_171] {strides = array<i32: 2, 1>} : memref<64x32xf32, #tpu.memory_space<vmem>>, vector<2x32xf32>
    %171 = tpu.concatenate %169, %170 in 0 : vector<2x32xf32>, vector<2x32xf32> -> vector<4x32xf32>
    %c0_172 = arith.constant 0 : index
    %c0_173 = arith.constant 0 : index
    %c0_174 = arith.constant 0 : index
    %172 = vector.load %arg6[%c0_172, %c0_173, %c0_174] : memref<25x32x128xf32, #tpu.memory_space<vmem>>, vector<1x32x128xf32>
    %173 = vector.shape_cast %172 : vector<1x32x128xf32> to vector<32x128xf32>
    %cst_175 = arith.constant dense<0.000000e+00> : vector<4x128xf32>
    %174 = tpu.matmul %171, %173, %cst_175 {dimension_numbers = #tpu.dot_dimension_numbers<[1], [0], [0], [1], [0, 0, 1, 1], [], []>} : vector<4x32xf32>, vector<32x128xf32>, vector<4x128xf32> -> vector<4x128xf32>
    %175 = arith.addf %168, %174 : vector<4x128xf32>
    %c1_176 = arith.constant 1 : index
    %c0_177 = arith.constant 0 : index
    %176 = tpu.strided_load %arg12[%c1_176, %c0_177] {strides = array<i32: 2, 1>} : memref<64x32xf32, #tpu.memory_space<vmem>>, vector<2x32xf32>
    %c17_178 = arith.constant 17 : index
    %c0_179 = arith.constant 0 : index
    %177 = tpu.strided_load %arg12[%c17_178, %c0_179] {strides = array<i32: 2, 1>} : memref<64x32xf32, #tpu.memory_space<vmem>>, vector<2x32xf32>
    %178 = tpu.concatenate %176, %177 in 0 : vector<2x32xf32>, vector<2x32xf32> -> vector<4x32xf32>
    %c1_180 = arith.constant 1 : index
    %c0_181 = arith.constant 0 : index
    %c0_182 = arith.constant 0 : index
    %179 = vector.load %arg6[%c1_180, %c0_181, %c0_182] : memref<25x32x128xf32, #tpu.memory_space<vmem>>, vector<1x32x128xf32>
    %180 = vector.shape_cast %179 : vector<1x32x128xf32> to vector<32x128xf32>
    %cst_183 = arith.constant dense<0.000000e+00> : vector<4x128xf32>
    %181 = tpu.matmul %178, %180, %cst_183 {dimension_numbers = #tpu.dot_dimension_numbers<[1], [0], [0], [1], [0, 0, 1, 1], [], []>} : vector<4x32xf32>, vector<32x128xf32>, vector<4x128xf32> -> vector<4x128xf32>
    %182 = arith.addf %175, %181 : vector<4x128xf32>
    %c2_184 = arith.constant 2 : index
    %c0_185 = arith.constant 0 : index
    %183 = tpu.strided_load %arg12[%c2_184, %c0_185] {strides = array<i32: 2, 1>} : memref<64x32xf32, #tpu.memory_space<vmem>>, vector<2x32xf32>
    %c18_186 = arith.constant 18 : index
    %c0_187 = arith.constant 0 : index
    %184 = tpu.strided_load %arg12[%c18_186, %c0_187] {strides = array<i32: 2, 1>} : memref<64x32xf32, #tpu.memory_space<vmem>>, vector<2x32xf32>
    %185 = tpu.concatenate %183, %184 in 0 : vector<2x32xf32>, vector<2x32xf32> -> vector<4x32xf32>
    %c2_188 = arith.constant 2 : index
    %c0_189 = arith.constant 0 : index
    %c0_190 = arith.constant 0 : index
    %186 = vector.load %arg6[%c2_188, %c0_189, %c0_190] : memref<25x32x128xf32, #tpu.memory_space<vmem>>, vector<1x32x128xf32>
    %187 = vector.shape_cast %186 : vector<1x32x128xf32> to vector<32x128xf32>
    %cst_191 = arith.constant dense<0.000000e+00> : vector<4x128xf32>
    %188 = tpu.matmul %185, %187, %cst_191 {dimension_numbers = #tpu.dot_dimension_numbers<[1], [0], [0], [1], [0, 0, 1, 1], [], []>} : vector<4x32xf32>, vector<32x128xf32>, vector<4x128xf32> -> vector<4x128xf32>
    %189 = arith.addf %182, %188 : vector<4x128xf32>
    %c3_192 = arith.constant 3 : index
    %c0_193 = arith.constant 0 : index
    %190 = tpu.strided_load %arg12[%c3_192, %c0_193] {strides = array<i32: 2, 1>} : memref<64x32xf32, #tpu.memory_space<vmem>>, vector<2x32xf32>
    %c19_194 = arith.constant 19 : index
    %c0_195 = arith.constant 0 : index
    %191 = tpu.strided_load %arg12[%c19_194, %c0_195] {strides = array<i32: 2, 1>} : memref<64x32xf32, #tpu.memory_space<vmem>>, vector<2x32xf32>
    %192 = tpu.concatenate %190, %191 in 0 : vector<2x32xf32>, vector<2x32xf32> -> vector<4x32xf32>
    %c3_196 = arith.constant 3 : index
    %c0_197 = arith.constant 0 : index
    %c0_198 = arith.constant 0 : index
    %193 = vector.load %arg6[%c3_196, %c0_197, %c0_198] : memref<25x32x128xf32, #tpu.memory_space<vmem>>, vector<1x32x128xf32>
    %194 = vector.shape_cast %193 : vector<1x32x128xf32> to vector<32x128xf32>
    %cst_199 = arith.constant dense<0.000000e+00> : vector<4x128xf32>
    %195 = tpu.matmul %192, %194, %cst_199 {dimension_numbers = #tpu.dot_dimension_numbers<[1], [0], [0], [1], [0, 0, 1, 1], [], []>} : vector<4x32xf32>, vector<32x128xf32>, vector<4x128xf32> -> vector<4x128xf32>
    %196 = arith.addf %189, %195 : vector<4x128xf32>
    %c4_200 = arith.constant 4 : index
    %c0_201 = arith.constant 0 : index
    %197 = tpu.strided_load %arg12[%c4_200, %c0_201] {strides = array<i32: 2, 1>} : memref<64x32xf32, #tpu.memory_space<vmem>>, vector<2x32xf32>
    %c20_202 = arith.constant 20 : index
    %c0_203 = arith.constant 0 : index
    %198 = tpu.strided_load %arg12[%c20_202, %c0_203] {strides = array<i32: 2, 1>} : memref<64x32xf32, #tpu.memory_space<vmem>>, vector<2x32xf32>
    %199 = tpu.concatenate %197, %198 in 0 : vector<2x32xf32>, vector<2x32xf32> -> vector<4x32xf32>
    %c4_204 = arith.constant 4 : index
    %c0_205 = arith.constant 0 : index
    %c0_206 = arith.constant 0 : index
    %200 = vector.load %arg6[%c4_204, %c0_205, %c0_206] : memref<25x32x128xf32, #tpu.memory_space<vmem>>, vector<1x32x128xf32>
    %201 = vector.shape_cast %200 : vector<1x32x128xf32> to vector<32x128xf32>
    %cst_207 = arith.constant dense<0.000000e+00> : vector<4x128xf32>
    %202 = tpu.matmul %199, %201, %cst_207 {dimension_numbers = #tpu.dot_dimension_numbers<[1], [0], [0], [1], [0, 0, 1, 1], [], []>} : vector<4x32xf32>, vector<32x128xf32>, vector<4x128xf32> -> vector<4x128xf32>
    %203 = arith.addf %196, %202 : vector<4x128xf32>
    %c8_208 = arith.constant 8 : index
    %c0_209 = arith.constant 0 : index
    %204 = tpu.strided_load %arg12[%c8_208, %c0_209] {strides = array<i32: 2, 1>} : memref<64x32xf32, #tpu.memory_space<vmem>>, vector<2x32xf32>
    %c24_210 = arith.constant 24 : index
    %c0_211 = arith.constant 0 : index
    %205 = tpu.strided_load %arg12[%c24_210, %c0_211] {strides = array<i32: 2, 1>} : memref<64x32xf32, #tpu.memory_space<vmem>>, vector<2x32xf32>
    %206 = tpu.concatenate %204, %205 in 0 : vector<2x32xf32>, vector<2x32xf32> -> vector<4x32xf32>
    %c5_212 = arith.constant 5 : index
    %c0_213 = arith.constant 0 : index
    %c0_214 = arith.constant 0 : index
    %207 = vector.load %arg6[%c5_212, %c0_213, %c0_214] : memref<25x32x128xf32, #tpu.memory_space<vmem>>, vector<1x32x128xf32>
    %208 = vector.shape_cast %207 : vector<1x32x128xf32> to vector<32x128xf32>
    %cst_215 = arith.constant dense<0.000000e+00> : vector<4x128xf32>
    %209 = tpu.matmul %206, %208, %cst_215 {dimension_numbers = #tpu.dot_dimension_numbers<[1], [0], [0], [1], [0, 0, 1, 1], [], []>} : vector<4x32xf32>, vector<32x128xf32>, vector<4x128xf32> -> vector<4x128xf32>
    %210 = arith.addf %203, %209 : vector<4x128xf32>
    %c9_216 = arith.constant 9 : index
    %c0_217 = arith.constant 0 : index
    %211 = tpu.strided_load %arg12[%c9_216, %c0_217] {strides = array<i32: 2, 1>} : memref<64x32xf32, #tpu.memory_space<vmem>>, vector<2x32xf32>
    %c25 = arith.constant 25 : index
    %c0_218 = arith.constant 0 : index
    %212 = tpu.strided_load %arg12[%c25, %c0_218] {strides = array<i32: 2, 1>} : memref<64x32xf32, #tpu.memory_space<vmem>>, vector<2x32xf32>
    %213 = tpu.concatenate %211, %212 in 0 : vector<2x32xf32>, vector<2x32xf32> -> vector<4x32xf32>
    %c6_219 = arith.constant 6 : index
    %c0_220 = arith.constant 0 : index
    %c0_221 = arith.constant 0 : index
    %214 = vector.load %arg6[%c6_219, %c0_220, %c0_221] : memref<25x32x128xf32, #tpu.memory_space<vmem>>, vector<1x32x128xf32>
    %215 = vector.shape_cast %214 : vector<1x32x128xf32> to vector<32x128xf32>
    %cst_222 = arith.constant dense<0.000000e+00> : vector<4x128xf32>
    %216 = tpu.matmul %213, %215, %cst_222 {dimension_numbers = #tpu.dot_dimension_numbers<[1], [0], [0], [1], [0, 0, 1, 1], [], []>} : vector<4x32xf32>, vector<32x128xf32>, vector<4x128xf32> -> vector<4x128xf32>
    %217 = arith.addf %210, %216 : vector<4x128xf32>
    %c10_223 = arith.constant 10 : index
    %c0_224 = arith.constant 0 : index
    %218 = tpu.strided_load %arg12[%c10_223, %c0_224] {strides = array<i32: 2, 1>} : memref<64x32xf32, #tpu.memory_space<vmem>>, vector<2x32xf32>
    %c26 = arith.constant 26 : index
    %c0_225 = arith.constant 0 : index
    %219 = tpu.strided_load %arg12[%c26, %c0_225] {strides = array<i32: 2, 1>} : memref<64x32xf32, #tpu.memory_space<vmem>>, vector<2x32xf32>
    %220 = tpu.concatenate %218, %219 in 0 : vector<2x32xf32>, vector<2x32xf32> -> vector<4x32xf32>
    %c7_226 = arith.constant 7 : index
    %c0_227 = arith.constant 0 : index
    %c0_228 = arith.constant 0 : index
    %221 = vector.load %arg6[%c7_226, %c0_227, %c0_228] : memref<25x32x128xf32, #tpu.memory_space<vmem>>, vector<1x32x128xf32>
    %222 = vector.shape_cast %221 : vector<1x32x128xf32> to vector<32x128xf32>
    %cst_229 = arith.constant dense<0.000000e+00> : vector<4x128xf32>
    %223 = tpu.matmul %220, %222, %cst_229 {dimension_numbers = #tpu.dot_dimension_numbers<[1], [0], [0], [1], [0, 0, 1, 1], [], []>} : vector<4x32xf32>, vector<32x128xf32>, vector<4x128xf32> -> vector<4x128xf32>
    %224 = arith.addf %217, %223 : vector<4x128xf32>
    %c11_230 = arith.constant 11 : index
    %c0_231 = arith.constant 0 : index
    %225 = tpu.strided_load %arg12[%c11_230, %c0_231] {strides = array<i32: 2, 1>} : memref<64x32xf32, #tpu.memory_space<vmem>>, vector<2x32xf32>
    %c27 = arith.constant 27 : index
    %c0_232 = arith.constant 0 : index
    %226 = tpu.strided_load %arg12[%c27, %c0_232] {strides = array<i32: 2, 1>} : memref<64x32xf32, #tpu.memory_space<vmem>>, vector<2x32xf32>
    %227 = tpu.concatenate %225, %226 in 0 : vector<2x32xf32>, vector<2x32xf32> -> vector<4x32xf32>
    %c8_233 = arith.constant 8 : index
    %c0_234 = arith.constant 0 : index
    %c0_235 = arith.constant 0 : index
    %228 = vector.load %arg6[%c8_233, %c0_234, %c0_235] : memref<25x32x128xf32, #tpu.memory_space<vmem>>, vector<1x32x128xf32>
    %229 = vector.shape_cast %228 : vector<1x32x128xf32> to vector<32x128xf32>
    %cst_236 = arith.constant dense<0.000000e+00> : vector<4x128xf32>
    %230 = tpu.matmul %227, %229, %cst_236 {dimension_numbers = #tpu.dot_dimension_numbers<[1], [0], [0], [1], [0, 0, 1, 1], [], []>} : vector<4x32xf32>, vector<32x128xf32>, vector<4x128xf32> -> vector<4x128xf32>
    %231 = arith.addf %224, %230 : vector<4x128xf32>
    %c12_237 = arith.constant 12 : index
    %c0_238 = arith.constant 0 : index
    %232 = tpu.strided_load %arg12[%c12_237, %c0_238] {strides = array<i32: 2, 1>} : memref<64x32xf32, #tpu.memory_space<vmem>>, vector<2x32xf32>
    %c28 = arith.constant 28 : index
    %c0_239 = arith.constant 0 : index
    %233 = tpu.strided_load %arg12[%c28, %c0_239] {strides = array<i32: 2, 1>} : memref<64x32xf32, #tpu.memory_space<vmem>>, vector<2x32xf32>
    %234 = tpu.concatenate %232, %233 in 0 : vector<2x32xf32>, vector<2x32xf32> -> vector<4x32xf32>
    %c9_240 = arith.constant 9 : index
    %c0_241 = arith.constant 0 : index
    %c0_242 = arith.constant 0 : index
    %235 = vector.load %arg6[%c9_240, %c0_241, %c0_242] : memref<25x32x128xf32, #tpu.memory_space<vmem>>, vector<1x32x128xf32>
    %236 = vector.shape_cast %235 : vector<1x32x128xf32> to vector<32x128xf32>
    %cst_243 = arith.constant dense<0.000000e+00> : vector<4x128xf32>
    %237 = tpu.matmul %234, %236, %cst_243 {dimension_numbers = #tpu.dot_dimension_numbers<[1], [0], [0], [1], [0, 0, 1, 1], [], []>} : vector<4x32xf32>, vector<32x128xf32>, vector<4x128xf32> -> vector<4x128xf32>
    %238 = arith.addf %231, %237 : vector<4x128xf32>
    %c16_244 = arith.constant 16 : index
    %c0_245 = arith.constant 0 : index
    %239 = tpu.strided_load %arg12[%c16_244, %c0_245] {strides = array<i32: 2, 1>} : memref<64x32xf32, #tpu.memory_space<vmem>>, vector<2x32xf32>
    %c32 = arith.constant 32 : index
    %c0_246 = arith.constant 0 : index
    %240 = tpu.strided_load %arg12[%c32, %c0_246] {strides = array<i32: 2, 1>} : memref<64x32xf32, #tpu.memory_space<vmem>>, vector<2x32xf32>
    %241 = tpu.concatenate %239, %240 in 0 : vector<2x32xf32>, vector<2x32xf32> -> vector<4x32xf32>
    %c10_247 = arith.constant 10 : index
    %c0_248 = arith.constant 0 : index
    %c0_249 = arith.constant 0 : index
    %242 = vector.load %arg6[%c10_247, %c0_248, %c0_249] : memref<25x32x128xf32, #tpu.memory_space<vmem>>, vector<1x32x128xf32>
    %243 = vector.shape_cast %242 : vector<1x32x128xf32> to vector<32x128xf32>
    %cst_250 = arith.constant dense<0.000000e+00> : vector<4x128xf32>
    %244 = tpu.matmul %241, %243, %cst_250 {dimension_numbers = #tpu.dot_dimension_numbers<[1], [0], [0], [1], [0, 0, 1, 1], [], []>} : vector<4x32xf32>, vector<32x128xf32>, vector<4x128xf32> -> vector<4x128xf32>
    %245 = arith.addf %238, %244 : vector<4x128xf32>
    %c17_251 = arith.constant 17 : index
    %c0_252 = arith.constant 0 : index
    %246 = tpu.strided_load %arg12[%c17_251, %c0_252] {strides = array<i32: 2, 1>} : memref<64x32xf32, #tpu.memory_space<vmem>>, vector<2x32xf32>
    %c33 = arith.constant 33 : index
    %c0_253 = arith.constant 0 : index
    %247 = tpu.strided_load %arg12[%c33, %c0_253] {strides = array<i32: 2, 1>} : memref<64x32xf32, #tpu.memory_space<vmem>>, vector<2x32xf32>
    %248 = tpu.concatenate %246, %247 in 0 : vector<2x32xf32>, vector<2x32xf32> -> vector<4x32xf32>
    %c11_254 = arith.constant 11 : index
    %c0_255 = arith.constant 0 : index
    %c0_256 = arith.constant 0 : index
    %249 = vector.load %arg6[%c11_254, %c0_255, %c0_256] : memref<25x32x128xf32, #tpu.memory_space<vmem>>, vector<1x32x128xf32>
    %250 = vector.shape_cast %249 : vector<1x32x128xf32> to vector<32x128xf32>
    %cst_257 = arith.constant dense<0.000000e+00> : vector<4x128xf32>
    %251 = tpu.matmul %248, %250, %cst_257 {dimension_numbers = #tpu.dot_dimension_numbers<[1], [0], [0], [1], [0, 0, 1, 1], [], []>} : vector<4x32xf32>, vector<32x128xf32>, vector<4x128xf32> -> vector<4x128xf32>
    %252 = arith.addf %245, %251 : vector<4x128xf32>
    %c18_258 = arith.constant 18 : index
    %c0_259 = arith.constant 0 : index
    %253 = tpu.strided_load %arg12[%c18_258, %c0_259] {strides = array<i32: 2, 1>} : memref<64x32xf32, #tpu.memory_space<vmem>>, vector<2x32xf32>
    %c34 = arith.constant 34 : index
    %c0_260 = arith.constant 0 : index
    %254 = tpu.strided_load %arg12[%c34, %c0_260] {strides = array<i32: 2, 1>} : memref<64x32xf32, #tpu.memory_space<vmem>>, vector<2x32xf32>
    %255 = tpu.concatenate %253, %254 in 0 : vector<2x32xf32>, vector<2x32xf32> -> vector<4x32xf32>
    %c12_261 = arith.constant 12 : index
    %c0_262 = arith.constant 0 : index
    %c0_263 = arith.constant 0 : index
    %256 = vector.load %arg6[%c12_261, %c0_262, %c0_263] : memref<25x32x128xf32, #tpu.memory_space<vmem>>, vector<1x32x128xf32>
    %257 = vector.shape_cast %256 : vector<1x32x128xf32> to vector<32x128xf32>
    %cst_264 = arith.constant dense<0.000000e+00> : vector<4x128xf32>
    %258 = tpu.matmul %255, %257, %cst_264 {dimension_numbers = #tpu.dot_dimension_numbers<[1], [0], [0], [1], [0, 0, 1, 1], [], []>} : vector<4x32xf32>, vector<32x128xf32>, vector<4x128xf32> -> vector<4x128xf32>
    %259 = arith.addf %252, %258 : vector<4x128xf32>
    %c19_265 = arith.constant 19 : index
    %c0_266 = arith.constant 0 : index
    %260 = tpu.strided_load %arg12[%c19_265, %c0_266] {strides = array<i32: 2, 1>} : memref<64x32xf32, #tpu.memory_space<vmem>>, vector<2x32xf32>
    %c35 = arith.constant 35 : index
    %c0_267 = arith.constant 0 : index
    %261 = tpu.strided_load %arg12[%c35, %c0_267] {strides = array<i32: 2, 1>} : memref<64x32xf32, #tpu.memory_space<vmem>>, vector<2x32xf32>
    %262 = tpu.concatenate %260, %261 in 0 : vector<2x32xf32>, vector<2x32xf32> -> vector<4x32xf32>
    %c13_268 = arith.constant 13 : index
    %c0_269 = arith.constant 0 : index
    %c0_270 = arith.constant 0 : index
    %263 = vector.load %arg6[%c13_268, %c0_269, %c0_270] : memref<25x32x128xf32, #tpu.memory_space<vmem>>, vector<1x32x128xf32>
    %264 = vector.shape_cast %263 : vector<1x32x128xf32> to vector<32x128xf32>
    %cst_271 = arith.constant dense<0.000000e+00> : vector<4x128xf32>
    %265 = tpu.matmul %262, %264, %cst_271 {dimension_numbers = #tpu.dot_dimension_numbers<[1], [0], [0], [1], [0, 0, 1, 1], [], []>} : vector<4x32xf32>, vector<32x128xf32>, vector<4x128xf32> -> vector<4x128xf32>
    %266 = arith.addf %259, %265 : vector<4x128xf32>
    %c20_272 = arith.constant 20 : index
    %c0_273 = arith.constant 0 : index
    %267 = tpu.strided_load %arg12[%c20_272, %c0_273] {strides = array<i32: 2, 1>} : memref<64x32xf32, #tpu.memory_space<vmem>>, vector<2x32xf32>
    %c36 = arith.constant 36 : index
    %c0_274 = arith.constant 0 : index
    %268 = tpu.strided_load %arg12[%c36, %c0_274] {strides = array<i32: 2, 1>} : memref<64x32xf32, #tpu.memory_space<vmem>>, vector<2x32xf32>
    %269 = tpu.concatenate %267, %268 in 0 : vector<2x32xf32>, vector<2x32xf32> -> vector<4x32xf32>
    %c14_275 = arith.constant 14 : index
    %c0_276 = arith.constant 0 : index
    %c0_277 = arith.constant 0 : index
    %270 = vector.load %arg6[%c14_275, %c0_276, %c0_277] : memref<25x32x128xf32, #tpu.memory_space<vmem>>, vector<1x32x128xf32>
    %271 = vector.shape_cast %270 : vector<1x32x128xf32> to vector<32x128xf32>
    %cst_278 = arith.constant dense<0.000000e+00> : vector<4x128xf32>
    %272 = tpu.matmul %269, %271, %cst_278 {dimension_numbers = #tpu.dot_dimension_numbers<[1], [0], [0], [1], [0, 0, 1, 1], [], []>} : vector<4x32xf32>, vector<32x128xf32>, vector<4x128xf32> -> vector<4x128xf32>
    %273 = arith.addf %266, %272 : vector<4x128xf32>
    %c24_279 = arith.constant 24 : index
    %c0_280 = arith.constant 0 : index
    %274 = tpu.strided_load %arg12[%c24_279, %c0_280] {strides = array<i32: 2, 1>} : memref<64x32xf32, #tpu.memory_space<vmem>>, vector<2x32xf32>
    %c40 = arith.constant 40 : index
    %c0_281 = arith.constant 0 : index
    %275 = tpu.strided_load %arg12[%c40, %c0_281] {strides = array<i32: 2, 1>} : memref<64x32xf32, #tpu.memory_space<vmem>>, vector<2x32xf32>
    %276 = tpu.concatenate %274, %275 in 0 : vector<2x32xf32>, vector<2x32xf32> -> vector<4x32xf32>
    %c15_282 = arith.constant 15 : index
    %c0_283 = arith.constant 0 : index
    %c0_284 = arith.constant 0 : index
    %277 = vector.load %arg6[%c15_282, %c0_283, %c0_284] : memref<25x32x128xf32, #tpu.memory_space<vmem>>, vector<1x32x128xf32>
    %278 = vector.shape_cast %277 : vector<1x32x128xf32> to vector<32x128xf32>
    %cst_285 = arith.constant dense<0.000000e+00> : vector<4x128xf32>
    %279 = tpu.matmul %276, %278, %cst_285 {dimension_numbers = #tpu.dot_dimension_numbers<[1], [0], [0], [1], [0, 0, 1, 1], [], []>} : vector<4x32xf32>, vector<32x128xf32>, vector<4x128xf32> -> vector<4x128xf32>
    %280 = arith.addf %273, %279 : vector<4x128xf32>
    %c25_286 = arith.constant 25 : index
    %c0_287 = arith.constant 0 : index
    %281 = tpu.strided_load %arg12[%c25_286, %c0_287] {strides = array<i32: 2, 1>} : memref<64x32xf32, #tpu.memory_space<vmem>>, vector<2x32xf32>
    %c41 = arith.constant 41 : index
    %c0_288 = arith.constant 0 : index
    %282 = tpu.strided_load %arg12[%c41, %c0_288] {strides = array<i32: 2, 1>} : memref<64x32xf32, #tpu.memory_space<vmem>>, vector<2x32xf32>
    %283 = tpu.concatenate %281, %282 in 0 : vector<2x32xf32>, vector<2x32xf32> -> vector<4x32xf32>
    %c16_289 = arith.constant 16 : index
    %c0_290 = arith.constant 0 : index
    %c0_291 = arith.constant 0 : index
    %284 = vector.load %arg6[%c16_289, %c0_290, %c0_291] : memref<25x32x128xf32, #tpu.memory_space<vmem>>, vector<1x32x128xf32>
    %285 = vector.shape_cast %284 : vector<1x32x128xf32> to vector<32x128xf32>
    %cst_292 = arith.constant dense<0.000000e+00> : vector<4x128xf32>
    %286 = tpu.matmul %283, %285, %cst_292 {dimension_numbers = #tpu.dot_dimension_numbers<[1], [0], [0], [1], [0, 0, 1, 1], [], []>} : vector<4x32xf32>, vector<32x128xf32>, vector<4x128xf32> -> vector<4x128xf32>
    %287 = arith.addf %280, %286 : vector<4x128xf32>
    %c26_293 = arith.constant 26 : index
    %c0_294 = arith.constant 0 : index
    %288 = tpu.strided_load %arg12[%c26_293, %c0_294] {strides = array<i32: 2, 1>} : memref<64x32xf32, #tpu.memory_space<vmem>>, vector<2x32xf32>
    %c42 = arith.constant 42 : index
    %c0_295 = arith.constant 0 : index
    %289 = tpu.strided_load %arg12[%c42, %c0_295] {strides = array<i32: 2, 1>} : memref<64x32xf32, #tpu.memory_space<vmem>>, vector<2x32xf32>
    %290 = tpu.concatenate %288, %289 in 0 : vector<2x32xf32>, vector<2x32xf32> -> vector<4x32xf32>
    %c17_296 = arith.constant 17 : index
    %c0_297 = arith.constant 0 : index
    %c0_298 = arith.constant 0 : index
    %291 = vector.load %arg6[%c17_296, %c0_297, %c0_298] : memref<25x32x128xf32, #tpu.memory_space<vmem>>, vector<1x32x128xf32>
    %292 = vector.shape_cast %291 : vector<1x32x128xf32> to vector<32x128xf32>
    %cst_299 = arith.constant dense<0.000000e+00> : vector<4x128xf32>
    %293 = tpu.matmul %290, %292, %cst_299 {dimension_numbers = #tpu.dot_dimension_numbers<[1], [0], [0], [1], [0, 0, 1, 1], [], []>} : vector<4x32xf32>, vector<32x128xf32>, vector<4x128xf32> -> vector<4x128xf32>
    %294 = arith.addf %287, %293 : vector<4x128xf32>
    %c27_300 = arith.constant 27 : index
    %c0_301 = arith.constant 0 : index
    %295 = tpu.strided_load %arg12[%c27_300, %c0_301] {strides = array<i32: 2, 1>} : memref<64x32xf32, #tpu.memory_space<vmem>>, vector<2x32xf32>
    %c43 = arith.constant 43 : index
    %c0_302 = arith.constant 0 : index
    %296 = tpu.strided_load %arg12[%c43, %c0_302] {strides = array<i32: 2, 1>} : memref<64x32xf32, #tpu.memory_space<vmem>>, vector<2x32xf32>
    %297 = tpu.concatenate %295, %296 in 0 : vector<2x32xf32>, vector<2x32xf32> -> vector<4x32xf32>
    %c18_303 = arith.constant 18 : index
    %c0_304 = arith.constant 0 : index
    %c0_305 = arith.constant 0 : index
    %298 = vector.load %arg6[%c18_303, %c0_304, %c0_305] : memref<25x32x128xf32, #tpu.memory_space<vmem>>, vector<1x32x128xf32>
    %299 = vector.shape_cast %298 : vector<1x32x128xf32> to vector<32x128xf32>
    %cst_306 = arith.constant dense<0.000000e+00> : vector<4x128xf32>
    %300 = tpu.matmul %297, %299, %cst_306 {dimension_numbers = #tpu.dot_dimension_numbers<[1], [0], [0], [1], [0, 0, 1, 1], [], []>} : vector<4x32xf32>, vector<32x128xf32>, vector<4x128xf32> -> vector<4x128xf32>
    %301 = arith.addf %294, %300 : vector<4x128xf32>
    %c28_307 = arith.constant 28 : index
    %c0_308 = arith.constant 0 : index
    %302 = tpu.strided_load %arg12[%c28_307, %c0_308] {strides = array<i32: 2, 1>} : memref<64x32xf32, #tpu.memory_space<vmem>>, vector<2x32xf32>
    %c44 = arith.constant 44 : index
    %c0_309 = arith.constant 0 : index
    %303 = tpu.strided_load %arg12[%c44, %c0_309] {strides = array<i32: 2, 1>} : memref<64x32xf32, #tpu.memory_space<vmem>>, vector<2x32xf32>
    %304 = tpu.concatenate %302, %303 in 0 : vector<2x32xf32>, vector<2x32xf32> -> vector<4x32xf32>
    %c19_310 = arith.constant 19 : index
    %c0_311 = arith.constant 0 : index
    %c0_312 = arith.constant 0 : index
    %305 = vector.load %arg6[%c19_310, %c0_311, %c0_312] : memref<25x32x128xf32, #tpu.memory_space<vmem>>, vector<1x32x128xf32>
    %306 = vector.shape_cast %305 : vector<1x32x128xf32> to vector<32x128xf32>
    %cst_313 = arith.constant dense<0.000000e+00> : vector<4x128xf32>
    %307 = tpu.matmul %304, %306, %cst_313 {dimension_numbers = #tpu.dot_dimension_numbers<[1], [0], [0], [1], [0, 0, 1, 1], [], []>} : vector<4x32xf32>, vector<32x128xf32>, vector<4x128xf32> -> vector<4x128xf32>
    %308 = arith.addf %301, %307 : vector<4x128xf32>
    %c32_314 = arith.constant 32 : index
    %c0_315 = arith.constant 0 : index
    %309 = tpu.strided_load %arg12[%c32_314, %c0_315] {strides = array<i32: 2, 1>} : memref<64x32xf32, #tpu.memory_space<vmem>>, vector<2x32xf32>
    %c48 = arith.constant 48 : index
    %c0_316 = arith.constant 0 : index
    %310 = tpu.strided_load %arg12[%c48, %c0_316] {strides = array<i32: 2, 1>} : memref<64x32xf32, #tpu.memory_space<vmem>>, vector<2x32xf32>
    %311 = tpu.concatenate %309, %310 in 0 : vector<2x32xf32>, vector<2x32xf32> -> vector<4x32xf32>
    %c20_317 = arith.constant 20 : index
    %c0_318 = arith.constant 0 : index
    %c0_319 = arith.constant 0 : index
    %312 = vector.load %arg6[%c20_317, %c0_318, %c0_319] : memref<25x32x128xf32, #tpu.memory_space<vmem>>, vector<1x32x128xf32>
    %313 = vector.shape_cast %312 : vector<1x32x128xf32> to vector<32x128xf32>
    %cst_320 = arith.constant dense<0.000000e+00> : vector<4x128xf32>
    %314 = tpu.matmul %311, %313, %cst_320 {dimension_numbers = #tpu.dot_dimension_numbers<[1], [0], [0], [1], [0, 0, 1, 1], [], []>} : vector<4x32xf32>, vector<32x128xf32>, vector<4x128xf32> -> vector<4x128xf32>
    %315 = arith.addf %308, %314 : vector<4x128xf32>
    %c33_321 = arith.constant 33 : index
    %c0_322 = arith.constant 0 : index
    %316 = tpu.strided_load %arg12[%c33_321, %c0_322] {strides = array<i32: 2, 1>} : memref<64x32xf32, #tpu.memory_space<vmem>>, vector<2x32xf32>
    %c49 = arith.constant 49 : index
    %c0_323 = arith.constant 0 : index
    %317 = tpu.strided_load %arg12[%c49, %c0_323] {strides = array<i32: 2, 1>} : memref<64x32xf32, #tpu.memory_space<vmem>>, vector<2x32xf32>
    %318 = tpu.concatenate %316, %317 in 0 : vector<2x32xf32>, vector<2x32xf32> -> vector<4x32xf32>
    %c21_324 = arith.constant 21 : index
    %c0_325 = arith.constant 0 : index
    %c0_326 = arith.constant 0 : index
    %319 = vector.load %arg6[%c21_324, %c0_325, %c0_326] : memref<25x32x128xf32, #tpu.memory_space<vmem>>, vector<1x32x128xf32>
    %320 = vector.shape_cast %319 : vector<1x32x128xf32> to vector<32x128xf32>
    %cst_327 = arith.constant dense<0.000000e+00> : vector<4x128xf32>
    %321 = tpu.matmul %318, %320, %cst_327 {dimension_numbers = #tpu.dot_dimension_numbers<[1], [0], [0], [1], [0, 0, 1, 1], [], []>} : vector<4x32xf32>, vector<32x128xf32>, vector<4x128xf32> -> vector<4x128xf32>
    %322 = arith.addf %315, %321 : vector<4x128xf32>
    %c34_328 = arith.constant 34 : index
    %c0_329 = arith.constant 0 : index
    %323 = tpu.strided_load %arg12[%c34_328, %c0_329] {strides = array<i32: 2, 1>} : memref<64x32xf32, #tpu.memory_space<vmem>>, vector<2x32xf32>
    %c50 = arith.constant 50 : index
    %c0_330 = arith.constant 0 : index
    %324 = tpu.strided_load %arg12[%c50, %c0_330] {strides = array<i32: 2, 1>} : memref<64x32xf32, #tpu.memory_space<vmem>>, vector<2x32xf32>
    %325 = tpu.concatenate %323, %324 in 0 : vector<2x32xf32>, vector<2x32xf32> -> vector<4x32xf32>
    %c22_331 = arith.constant 22 : index
    %c0_332 = arith.constant 0 : index
    %c0_333 = arith.constant 0 : index
    %326 = vector.load %arg6[%c22_331, %c0_332, %c0_333] : memref<25x32x128xf32, #tpu.memory_space<vmem>>, vector<1x32x128xf32>
    %327 = vector.shape_cast %326 : vector<1x32x128xf32> to vector<32x128xf32>
    %cst_334 = arith.constant dense<0.000000e+00> : vector<4x128xf32>
    %328 = tpu.matmul %325, %327, %cst_334 {dimension_numbers = #tpu.dot_dimension_numbers<[1], [0], [0], [1], [0, 0, 1, 1], [], []>} : vector<4x32xf32>, vector<32x128xf32>, vector<4x128xf32> -> vector<4x128xf32>
    %329 = arith.addf %322, %328 : vector<4x128xf32>
    %c35_335 = arith.constant 35 : index
    %c0_336 = arith.constant 0 : index
    %330 = tpu.strided_load %arg12[%c35_335, %c0_336] {strides = array<i32: 2, 1>} : memref<64x32xf32, #tpu.memory_space<vmem>>, vector<2x32xf32>
    %c51 = arith.constant 51 : index
    %c0_337 = arith.constant 0 : index
    %331 = tpu.strided_load %arg12[%c51, %c0_337] {strides = array<i32: 2, 1>} : memref<64x32xf32, #tpu.memory_space<vmem>>, vector<2x32xf32>
    %332 = tpu.concatenate %330, %331 in 0 : vector<2x32xf32>, vector<2x32xf32> -> vector<4x32xf32>
    %c23_338 = arith.constant 23 : index
    %c0_339 = arith.constant 0 : index
    %c0_340 = arith.constant 0 : index
    %333 = vector.load %arg6[%c23_338, %c0_339, %c0_340] : memref<25x32x128xf32, #tpu.memory_space<vmem>>, vector<1x32x128xf32>
    %334 = vector.shape_cast %333 : vector<1x32x128xf32> to vector<32x128xf32>
    %cst_341 = arith.constant dense<0.000000e+00> : vector<4x128xf32>
    %335 = tpu.matmul %332, %334, %cst_341 {dimension_numbers = #tpu.dot_dimension_numbers<[1], [0], [0], [1], [0, 0, 1, 1], [], []>} : vector<4x32xf32>, vector<32x128xf32>, vector<4x128xf32> -> vector<4x128xf32>
    %336 = arith.addf %329, %335 : vector<4x128xf32>
    %c36_342 = arith.constant 36 : index
    %c0_343 = arith.constant 0 : index
    %337 = tpu.strided_load %arg12[%c36_342, %c0_343] {strides = array<i32: 2, 1>} : memref<64x32xf32, #tpu.memory_space<vmem>>, vector<2x32xf32>
    %c52 = arith.constant 52 : index
    %c0_344 = arith.constant 0 : index
    %338 = tpu.strided_load %arg12[%c52, %c0_344] {strides = array<i32: 2, 1>} : memref<64x32xf32, #tpu.memory_space<vmem>>, vector<2x32xf32>
    %339 = tpu.concatenate %337, %338 in 0 : vector<2x32xf32>, vector<2x32xf32> -> vector<4x32xf32>
    %c24_345 = arith.constant 24 : index
    %c0_346 = arith.constant 0 : index
    %c0_347 = arith.constant 0 : index
    %340 = vector.load %arg6[%c24_345, %c0_346, %c0_347] : memref<25x32x128xf32, #tpu.memory_space<vmem>>, vector<1x32x128xf32>
    %341 = vector.shape_cast %340 : vector<1x32x128xf32> to vector<32x128xf32>
    %cst_348 = arith.constant dense<0.000000e+00> : vector<4x128xf32>
    %342 = tpu.matmul %339, %341, %cst_348 {dimension_numbers = #tpu.dot_dimension_numbers<[1], [0], [0], [1], [0, 0, 1, 1], [], []>} : vector<4x32xf32>, vector<32x128xf32>, vector<4x128xf32> -> vector<4x128xf32>
    %343 = arith.addf %336, %342 : vector<4x128xf32>
    %c0_349 = arith.constant 0 : index
    %c0_350 = arith.constant 0 : index
    %344 = vector.load %arg7[%c0_349, %c0_350] : memref<1x128xf32, #tpu.memory_space<vmem>>, vector<1x128xf32>
    %345 = vector.broadcast %344 : vector<1x128xf32> to vector<4x128xf32>
    %346 = arith.addf %343, %345 : vector<4x128xf32>
    %347 = vector.extract_strided_slice %346 {offsets = [0, 0], sizes = [4, 64], strides = [1, 1]} : vector<4x128xf32> to vector<4x64xf32>
    %348 = vector.extract_strided_slice %346 {offsets = [0, 64], sizes = [4, 64], strides = [1, 1]} : vector<4x128xf32> to vector<4x64xf32>
    %c0_351 = arith.constant 0 : index
    %c0_352 = arith.constant 0 : index
    %c0_353 = arith.constant 0 : index
    %349 = vector.load %arg9[%c0_351, %c0_352, %c0_353] : memref<1x4x128xf32, #tpu.memory_space<vmem>>, vector<1x4x128xf32>
    %350 = vector.shape_cast %349 : vector<1x4x128xf32> to vector<4x128xf32>
    %351 = vector.shape_cast %346 : vector<4x128xf32> to vector<1x4x128xf32>
    tpu.vector_store %arg9[%c0_351, %c0_352, %c0_353], %351 {strides = array<i32>} : memref<1x4x128xf32, #tpu.memory_space<vmem>>, vector<1x4x128xf32>,
    %cst_354 = arith.constant 5.000000e-01 : f32
    %352 = vector.broadcast %cst_354 : f32 to vector<4x64xf32>
    %353 = arith.mulf %352, %348 : vector<4x64xf32>
    %354 = math.exp %353 : vector<4x64xf32>
    %c0_355 = arith.constant 0 : index
    %c0_356 = arith.constant 0 : index
    %c0_357 = arith.constant 0 : index
    %355 = vector.load %arg8[%c0_355, %c0_356, %c0_357] : memref<1x4x64xf32, #tpu.memory_space<vmem>>, vector<1x4x64xf32>
    %356 = vector.shape_cast %355 : vector<1x4x64xf32> to vector<4x64xf32>
    %357 = arith.mulf %354, %356 : vector<4x64xf32>
    %358 = arith.addf %347, %357 : vector<4x64xf32>
    %c0_358 = arith.constant 0 : index
    %c0_359 = arith.constant 0 : index
    %c0_360 = arith.constant 0 : index
    %359 = vector.load %arg10[%c0_358, %c0_359, %c0_360] : memref<1x4x64xf32, #tpu.memory_space<vmem>>, vector<1x4x64xf32>
    %360 = vector.shape_cast %359 : vector<1x4x64xf32> to vector<4x64xf32>
    %361 = vector.shape_cast %358 : vector<4x64xf32> to vector<1x4x64xf32>
    tpu.vector_store %arg10[%c0_358, %c0_359, %c0_360], %361 {strides = array<i32>} : memref<1x4x64xf32, #tpu.memory_space<vmem>>, vector<1x4x64xf32>,
    return
  }
  func.func @transform_0(%arg0: i32) -> (i32, i32, i32) {
    %c0_i32 = arith.constant 0 : i32
    %c0_i32_0 = arith.constant 0 : i32
    %c0_i32_1 = arith.constant 0 : i32
    return %arg0, %c0_i32, %c0_i32_0 : i32, i32, i32
  }
  func.func @transform_1(%arg0: i32) -> (i32, i32) {
    %c0_i32 = arith.constant 0 : i32
    %c0_i32_0 = arith.constant 0 : i32
    %c0_i32_1 = arith.constant 0 : i32
    return %c0_i32, %c0_i32_0 : i32, i32
  }
  func.func @transform_2(%arg0: i32) -> (i32, i32) {
    %c0_i32 = arith.constant 0 : i32
    %c0_i32_0 = arith.constant 0 : i32
    %c0_i32_1 = arith.constant 0 : i32
    return %c0_i32, %c0_i32_0 : i32, i32
  }
  func.func @transform_3(%arg0: i32) -> (i32, i32, i32) {
    %c0_i32 = arith.constant 0 : i32
    %c0_i32_0 = arith.constant 0 : i32
    %c0_i32_1 = arith.constant 0 : i32
    %c0_i32_2 = arith.constant 0 : i32
    return %c0_i32, %c0_i32_0, %c0_i32_1 : i32, i32, i32
  }
  func.func @transform_4(%arg0: i32) -> (i32, i32) {
    %c0_i32 = arith.constant 0 : i32
    %c0_i32_0 = arith.constant 0 : i32
    %c0_i32_1 = arith.constant 0 : i32
    return %c0_i32, %c0_i32_0 : i32, i32
  }
  func.func @transform_5(%arg0: i32) -> (i32, i32, i32) {
    %c0_i32 = arith.constant 0 : i32
    %c0_i32_0 = arith.constant 0 : i32
    %c0_i32_1 = arith.constant 0 : i32
    %c0_i32_2 = arith.constant 0 : i32
    return %c0_i32, %c0_i32_0, %c0_i32_1 : i32, i32, i32
  }
  func.func @transform_6(%arg0: i32) -> (i32, i32) {
    %c0_i32 = arith.constant 0 : i32
    %c0_i32_0 = arith.constant 0 : i32
    %c0_i32_1 = arith.constant 0 : i32
    return %c0_i32, %c0_i32_0 : i32, i32
  }
  func.func @transform_7(%arg0: i32) -> (i32, i32, i32) {
    %c0_i32 = arith.constant 0 : i32
    %c0_i32_0 = arith.constant 0 : i32
    %c0_i32_1 = arith.constant 0 : i32
    return %arg0, %c0_i32, %c0_i32_0 : i32, i32, i32
  }
  func.func @transform_8(%arg0: i32) -> (i32, i32, i32) {
    %c0_i32 = arith.constant 0 : i32
    %c0_i32_0 = arith.constant 0 : i32
    %c0_i32_1 = arith.constant 0 : i32
    return %arg0, %c0_i32, %c0_i32_0 : i32, i32, i32
  }
  func.func @transform_9(%arg0: i32) -> (i32, i32, i32) {
    %c0_i32 = arith.constant 0 : i32
    %c0_i32_0 = arith.constant 0 : i32
    %c0_i32_1 = arith.constant 0 : i32
    return %arg0, %c0_i32, %c0_i32_0 : i32, i32, i32
  }
}

</mosaic_0001>

<bundles_post_ra>
// kernel: encoder_conv_forward.1
= control target key start
LH: loop header
LB: loop body
LE: loop exit
PB: predicated region body
PF: predicated region fallthrough
CT: control target
= control target key end

     0   :  { %15 = vsyncpa [#allocation5], 0  ;;  %s11197_s0 = inlined_call_operand.vmem [shape: f32[2,576,200], index: 0, kind: input, shape index: {}]   ;;  %s11198_s1 = inlined_call_operand.vmem [shape: f32[200,16], index: 1, kind: input, shape index: {}]   ;;  %s11199_s2 = inlined_call_operand.vmem [shape: f32[1,16], index: 2, kind: input, shape index: {}]   ;;  %s11200_s3 = inlined_call_operand.vmem [shape: f32[25,16,32], index: 3, kind: input, shape index: {}]   ;;  %s11201_s4 = inlined_call_operand.vmem [shape: f32[1,32], index: 4, kind: input, shape index: {}]   ;;  %s11202_s5 = inlined_call_operand.vmem [shape: f32[25,32,128], index: 5, kind: input, shape index: {}]   ;;  %s11203_s6 = inlined_call_operand.vmem [shape: f32[1,128], index: 6, kind: input, shape index: {}]   ;;  %s11204_s7 = inlined_call_operand.vmem [shape: f32[2,4,64], index: 7, kind: input, shape index: {}]   ;;  %s11205_s8 = inlined_call_operand.vmem [shape: f32[2,4,128], index: 8, kind: output, shape index: {0}]   ;;  %s11206_s9 = inlined_call_operand.hbm [shape: f32[2,4,64], index: 9, kind: output, shape index: {1}]  }
   0x1   :  { %17 = vsyncpa [#allocation5 + $0x1], 0  ;;  %s9475_s30 = smov 0   ;;  %s9477_s10 = smov 0  }
   0x2   :  { %s9479_s11 = smov 0   ;;  %s9481_s12 = smov 0  }
   0x3 LB: > { %s9496_s13 = sadd.s32 4294967295, %s9418_s12   ;;  %s7324_s14 = sadd.s32 4294967294, %s9418_s12   ;;  %s9418_s12 = sphi %s9481_s12, %s11248_s12   ;;  %s9414_s11 = sphi %s9479_s11, %s11247_s11   ;;  %s9410_s10 = sphi %s9477_s10, %s11246_s10   ;;  %s9406_s30 = sphi %s9475_s30, %s11245_s30  }
   0x4   : > { %s9500_s15 = sadd.s32 1, %s9418_s12   ;;  %s234_s16 = sadd.s32 1, %s9414_s11 }
   0x5   : > { %s231_s17 = ssub.s32 %s9418_s12, %s9500_s15  ;;  %p244_p0 = scmp.ne.s32.totalorder %s9414_s11, %s9410_s10 }
   0x6   : > { %p232_p1 = scmp.eq.s32.totalorder %s231_s17, 0  ;;  %p245_p2 = scmp.eq.s32.totalorder %s9496_s13, 1 }
   0x7   : > { %p250_p3 = scmp.ne.s32.totalorder %s9410_s10, %s9406_s30  ;;  %p251_p4 = scmp.eq.s32.totalorder %s7324_s14, 1 }
   0x8   : > { %s9511_s18 = scalar_select %p232_p1, %s9414_s11, %s234_s16  }
   0x9   : > { %p9513_p5 = por %p245_p2, %p244_p0  ;;  %p9517_p6 = por %p251_p4, %p250_p3 }
   0xa   : > { %p7327_p7 = scmp.ge.s32.totalorder %s9418_s12, 1  ;;  %p302_p8 = scmp.lt.s32.totalorder %s9418_s12, 3 }
   0xc   : > { %p303_p9 = pnand %p7327_p7, %p302_p8 }
   0xe   : > { %306 = sbr.rel (%p303_p9) target bundleno = 1541 (0x605), region = 52 }
  0x15   : > { %v503_v0 = vld [vmem:[%s11198_s1] sm:$0xff]  ;;  %v504_v1 = vld [vmem:[%s11198_s1 + $0x8] sm:$0xff]  ;;  %v505_v2 = vld [vmem:[%s11198_s1 + $0x10] sm:$0xff]  ;;  %p346_p10 = scmp.lt.s32.totalorder %s9496_s13, 1  ;;  %v11209_v3 = vmov 0.0|0.0   ;;  %vm535_vm0 = vcmask 588800  }
  0x16   : > { %8830 = vmatprep.subr.bf16.mxu0 %v11209_v3  ;;  %v8831_v4 = vpack.c.bf16 %v504_v1, %v503_v0  ;;  %v506_v5 = vld [vmem:[%s11198_s1 + $0x18] sm:$0xff]  ;;  %v507_v7 = vld [vmem:[%s11198_s1 + $0x20] sm:$0xff]  ;;  %v508_v8 = vld [vmem:[%s11198_s1 + $0x28] sm:$0xff]  ;;  %v11207_v38 = vmov 0.0   ;;  %vm1249_vm1 = vcmask 130048   ;;  %vm9422_vm2 = vmmov 0  }
  0x17   : > { %s9538_s29 = scalar_select %p346_p10, %s9496_s13, 1  ;;  %v8834_v6 = vpack.c.bf16 %v506_v5, %v505_v2  ;;  %v8837_v9 = vpack.c.bf16 %v508_v8, %v507_v7  ;;  %v509_v10 = vld [vmem:[%s11198_s1 + $0x30] sm:$0xff]  ;;  %v510_v11 = vld [vmem:[%s11198_s1 + $0x38] sm:$0xff]  ;;  %v511_v14 = vld [vmem:[%s11198_s1 + $0x40] sm:$0xff]  ;;  %vm5032_vm3 = vcmask 261120   ;;  %vm5047_vm4 = vcmask 1041408  }
  0x18   : > { %8832 = vmatpush1.bf16.msra.mxu0 %v8831_v4  ;;  %v8840_v13 = vpack.c.bf16 %v510_v11, %v509_v10  ;;  %v512_v15 = vld [vmem:[%s11198_s1 + $0x48] sm:$0xff]  ;;  %v513_v17 = vld [vmem:[%s11198_s1 + $0x50] sm:$0xff]  ;;  %v514_v18 = vld [vmem:[%s11198_s1 + $0x58] sm:$0xff]  ;;  %s9423_s26 = smov 64   ;;  %s7777_s24 = sshll.u32 %s9496_s13, 6  ;;  %vm7206_vm5 = vcmask 519168  }
  0x19   : > { %8833 = vmatprep.subr.bf16.mxu0 %v11209_v3  ;;  %s9308_s22 = smul.u32 1152, %s9538_s29  ;;  %v8843_v16 = vpack.c.bf16 %v512_v15, %v511_v14  ;;  %v8846_v19 = vpack.c.bf16 %v514_v18, %v513_v17  ;;  %v515_v20 = vld [vmem:[%s11198_s1 + $0x60] sm:$0xff]  ;;  %v516_v21 = vld [vmem:[%s11198_s1 + $0x68] sm:$0xff]  ;;  %v517_v23 = vld [vmem:[%s11198_s1 + $0x70] sm:$0xff]  ;;  %s7330_s14 = sshll.u32 %s9538_s29, 2 }
  0x1a   : > { %v8849_v22 = vpack.c.bf16 %v516_v21, %v515_v20  ;;  %v518_v24 = vld [vmem:[%s11198_s1 + $0x78] sm:$0xff]  ;;  %v519_v26 = vld [vmem:[%s11198_s1 + $0x80] sm:$0xff]  ;;  %v520_v27 = vld [vmem:[%s11198_s1 + $0x88] sm:$0xff]  ;;  %s354_s21 = scalar_lea.vmem %s11204_s7, %s7330_s14  ;;  %s11155_s28 = scalar_lea.hbm %s11206_s9, %s7777_s24 }
  0x1b   : > { %s9551_s25 = scalar_lea.vmem %s11197_s0, %s9308_s22  ;;  %v8852_v25 = vpack.c.bf16 %v518_v24, %v517_v23  ;;  %v8855_v28 = vpack.c.bf16 %v520_v27, %v519_v26  ;;  %v521_v29 = vld [vmem:[%s11198_s1 + $0x90] sm:$0xff]  ;;  %v522_v30 = vld [vmem:[%s11198_s1 + $0x98] sm:$0xff]  ;;  %v523_v32 = vld [vmem:[%s11198_s1 + $0xa0] sm:$0xff]  ;;  %s343_s22 = sand.u32 1, %s9410_s10  }
  0x1c   : > { %8835 = vmatpush1.bf16.msra.mxu0 %v8834_v6  ;;  %v360_v12 = vld [vmem:[%s9551_s25 + $0x8] sm:$0xff]  ;;  %v8858_v31 = vpack.c.bf16 %v522_v30, %v521_v29  ;;  %v525_v35 = vld [vmem:[%s11198_s1 + $0xb0] sm:$0xff]  ;;  %v526_v36 = vld [vmem:[%s11198_s1 + $0xb8] sm:$0xff]  ;;  %s7328_s23 = sshll.u32 %s343_s22, 2  ;;  %s9424_s13 = smov [#allocation4]  }
  0x1d   : > { %8836 = vmatprep.subr.bf16.mxu0 %v11209_v3  ;;  %7333 = vmatprep.mubr.msk.f32.mxu0 %vm535_vm0, %v360_v12  ;;  %v524_v33 = vld [vmem:[%s11198_s1 + $0xa8] sm:$0xff]  ;;  %v8864_v37 = vpack.c.bf16 %v526_v36, %v525_v35  ;;  %v527_v39 = vld [vmem:[%s11198_s1 + $0xc0] sm:$0xff]  ;;  %v362_v41 = vld [vmem:[%s9551_s25 + $0x18] sm:$0xff]  ;;  %s9360_s17 = sshll.u32 %s9424_s13, 4  ;;  %s9361_s17 = int_to_ptr.vmem [resolvable:$false] %s9360_s17 }
  0x1e   : > { %v8861_v34 = vpack.c.bf16 %v524_v33, %v523_v32  ;;  %v359_v40 = vld [vmem:[%s9551_s25] sm:$0xff]  ;;  %v361_v42 = vld [vmem:[%s9551_s25 + $0x10] sm:$0xff]  ;;  %v364_v43 = vld [vmem:[%s9551_s25 + $0x28] sm:$0xff] }
  0x1f   : > { %v363_v44 = vld [vmem:[%s9551_s25 + $0x20] sm:$0xff]  ;;  %v366_v45 = vld [vmem:[%s9551_s25 + $0x38] sm:$0xff]  ;;  %v365_v46 = vld [vmem:[%s9551_s25 + $0x30] sm:$0xff] }
  0x20   : > { %8838 = vmatpush1.bf16.msra.mxu0 %v8837_v9  ;;  %v368_v47 = vld [vmem:[%s9551_s25 + $0x48] sm:$0xff]  ;;  %v367_v48 = vld [vmem:[%s9551_s25 + $0x40] sm:$0xff]  ;;  %v370_v49 = vld [vmem:[%s9551_s25 + $0x58] sm:$0xff] }
  0x21   : > { %8839 = vmatprep.subr.bf16.mxu0 %v11209_v3  ;;  %v369_v50 = vld [vmem:[%s9551_s25 + $0x50] sm:$0xff]  ;;  %v372_v51 = vld [vmem:[%s9551_s25 + $0x68] sm:$0xff]  ;;  %v371_v52 = vld [vmem:[%s9551_s25 + $0x60] sm:$0xff] }
  0x22   : > { %v374_v53 = vld [vmem:[%s9551_s25 + $0x78] sm:$0xff]  ;;  %v373_v54 = vld [vmem:[%s9551_s25 + $0x70] sm:$0xff]  ;;  %v376_v55 = vld [vmem:[%s9551_s25 + $0x88] sm:$0xff] }
  0x23   : > { %v375_v56 = vld [vmem:[%s9551_s25 + $0x80] sm:$0xff]  ;;  %v378_v57 = vld [vmem:[%s9551_s25 + $0x98] sm:$0xff]  ;;  %v377_v58 = vld [vmem:[%s9551_s25 + $0x90] sm:$0xff] }
  0x24   : > { %8841 = vmatpush1.bf16.msra.mxu0 %v8840_v13  ;;  %v380_v59 = vld [vmem:[%s9551_s25 + $0xa8] sm:$0xff]  ;;  %v379_v60 = vld [vmem:[%s9551_s25 + $0xa0] sm:$0xff]  ;;  %v382_v61 = vld [vmem:[%s9551_s25 + $0xb8] sm:$0xff] }
  0x25   : > { %8842 = vmatprep.subr.bf16.mxu0 %v11209_v3  ;;  %v381_v62 = vld [vmem:[%s9551_s25 + $0xb0] sm:$0xff]  ;;  %v384_v63 = vld [vmem:[%s9551_s25 + $0xc8] sm:$0xff]  ;;  %v383_v0 = vld [vmem:[%s9551_s25 + $0xc0] sm:$0xff] }
  0x26   : > { %v386_v1 = vld [vmem:[%s9551_s25 + $0xd8] sm:$0xff]  ;;  %v385_v2 = vld [vmem:[%s9551_s25 + $0xd0] sm:$0xff]  ;;  %v388_v4 = vld [vmem:[%s9551_s25 + $0xe8] sm:$0xff] }
  0x27   : > { %v387_v5 = vld [vmem:[%s9551_s25 + $0xe0] sm:$0xff]  ;;  %v390_v6 = vld [vmem:[%s9551_s25 + $0xf8] sm:$0xff]  ;;  %v389_v7 = vld [vmem:[%s9551_s25 + $0xf0] sm:$0xff] }
  0x28   : > { %8844 = vmatpush1.bf16.msra.mxu0 %v8843_v16  ;;  %v392_v8 = vld [vmem:[%s9551_s25 + $0x108] sm:$0xff]  ;;  %v391_v9 = vld [vmem:[%s9551_s25 + $0x100] sm:$0xff]  ;;  %v394_v10 = vld [vmem:[%s9551_s25 + $0x118] sm:$0xff] }
  0x29   : > { %8845 = vmatprep.subr.bf16.mxu0 %v11209_v3  ;;  %v393_v11 = vld [vmem:[%s9551_s25 + $0x110] sm:$0xff]  ;;  %v396_v12 = vld [vmem:[%s9551_s25 + $0x128] sm:$0xff]  ;;  %v395_v13 = vld [vmem:[%s9551_s25 + $0x120] sm:$0xff] }
  0x2a   : > { %v398_v14 = vld [vmem:[%s9551_s25 + $0x138] sm:$0xff]  ;;  %v397_v15 = vld [vmem:[%s9551_s25 + $0x130] sm:$0xff]  ;;  %v400_v16 = vld [vmem:[%s9551_s25 + $0x148] sm:$0xff] }
  0x2b   : > { %v399_v17 = vld [vmem:[%s9551_s25 + $0x140] sm:$0xff]  ;;  %v402_v18 = vld [vmem:[%s9551_s25 + $0x158] sm:$0xff]  ;;  %v404_v20 = vld [vmem:[%s9551_s25 + $0x168] sm:$0xff] }
  0x2c   : > { %8847 = vmatpush1.bf16.msra.mxu0 %v8846_v19  ;;  %v401_v19 = vld [vmem:[%s9551_s25 + $0x150] sm:$0xff]  ;;  %v403_v21 = vld [vmem:[%s9551_s25 + $0x160] sm:$0xff]  ;;  %v408_v24 = vld [vmem:[%s9551_s25 + $0x188] sm:$0xff] }
  0x2d   : > { %8848 = vmatprep.subr.bf16.mxu0 %v11209_v3  ;;  %v405_v23 = vld [vmem:[%s9551_s25 + $0x170] sm:$0xff]  ;;  %v410_v26 = vld [vmem:[%s9551_s25 + $0x198] sm:$0xff]  ;;  %v411_v29 = vld [vmem:[%s9551_s25 + $0x1a0] sm:$0xff] }
  0x2e   : > { %v409_v27 = vld [vmem:[%s9551_s25 + $0x190] sm:$0xff]  ;;  %v414_v30 = vld [vmem:[%s9551_s25 + $0x1b8] sm:$0xff]  ;;  %v416_v32 = vld [vmem:[%s9551_s25 + $0x1c8] sm:$0xff] }
  0x2f   : > { %v415_v33 = vld [vmem:[%s9551_s25 + $0x1c0] sm:$0xff]  ;;  %v7406_v35 = vld [vmem:[%s11200_s3 + $0x18] sm:$0xff] }
  0x30   : > { %8850 = vmatpush1.bf16.msra.mxu0 %v8849_v22  ;;  %v406_v22 = vld [vmem:[%s9551_s25 + $0x178] sm:$0xff] }
  0x31   : > { %8851 = vmatprep.subr.bf16.mxu0 %v11209_v3  ;;  %v418_v36 = vld [vmem:[%s9551_s25 + $0x1d8] sm:$0xff] }
  0x34   : > { %8853 = vmatpush1.bf16.msra.mxu0 %v8852_v25  ;;  %v407_v25 = vld [vmem:[%s9551_s25 + $0x180] sm:$0xff] }
  0x35   : > { %8854 = vmatprep.subr.bf16.mxu0 %v11209_v3 }
  0x38   : > { %8856 = vmatpush1.bf16.msra.mxu0 %v8855_v28  ;;  %v412_v28 = vld [vmem:[%s9551_s25 + $0x1a8] sm:$0xff] }
  0x39   : > { %8857 = vmatprep.subr.bf16.mxu0 %v11209_v3 }
  0x3c   : > { %8859 = vmatpush1.bf16.msra.mxu0 %v8858_v31  ;;  %v413_v31 = vld [vmem:[%s9551_s25 + $0x1b0] sm:$0xff] }
  0x3d   : > { %8860 = vmatprep.subr.bf16.mxu0 %v11209_v3 }
  0x40   : > { %8862 = vmatpush1.bf16.msra.mxu0 %v8861_v34  ;;  %v7405_v34 = vld [vmem:[%s11200_s3 + $0x10] sm:$0xff] }
  0x41   : > { %8863 = vmatprep.subr.bf16.mxu0 %v11209_v3 }
  0x44   : > { %8865 = vmatpush1.bf16.msra.mxu0 %v8864_v37  ;;  %v8866_v37 = vpack.c.bf16 %v7406_v35, %v7405_v34  ;;  %v470_v35 = vld [vmem:[%s9551_s25 + $0x378] sm:$0xff] }
  0x45   : > { %800 = vmatprep.subr.mxu0 %v11207_v38 }
  0x46   : > { %8867 = vmatprep.subr.bf16.mxu1 %v8866_v37 }
  0x47   : > { %8869 = vmatpush3.bf16.msra.mxu1 %v8866_v37 }
  0x48   : > { %801 = vmatpush1.msra.mxu0 %v527_v39  ;;  %v417_v39 = vld [vmem:[%s9551_s25 + $0x1d0] sm:$0xff] }
  0x49   : > { %817 = vmatmul.mubr.f32.vlgmr.msra.gmra.mrb[0].mxu0 %v359_v40  ;;  %8966 = vmatprep.subr.bf16.mxu0 %v11209_v3  ;;  %v420_v40 = vld [vmem:[%s9551_s25 + $0x1e8] sm:$0xff] }
  0x4a   : > { %7334 = vmatprep.mubr.msk.f32.mxu0 %vm535_vm0, %v362_v41  ;;  %v419_v41 = vld [vmem:[%s9551_s25 + $0x1e0] sm:$0xff] }
  0x4d   : > { %822 = vmatmul.mubr.f32.gmra.mrb[2].mxu0 %v361_v42  ;;  %v422_v42 = vld [vmem:[%s9551_s25 + $0x1f8] sm:$0xff] }
  0x4e   : > { %7335 = vmatprep.mubr.msk.f32.mxu0 %vm535_vm0, %v364_v43  ;;  %v421_v43 = vld [vmem:[%s9551_s25 + $0x1f0] sm:$0xff] }
  0x51   : > { %827 = vmatmul.mubr.f32.gmra.mrb[4].mxu0 %v363_v44  ;;  %v424_v44 = vld [vmem:[%s9551_s25 + $0x208] sm:$0xff] }
  0x52   : > { %7336 = vmatprep.mubr.msk.f32.mxu0 %vm535_vm0, %v366_v45  ;;  %v423_v45 = vld [vmem:[%s9551_s25 + $0x200] sm:$0xff] }
  0x55   : > { %832 = vmatmul.mubr.f32.gmra.mrb[6].mxu0 %v365_v46  ;;  %v426_v46 = vld [vmem:[%s9551_s25 + $0x218] sm:$0xff] }
  0x56   : > { %7337 = vmatprep.mubr.msk.f32.mxu0 %vm535_vm0, %v368_v47  ;;  %v425_v47 = vld [vmem:[%s9551_s25 + $0x210] sm:$0xff] }
  0x59   : > { %837 = vmatmul.mubr.f32.gmra.mrb[8].mxu0 %v367_v48  ;;  %v428_v48 = vld [vmem:[%s9551_s25 + $0x228] sm:$0xff] }
  0x5a   : > { %7338 = vmatprep.mubr.msk.f32.mxu0 %vm535_vm0, %v370_v49  ;;  %v427_v49 = vld [vmem:[%s9551_s25 + $0x220] sm:$0xff] }
  0x5d   : > { %842 = vmatmul.mubr.f32.gmra.mrb[10].mxu0 %v369_v50  ;;  %v430_v50 = vld [vmem:[%s9551_s25 + $0x238] sm:$0xff] }
  0x5e   : > { %7339 = vmatprep.mubr.msk.f32.mxu0 %vm535_vm0, %v372_v51  ;;  %v429_v51 = vld [vmem:[%s9551_s25 + $0x230] sm:$0xff] }
  0x61   : > { %847 = vmatmul.mubr.f32.gmra.mrb[12].mxu0 %v371_v52  ;;  %v432_v52 = vld [vmem:[%s9551_s25 + $0x248] sm:$0xff] }
  0x62   : > { %7340 = vmatprep.mubr.msk.f32.mxu0 %vm535_vm0, %v374_v53  ;;  %v431_v53 = vld [vmem:[%s9551_s25 + $0x240] sm:$0xff] }
  0x65   : > { %852 = vmatmul.mubr.f32.gmra.mrb[14].mxu0 %v373_v54  ;;  %v434_v54 = vld [vmem:[%s9551_s25 + $0x258] sm:$0xff] }
  0x66   : > { %7341 = vmatprep.mubr.msk.f32.mxu0 %vm535_vm0, %v376_v55  ;;  %v433_v55 = vld [vmem:[%s9551_s25 + $0x250] sm:$0xff] }
  0x69   : > { %857 = vmatmul.mubr.f32.gmra.mrb[16].mxu0 %v375_v56  ;;  %v436_v56 = vld [vmem:[%s9551_s25 + $0x268] sm:$0xff] }
  0x6a   : > { %7342 = vmatprep.mubr.msk.f32.mxu0 %vm535_vm0, %v378_v57  ;;  %v435_v57 = vld [vmem:[%s9551_s25 + $0x260] sm:$0xff] }
  0x6d   : > { %862 = vmatmul.mubr.f32.gmra.mrb[18].mxu0 %v377_v58  ;;  %v438_v58 = vld [vmem:[%s9551_s25 + $0x278] sm:$0xff] }
  0x6e   : > { %7343 = vmatprep.mubr.msk.f32.mxu0 %vm535_vm0, %v380_v59  ;;  %v437_v59 = vld [vmem:[%s9551_s25 + $0x270] sm:$0xff] }
  0x71   : > { %867 = vmatmul.mubr.f32.gmra.mrb[20].mxu0 %v379_v60  ;;  %v440_v60 = vld [vmem:[%s9551_s25 + $0x288] sm:$0xff] }
  0x72   : > { %7344 = vmatprep.mubr.msk.f32.mxu0 %vm535_vm0, %v382_v61  ;;  %v439_v61 = vld [vmem:[%s9551_s25 + $0x280] sm:$0xff] }
  0x75   : > { %872 = vmatmul.mubr.f32.gmra.mrb[22].mxu0 %v381_v62  ;;  %v442_v62 = vld [vmem:[%s9551_s25 + $0x298] sm:$0xff] }
  0x76   : > { %7345 = vmatprep.mubr.msk.f32.mxu0 %vm535_vm0, %v384_v63  ;;  %v441_v63 = vld [vmem:[%s9551_s25 + $0x290] sm:$0xff] }
  0x79   : > { %877 = vmatmul.mubr.f32.gmra.mrb[24].mxu0 %v383_v0  ;;  %v444_v0 = vld [vmem:[%s9551_s25 + $0x2a8] sm:$0xff] }
  0x7a   : > { %7346 = vmatprep.mubr.msk.f32.mxu0 %vm535_vm0, %v386_v1  ;;  %v443_v1 = vld [vmem:[%s9551_s25 + $0x2a0] sm:$0xff] }
  0x7d   : > { %882 = vmatmul.mubr.f32.gmra.mrb[26].mxu0 %v385_v2  ;;  %v446_v2 = vld [vmem:[%s9551_s25 + $0x2b8] sm:$0xff] }
  0x7e   : > { %7347 = vmatprep.mubr.msk.f32.mxu0 %vm535_vm0, %v388_v4  ;;  %v445_v4 = vld [vmem:[%s9551_s25 + $0x2b0] sm:$0xff] }
  0x81   : > { %887 = vmatmul.mubr.f32.gmra.mrb[28].mxu0 %v387_v5  ;;  %v448_v5 = vld [vmem:[%s9551_s25 + $0x2c8] sm:$0xff] }
  0x82   : > { %7348 = vmatprep.mubr.msk.f32.mxu0 %vm535_vm0, %v390_v6  ;;  %v447_v6 = vld [vmem:[%s9551_s25 + $0x2c0] sm:$0xff] }
  0x85   : > { %892 = vmatmul.mubr.f32.gmra.mrb[30].mxu0 %v389_v7  ;;  %v450_v7 = vld [vmem:[%s9551_s25 + $0x2d8] sm:$0xff] }
  0x86   : > { %7349 = vmatprep.mubr.msk.f32.mxu0 %vm535_vm0, %v392_v8  ;;  %v449_v8 = vld [vmem:[%s9551_s25 + $0x2d0] sm:$0xff] }
  0x89   : > { %897 = vmatmul.mubr.f32.gmra.mrb[32].mxu0 %v391_v9  ;;  %v452_v9 = vld [vmem:[%s9551_s25 + $0x2e8] sm:$0xff] }
  0x8a   : > { %7350 = vmatprep.mubr.msk.f32.mxu0 %vm535_vm0, %v394_v10  ;;  %v451_v10 = vld [vmem:[%s9551_s25 + $0x2e0] sm:$0xff] }
  0x8d   : > { %902 = vmatmul.mubr.f32.gmra.mrb[34].mxu0 %v393_v11  ;;  %v454_v11 = vld [vmem:[%s9551_s25 + $0x2f8] sm:$0xff] }
  0x8e   : > { %7351 = vmatprep.mubr.msk.f32.mxu0 %vm535_vm0, %v396_v12  ;;  %v453_v12 = vld [vmem:[%s9551_s25 + $0x2f0] sm:$0xff] }
  0x91   : > { %907 = vmatmul.mubr.f32.gmra.mrb[36].mxu0 %v395_v13  ;;  %v1330_v13 = vld [vmem:[%s11200_s3] sm:$0xff] }
  0x92   : > { %7352 = vmatprep.mubr.msk.f32.mxu0 %vm535_vm0, %v398_v14  ;;  %v1331_v14 = vld [vmem:[%s11200_s3 + $0x8] sm:$0xff] }
  0x95   : > { %912 = vmatmul.mubr.f32.gmra.mrb[38].mxu0 %v397_v15  ;;  %v456_v15 = vld [vmem:[%s9551_s25 + $0x308] sm:$0xff] }
  0x96   : > { %7353 = vmatprep.mubr.msk.f32.mxu0 %vm535_vm0, %v400_v16  ;;  %v9779_v16 = vpack.c.bf16 %v1331_v14, %v1330_v13 }
  0x98   : > { %8871 = vmatprep.subr.bf16.mxu1 %v9779_v16 }
  0x99   : > { %917 = vmatmul.mubr.f32.gmra.mrb[40].mxu0 %v399_v17  ;;  %v455_v17 = vld [vmem:[%s9551_s25 + $0x300] sm:$0xff] }
  0x9a   : > { %7354 = vmatprep.mubr.msk.f32.mxu0 %vm535_vm0, %v402_v18  ;;  %v458_v18 = vld [vmem:[%s9551_s25 + $0x318] sm:$0xff] }
  0x9d   : > { %922 = vmatmul.mubr.f32.gmra.mrb[42].mxu0 %v401_v19  ;;  %v457_v19 = vld [vmem:[%s9551_s25 + $0x310] sm:$0xff] }
  0x9e   : > { %7355 = vmatprep.mubr.msk.f32.mxu0 %vm535_vm0, %v404_v20  ;;  %v460_v20 = vld [vmem:[%s9551_s25 + $0x328] sm:$0xff] }
  0xa1   : > { %927 = vmatmul.mubr.f32.gmra.mrb[44].mxu0 %v403_v21  ;;  %v459_v21 = vld [vmem:[%s9551_s25 + $0x320] sm:$0xff] }
  0xa2   : > { %7356 = vmatprep.mubr.msk.f32.mxu0 %vm535_vm0, %v406_v22  ;;  %v462_v22 = vld [vmem:[%s9551_s25 + $0x338] sm:$0xff] }
  0xa5   : > { %932 = vmatmul.mubr.f32.gmra.mrb[46].mxu0 %v405_v23  ;;  %v461_v23 = vld [vmem:[%s9551_s25 + $0x330] sm:$0xff] }
  0xa6   : > { %7357 = vmatprep.mubr.msk.f32.mxu0 %vm535_vm0, %v408_v24  ;;  %v464_v24 = vld [vmem:[%s9551_s25 + $0x348] sm:$0xff] }
  0xa9   : > { %937 = vmatmul.mubr.f32.gmra.mrb[48].mxu0 %v407_v25  ;;  %v463_v25 = vld [vmem:[%s9551_s25 + $0x340] sm:$0xff] }
  0xaa   : > { %7358 = vmatprep.mubr.msk.f32.mxu0 %vm535_vm0, %v410_v26  ;;  %v466_v26 = vld [vmem:[%s9551_s25 + $0x358] sm:$0xff] }
  0xad   : > { %942 = vmatmul.mubr.f32.gmra.mrb[50].mxu0 %v409_v27  ;;  %v9800_v27 = vld [vmem:[%s11199_s2] ss:$0 sm:$0xff] }
  0xae   : > { %7359 = vmatprep.mubr.msk.f32.mxu0 %vm535_vm0, %v412_v28  ;;  %v465_v28 = vld [vmem:[%s9551_s25 + $0x350] sm:$0xff] }
  0xb1   : > { %947 = vmatmul.mubr.f32.gmra.mrb[52].mxu0 %v411_v29  ;;  %v468_v29 = vld [vmem:[%s9551_s25 + $0x368] sm:$0xff] }
  0xb2   : > { %7360 = vmatprep.mubr.msk.f32.mxu0 %vm535_vm0, %v414_v30 }
  0xb5   : > { %952 = vmatmul.mubr.f32.gmra.mrb[54].mxu0 %v413_v31 }
  0xb6   : > { %7361 = vmatprep.mubr.msk.f32.mxu0 %vm535_vm0, %v416_v32 }
  0xb9   : > { %957 = vmatmul.mubr.f32.gmra.mrb[56].mxu0 %v415_v33  ;;  %v467_v33 = vld [vmem:[%s9551_s25 + $0x360] sm:$0xff] }
  0xba   : > { %7362 = vmatprep.mubr.msk.f32.mxu0 %vm535_vm0, %v418_v36 }
  0xbd   : > { %962 = vmatmul.mubr.f32.gmra.mrb[58].mxu0 %v417_v39 }
  0xbe   : > { %7363 = vmatprep.mubr.msk.f32.mxu0 %vm535_vm0, %v420_v40  ;;  %v469_v40 = vld [vmem:[%s9551_s25 + $0x370] sm:$0xff] }
  0xc1   : > { %967 = vmatmul.mubr.f32.gmra.mrb[60].mxu0 %v419_v41 }
  0xc2   : > { %7364 = vmatprep.mubr.msk.f32.mxu0 %vm535_vm0, %v422_v42  ;;  %v472_v42 = vld [vmem:[%s9551_s25 + $0x388] sm:$0xff] }
  0xc5   : > { %972 = vmatmul.mubr.f32.gmra.mrb[62].mxu0 %v421_v43 }
  0xc6   : > { %7365 = vmatprep.mubr.msk.f32.mxu0 %vm535_vm0, %v424_v44 }
  0xc9   : > { %977 = vmatmul.mubr.f32.gmra.mrb[64].mxu0 %v423_v45 }
  0xca   : > { %7366 = vmatprep.mubr.msk.f32.mxu0 %vm535_vm0, %v426_v46  ;;  %v471_v46 = vld [vmem:[%s9551_s25 + $0x380] sm:$0xff] }
  0xcd   : > { %982 = vmatmul.mubr.f32.gmra.mrb[66].mxu0 %v425_v47 }
  0xce   : > { %7367 = vmatprep.mubr.msk.f32.mxu0 %vm535_vm0, %v428_v48  ;;  %v474_v48 = vld [vmem:[%s9551_s25 + $0x398] sm:$0xff] }
  0xd1   : > { %987 = vmatmul.mubr.f32.gmra.mrb[68].mxu0 %v427_v49 }
  0xd2   : > { %7368 = vmatprep.mubr.msk.f32.mxu0 %vm535_vm0, %v430_v50 }
  0xd5   : > { %992 = vmatmul.mubr.f32.gmra.mrb[70].mxu0 %v429_v51 }
  0xd6   : > { %7369 = vmatprep.mubr.msk.f32.mxu0 %vm535_vm0, %v432_v52  ;;  %v473_v52 = vld [vmem:[%s9551_s25 + $0x390] sm:$0xff] }
  0xd9   : > { %997 = vmatmul.mubr.f32.gmra.mrb[72].mxu0 %v431_v53 }
  0xda   : > { %7370 = vmatprep.mubr.msk.f32.mxu0 %vm535_vm0, %v434_v54  ;;  %v476_v54 = vld [vmem:[%s9551_s25 + $0x3a8] sm:$0xff] }
  0xdd   : > { %1002 = vmatmul.mubr.f32.gmra.mrb[74].mxu0 %v433_v55 }
  0xde   : > { %7371 = vmatprep.mubr.msk.f32.mxu0 %vm535_vm0, %v436_v56 }
  0xe1   : > { %1007 = vmatmul.mubr.f32.gmra.mrb[76].mxu0 %v435_v57 }
  0xe2   : > { %7372 = vmatprep.mubr.msk.f32.mxu0 %vm535_vm0, %v438_v58  ;;  %v475_v58 = vld [vmem:[%s9551_s25 + $0x3a0] sm:$0xff] }
  0xe5   : > { %1012 = vmatmul.mubr.f32.gmra.mrb[78].mxu0 %v437_v59 }
  0xe6   : > { %7373 = vmatprep.mubr.msk.f32.mxu0 %vm535_vm0, %v440_v60  ;;  %v478_v60 = vld [vmem:[%s9551_s25 + $0x3b8] sm:$0xff] }
  0xe9   : > { %1017 = vmatmul.mubr.f32.gmra.mrb[80].mxu0 %v439_v61 }
  0xea   : > { %7374 = vmatprep.mubr.msk.f32.mxu0 %vm535_vm0, %v442_v62 }
  0xed   : > { %1022 = vmatmul.mubr.f32.gmra.mrb[82].mxu0 %v441_v63 }
  0xee   : > { %7375 = vmatprep.mubr.msk.f32.mxu0 %vm535_vm0, %v444_v0 }
  0xf1   : > { %1027 = vmatmul.mubr.f32.gmra.mrb[84].mxu0 %v443_v1  ;;  %v477_v1 = vld [vmem:[%s9551_s25 + $0x3b0] sm:$0xff] }
  0xf2   : > { %7376 = vmatprep.mubr.msk.f32.mxu0 %vm535_vm0, %v446_v2 }
  0xf5   : > { %1032 = vmatmul.mubr.f32.gmra.mrb[86].mxu0 %v445_v4 }
  0xf6   : > { %7377 = vmatprep.mubr.msk.f32.mxu0 %vm535_vm0, %v448_v5 }
  0xf9   : > { %1037 = vmatmul.mubr.f32.gmra.mrb[88].mxu0 %v447_v6 }
  0xfa   : > { %7378 = vmatprep.mubr.msk.f32.mxu0 %vm535_vm0, %v450_v7 }
  0xfd   : > { %1042 = vmatmul.mubr.f32.gmra.mrb[90].mxu0 %v449_v8 }
  0xfe   : > { %7379 = vmatprep.mubr.msk.f32.mxu0 %vm535_vm0, %v452_v9  ;;  %v7423_v9 = vld [vmem:[%s11200_s3 + $0x20] sm:$0xff] }
 0x101   : > { %1047 = vmatmul.mubr.f32.gmra.mrb[92].mxu0 %v451_v10  ;;  %v7424_v10 = vld [vmem:[%s11200_s3 + $0x28] sm:$0xff] }
 0x102   : > { %7380 = vmatprep.mubr.msk.f32.mxu0 %vm535_vm0, %v454_v11  ;;  %v9844_v14 = vpack.c.bf16 %v7424_v10, %v7423_v9 }
 0x105   : > { %1052 = vmatmul.mubr.f32.gmra.mrb[94].mxu0 %v453_v12 }
 0x106   : > { %7381 = vmatprep.mubr.msk.f32.mxu0 %vm535_vm0, %v456_v15 }
 0x109   : > { %1057 = vmatmul.mubr.f32.gmra.mrb[96].mxu0 %v455_v17 }
 0x10a   : > { %7382 = vmatprep.mubr.msk.f32.mxu0 %vm535_vm0, %v458_v18 }
 0x10d   : > { %1062 = vmatmul.mubr.f32.gmra.mrb[98].mxu0 %v457_v19 }
 0x10e   : > { %7383 = vmatprep.mubr.msk.f32.mxu0 %vm535_vm0, %v460_v20 }
 0x111   : > { %1067 = vmatmul.mubr.f32.gmra.mrb[100].mxu0 %v459_v21 }
 0x112   : > { %7384 = vmatprep.mubr.msk.f32.mxu0 %vm535_vm0, %v462_v22 }
 0x115   : > { %1072 = vmatmul.mubr.f32.gmra.mrb[102].mxu0 %v461_v23 }
 0x116   : > { %7385 = vmatprep.mubr.msk.f32.mxu0 %vm535_vm0, %v464_v24 }
 0x119   : > { %1077 = vmatmul.mubr.f32.gmra.mrb[104].mxu0 %v463_v25 }
 0x11a   : > { %7386 = vmatprep.mubr.msk.f32.mxu0 %vm535_vm0, %v466_v26 }
 0x11c   : > { %v818_v30 = vpop.f32.mrb[0].mxu0 }
 0x11d   : > { %v819_v31 = vadd.f32 %v9800_v27, %v818_v30  ;;  %v820_v32 = vpop.f32.mrb[1].mxu0  ;;  %1082 = vmatmul.mubr.f32.gmra.mrb[106].mxu0 %v465_v28 }
 0x11e   : > { %7387 = vmatprep.mubr.msk.f32.mxu0 %vm535_vm0, %v468_v29  ;;  %v480_v29 = vld [vmem:[%s9551_s25 + $0x3c8] sm:$0xff]  ;;  %v479_v32 = vld [vmem:[%s9551_s25 + $0x3c0] sm:$0xff] }
 0x11f   : > { %v1177_v34 = vmax.f32 %v819_v31, 0.0 }
 0x120   : > { %v823_v36 = vpop.f32.mrb[2].mxu0 }
 0x121   : > { %1250 = vst.msk [vmem:[#allocation2] sm:$0xff] %vm1249_vm1, %v1177_v34  ;;  %v824_v37 = vadd.f32 %v9800_v27, %v823_v36  ;;  %v825_v39 = vpop.f32.mrb[3].mxu0  ;;  %1087 = vmatmul.mubr.f32.gmra.mrb[108].mxu0 %v467_v33  ;;  %v482_v36 = vld [vmem:[%s9551_s25 + $0x3d8] sm:$0xff] }
 0x122   : > { %7388 = vmatprep.mubr.msk.f32.mxu0 %vm535_vm0, %v470_v35  ;;  %v481_v39 = vld [vmem:[%s9551_s25 + $0x3d0] sm:$0xff] }
 0x123   : > { %v1178_v41 = vmax.f32 %v824_v37, 0.0 }
 0x124   : > { %v828_v43 = vpop.f32.mrb[4].mxu0 }
 0x125   : > { %1251 = vst.msk [vmem:[#allocation2 + $0x8] sm:$0xff] %vm1249_vm1, %v1178_v41  ;;  %v829_v44 = vadd.f32 %v9800_v27, %v828_v43  ;;  %v830_v45 = vpop.f32.mrb[5].mxu0  ;;  %1092 = vmatmul.mubr.f32.gmra.mrb[110].mxu0 %v469_v40 }
 0x126   : > { %7389 = vmatprep.mubr.msk.f32.mxu0 %vm535_vm0, %v472_v42 }
 0x127   : > { %v1179_v47 = vmax.f32 %v829_v44, 0.0 }
 0x128   : > { %v833_v49 = vpop.f32.mrb[6].mxu0 }
 0x129   : > { %1252 = vst.msk [vmem:[#allocation2 + $0x10] sm:$0xff] %vm1249_vm1, %v1179_v47  ;;  %v834_v50 = vadd.f32 %v9800_v27, %v833_v49  ;;  %v835_v51 = vpop.f32.mrb[7].mxu0  ;;  %1097 = vmatmul.mubr.f32.gmra.mrb[112].mxu0 %v471_v46 }
 0x12a   : > { %7390 = vmatprep.mubr.msk.f32.mxu0 %vm535_vm0, %v474_v48 }
 0x12b   : > { %v1180_v53 = vmax.f32 %v834_v50, 0.0 }
 0x12c   : > { %v838_v55 = vpop.f32.mrb[8].mxu0 }
 0x12d   : > { %1253 = vst.msk [vmem:[#allocation2 + $0x18] sm:$0xff] %vm1249_vm1, %v1180_v53  ;;  %v839_v56 = vadd.f32 %v9800_v27, %v838_v55  ;;  %v840_v57 = vpop.f32.mrb[9].mxu0  ;;  %1102 = vmatmul.mubr.f32.gmra.mrb[114].mxu0 %v473_v52  ;;  %v484_v52 = vld [vmem:[%s9551_s25 + $0x3e8] sm:$0xff] }
 0x12e   : > { %7391 = vmatprep.mubr.msk.f32.mxu0 %vm535_vm0, %v476_v54  ;;  %v483_v54 = vld [vmem:[%s9551_s25 + $0x3e0] sm:$0xff] }
 0x12f   : > { %v1181_v59 = vmax.f32 %v839_v56, 0.0 }
 0x130   : > { %v843_v61 = vpop.f32.mrb[10].mxu0  ;;  %v1332_v62 = vld [vmem:[#allocation2 + $0xc] sm:$0xff] }
 0x131   : > { %1254 = vst.msk [vmem:[#allocation2 + $0x20] sm:$0xff] %vm1249_vm1, %v1181_v59  ;;  %v844_v63 = vadd.f32 %v9800_v27, %v843_v61  ;;  %v845_v0 = vpop.f32.mrb[11].mxu0  ;;  %1107 = vmatmul.mubr.f32.gmra.mrb[116].mxu0 %v475_v58  ;;  %8159 = vmatprep.mubr.msk.f32.mxu1 %vm1249_vm1, %v1332_v62 }
 0x132   : > { %7392 = vmatprep.mubr.msk.f32.mxu0 %vm535_vm0, %v478_v60 }
 0x133   : > { %v1182_v2 = vmax.f32 %v844_v63, 0.0 }
 0x134   : > { %v848_v4 = vpop.f32.mrb[12].mxu0 }
 0x135   : > { %1255 = vst.msk [vmem:[#allocation2 + $0x28] sm:$0xff] %vm1249_vm1, %v1182_v2  ;;  %v849_v5 = vadd.f32 %v9800_v27, %v848_v4  ;;  %v850_v6 = vpop.f32.mrb[13].mxu0  ;;  %1112 = vmatmul.mubr.f32.gmra.mrb[118].mxu0 %v477_v1 }
 0x136   : > { %7393 = vmatprep.mubr.msk.f32.mxu0 %vm535_vm0, %v480_v29 }
 0x137   : > { %v1183_v7 = vmax.f32 %v849_v5, 0.0 }
 0x138   : > { %v853_v8 = vpop.f32.mrb[14].mxu0 }
 0x139   : > { %1256 = vst.msk [vmem:[#allocation2 + $0x30] sm:$0xff] %vm1249_vm1, %v1183_v7  ;;  %v854_v11 = vadd.f32 %v9800_v27, %v853_v8  ;;  %v855_v12 = vpop.f32.mrb[15].mxu0  ;;  %1117 = vmatmul.mubr.f32.gmra.mrb[120].mxu0 %v479_v32 }
 0x13a   : > { %7394 = vmatprep.mubr.msk.f32.mxu0 %vm535_vm0, %v482_v36 }
 0x13b   : > { %v1184_v13 = vmax.f32 %v854_v11, 0.0 }
 0x13c   : > { %v858_v15 = vpop.f32.mrb[16].mxu0  ;;  %v9846_v17 = vld [vmem:[#allocation2 + $0x24] sm:$0xff] }
 0x13d   : > { %1257 = vst.msk [vmem:[#allocation2 + $0x38] sm:$0xff] %vm1249_vm1, %v1184_v13  ;;  %v859_v18 = vadd.f32 %v9800_v27, %v858_v15  ;;  %v860_v19 = vpop.f32.mrb[17].mxu0  ;;  %8160 = vmatmul.mubr.msk.f32.vlgmr.msra.gmra.mrb[0].mxu1 %vm1249_vm1, %v9846_v17  ;;  %1122 = vmatmul.mubr.f32.gmra.mrb[122].mxu0 %v481_v39 }
 0x13e   : > { %8873 = vmatpush3.bf16.msra.mxu1 %v9779_v16  ;;  %7395 = vmatprep.mubr.msk.f32.mxu0 %vm535_vm0, %v484_v52 }
 0x13f   : > { %v1185_v20 = vmax.f32 %v859_v18, 0.0  ;;  %8875 = vmatprep.subr.bf16.mxu1 %v9844_v14 }
 0x140   : > { %v863_v21 = vpop.f32.mrb[18].mxu0 }
 0x141   : > { %1258 = vst.msk [vmem:[#allocation2 + $0x40] sm:$0xff] %vm1249_vm1, %v1185_v20  ;;  %v864_v22 = vadd.f32 %v9800_v27, %v863_v21  ;;  %v865_v23 = vpop.f32.mrb[19].mxu0  ;;  %1127 = vmatmul.mubr.f32.gmra.mrb[124].mxu0 %v483_v54  ;;  %v9930_v54 = vld [vmem:[#allocation2 + $0x18] sm:$0xff] }
 0x143   : > { %v1186_v24 = vmax.f32 %v864_v22, 0.0 }
 0x144   : > { %v868_v25 = vpop.f32.mrb[20].mxu0 }
 0x145   : > { %1259 = vst.msk [vmem:[#allocation2 + $0x48] sm:$0xff] %vm1249_vm1, %v1186_v24  ;;  %v869_v26 = vadd.f32 %v9800_v27, %v868_v25  ;;  %v870_v28 = vpop.f32.mrb[21].mxu0 }
 0x147   : > { %v1187_v16 = vmax.f32 %v869_v26, 0.0 }
 0x148   : > { %v873_v30 = vpop.f32.mrb[22].mxu0  ;;  %v9859_v31 = vld [vmem:[#allocation2 + $0x3c] sm:$0xff] }
 0x149   : > { %1260 = vst.msk [vmem:[#allocation2 + $0x50] sm:$0xff] %vm1249_vm1, %v1187_v16  ;;  %v874_v33 = vadd.f32 %v9800_v27, %v873_v30  ;;  %v875_v34 = vpop.f32.mrb[23].mxu0  ;;  %8162 = vmatprep.mubr.msk.f32.mxu1 %vm1249_vm1, %v9859_v31 }
 0x14b   : > { %v1188_v35 = vmax.f32 %v874_v33, 0.0 }
 0x14c   : > { %v878_v37 = vpop.f32.mrb[24].mxu0 }
 0x14d   : > { %1261 = vst.msk [vmem:[#allocation2 + $0x58] sm:$0xff] %vm1249_vm1, %v1188_v35  ;;  %v879_v40 = vadd.f32 %v9800_v27, %v878_v37  ;;  %v880_v41 = vpop.f32.mrb[25].mxu0 }
 0x14f   : > { %v1189_v42 = vmax.f32 %v879_v40, 0.0 }
 0x150   : > { %v883_v43 = vpop.f32.mrb[26].mxu0 }
 0x151   : > { %1262 = vst.msk [vmem:[#allocation2 + $0x60] sm:$0xff] %vm1249_vm1, %v1189_v42  ;;  %v884_v44 = vadd.f32 %v9800_v27, %v883_v43  ;;  %v885_v45 = vpop.f32.mrb[27].mxu0 }
 0x152   : > { %v7433_v45 = vld [vmem:[%s11200_s3 + $0x30] sm:$0xff] }
 0x153   : > { %v1190_v46 = vmax.f32 %v884_v44, 0.0 }
 0x154   : > { %v888_v47 = vpop.f32.mrb[28].mxu0  ;;  %v9874_v48 = vld [vmem:[#allocation2 + $0x54] sm:$0xff] }
 0x155   : > { %1263 = vst.msk [vmem:[#allocation2 + $0x68] sm:$0xff] %vm1249_vm1, %v1190_v46  ;;  %v889_v49 = vadd.f32 %v9800_v27, %v888_v47  ;;  %v890_v50 = vpop.f32.mrb[29].mxu0  ;;  %8163 = vmatmul.mubr.msk.f32.gmra.mrb[2].mxu1 %vm1249_vm1, %v9874_v48  ;;  %v7434_v46 = vld [vmem:[%s11200_s3 + $0x38] sm:$0xff] }
 0x156   : > { %v1322_v50 = vld [vmem:[#allocation2] sm:$0xff]  ;;  %v8878_v52 = vpack.c.bf16 %v7434_v46, %v7433_v45 }
 0x157   : > { %v1191_v51 = vmax.f32 %v889_v49, 0.0  ;;  %v10012_v45 = vld [vmem:[#allocation2 + $0x3d] sm:$0xff] }
 0x158   : > { %v893_v53 = vpop.f32.mrb[30].mxu0 }
 0x159   : > { %1264 = vst.msk [vmem:[#allocation2 + $0x70] sm:$0xff] %vm1249_vm1, %v1191_v51  ;;  %v894_v55 = vadd.f32 %v9800_v27, %v893_v53  ;;  %v895_v56 = vpop.f32.mrb[31].mxu0 }
 0x15b   : > { %v1192_v57 = vmax.f32 %v894_v55, 0.0 }
 0x15c   : > { %v898_v58 = vpop.f32.mrb[32].mxu0 }
 0x15d   : > { %1265 = vst.msk [vmem:[#allocation2 + $0x78] sm:$0xff] %vm1249_vm1, %v1192_v57  ;;  %v899_v59 = vadd.f32 %v9800_v27, %v898_v58  ;;  %v900_v60 = vpop.f32.mrb[33].mxu0  ;;  %v9936_v57 = vld [vmem:[#allocation2 + $0x30] sm:$0xff] }
 0x15e   : > { %v9941_v60 = vld [vmem:[#allocation2 + $0x48] sm:$0xff] }
 0x15f   : > { %v1193_v61 = vmax.f32 %v899_v59, 0.0 }
 0x160   : > { %v903_v62 = vpop.f32.mrb[34].mxu0  ;;  %v9887_v63 = vld [vmem:[#allocation2 + $0x6c] sm:$0xff] }
 0x161   : > { %1266 = vst.msk [vmem:[#allocation2 + $0x80] sm:$0xff] %vm1249_vm1, %v1193_v61  ;;  %v904_v0 = vadd.f32 %v9800_v27, %v903_v62  ;;  %v905_v1 = vpop.f32.mrb[35].mxu0  ;;  %8165 = vmatprep.mubr.msk.f32.mxu1 %vm1249_vm1, %v9887_v63 }
 0x163   : > { %v1194_v2 = vmax.f32 %v904_v0, 0.0  ;;  %v9947_v0 = vld [vmem:[#allocation2 + $0x60] sm:$0xff] }
 0x164   : > { %v908_v4 = vpop.f32.mrb[36].mxu0 }
 0x165   : > { %1267 = vst.msk [vmem:[#allocation2 + $0x88] sm:$0xff] %vm1249_vm1, %v1194_v2  ;;  %v909_v5 = vadd.f32 %v9800_v27, %v908_v4  ;;  %v910_v6 = vpop.f32.mrb[37].mxu0  ;;  %v9951_v2 = vld [vmem:[#allocation2 + $0x78] sm:$0xff] }
 0x167   : > { %v1195_v7 = vmax.f32 %v909_v5, 0.0 }
 0x168   : > { %v913_v8 = vpop.f32.mrb[38].mxu0 }
 0x169   : > { %1268 = vst.msk [vmem:[#allocation2 + $0x90] sm:$0xff] %vm1249_vm1, %v1195_v7  ;;  %v914_v9 = vadd.f32 %v9800_v27, %v913_v8  ;;  %v915_v10 = vpop.f32.mrb[39].mxu0 }
 0x16a   : > { %v7443_v10 = vld [vmem:[%s11200_s3 + $0x40] sm:$0xff] }
 0x16b   : > { %v1196_v11 = vmax.f32 %v914_v9, 0.0 }
 0x16c   : > { %v918_v12 = vpop.f32.mrb[40].mxu0  ;;  %v9897_v13 = vld [vmem:[#allocation2 + $0x84] sm:$0xff] }
 0x16d   : > { %1269 = vst.msk [vmem:[#allocation2 + $0x98] sm:$0xff] %vm1249_vm1, %v1196_v11  ;;  %v919_v15 = vadd.f32 %v9800_v27, %v918_v12  ;;  %v920_v18 = vpop.f32.mrb[41].mxu0  ;;  %8166 = vmatmul.mubr.msk.f32.gmra.mrb[4].mxu1 %vm1249_vm1, %v9897_v13  ;;  %v7444_v11 = vld [vmem:[%s11200_s3 + $0x48] sm:$0xff] }
 0x16e   : > { %v8882_v18 = vpack.c.bf16 %v7444_v11, %v7443_v10 }
 0x16f   : > { %v1197_v19 = vmax.f32 %v919_v15, 0.0  ;;  %v1601_v15 = vld [vmem:[#allocation2 + $0x1] sm:$0xff] }
 0x170   : > { %v923_v20 = vpop.f32.mrb[42].mxu0  ;;  %v9957_v6 = vld [vmem:[#allocation2 + $0x90] sm:$0xff] }
 0x171   : > { %1270 = vst.msk [vmem:[#allocation2 + $0xa0] sm:$0xff] %vm1249_vm1, %v1197_v19  ;;  %v924_v21 = vadd.f32 %v9800_v27, %v923_v20  ;;  %v925_v22 = vpop.f32.mrb[43].mxu0  ;;  %v9973_v20 = vld [vmem:[#allocation2 + $0x19] sm:$0xff] }
 0x172   : > { %v9977_v22 = vld [vmem:[#allocation2 + $0x31] sm:$0xff] }
 0x173   : > { %v1198_v23 = vmax.f32 %v924_v21, 0.0 }
 0x174   : > { %v928_v24 = vpop.f32.mrb[44].mxu0 }
 0x175   : > { %1271 = vst.msk [vmem:[#allocation2 + $0xa8] sm:$0xff] %vm1249_vm1, %v1198_v23  ;;  %v929_v25 = vadd.f32 %v9800_v27, %v928_v24  ;;  %v930_v26 = vpop.f32.mrb[45].mxu0  ;;  %v9981_v24 = vld [vmem:[#allocation2 + $0x49] sm:$0xff] }
 0x176   : > { %v9985_v26 = vld [vmem:[#allocation2 + $0x61] sm:$0xff] }
 0x177   : > { %v1199_v28 = vmax.f32 %v929_v25, 0.0 }
 0x178   : > { %v933_v16 = vpop.f32.mrb[46].mxu0  ;;  %v9907_v29 = vld [vmem:[#allocation2 + $0x9c] sm:$0xff] }
 0x179   : > { %1272 = vst.msk [vmem:[#allocation2 + $0xb0] sm:$0xff] %vm1249_vm1, %v1199_v28  ;;  %v934_v30 = vadd.f32 %v9800_v27, %v933_v16  ;;  %v935_v32 = vpop.f32.mrb[47].mxu0  ;;  %8168 = vmatprep.mubr.msk.f32.mxu1 %vm1249_vm1, %v9907_v29  ;;  %v9989_v16 = vld [vmem:[#allocation2 + $0x79] sm:$0xff] }
 0x17a   : > { %v9993_v32 = vld [vmem:[#allocation2 + $0x91] sm:$0xff] }
 0x17b   : > { %v1200_v33 = vmax.f32 %v934_v30, 0.0 }
 0x17c   : > { %v938_v34 = vpop.f32.mrb[48].mxu0  ;;  %v9961_v9 = vld [vmem:[#allocation2 + $0xa8] sm:$0xff] }
 0x17d   : > { %1273 = vst.msk [vmem:[#allocation2 + $0xb8] sm:$0xff] %vm1249_vm1, %v1200_v33  ;;  %v939_v35 = vadd.f32 %v9800_v27, %v938_v34  ;;  %v940_v36 = vpop.f32.mrb[49].mxu0 }
 0x17e   : > { %v7454_v36 = vld [vmem:[%s11200_s3 + $0x58] sm:$0xff] }
 0x17f   : > { %v1201_v37 = vmax.f32 %v939_v35, 0.0  ;;  %v7453_v35 = vld [vmem:[%s11200_s3 + $0x50] sm:$0xff] }
 0x180   : > { %v943_v39 = vpop.f32.mrb[50].mxu0  ;;  %v9997_v34 = vld [vmem:[#allocation2 + $0xa9] sm:$0xff] }
 0x181   : > { %1274 = vst.msk [vmem:[#allocation2 + $0xc0] sm:$0xff] %vm1249_vm1, %v1201_v37  ;;  %v944_v40 = vadd.f32 %v9800_v27, %v943_v39  ;;  %v945_v41 = vpop.f32.mrb[51].mxu0  ;;  %v1749_v39 = vld [vmem:[#allocation2 + $0xd] sm:$0xff] }
 0x183   : > { %v1202_v42 = vmax.f32 %v944_v40, 0.0  ;;  %v8886_v40 = vpack.c.bf16 %v7454_v36, %v7453_v35  ;;  %v10064_v35 = vld [vmem:[#allocation2 + $0x62] sm:$0xff] }
 0x184   : > { %v948_v43 = vpop.f32.mrb[52].mxu0  ;;  %v9917_v44 = vld [vmem:[#allocation2 + $0xb4] sm:$0xff] }
 0x185   : > { %1275 = vst.msk [vmem:[#allocation2 + $0xc8] sm:$0xff] %vm1249_vm1, %v1202_v42  ;;  %v949_v47 = vadd.f32 %v9800_v27, %v948_v43  ;;  %v950_v49 = vpop.f32.mrb[53].mxu0  ;;  %8169 = vmatmul.mubr.msk.f32.gmra.mrb[6].mxu1 %vm1249_vm1, %v9917_v44  ;;  %v10008_v42 = vld [vmem:[#allocation2 + $0x25] sm:$0xff] }
 0x186   : > { %8175 = vmatprep.mubr.msk.f32.mxu1 %vm1249_vm1, %v1322_v50 }
 0x187   : > { %v1203_v51 = vmax.f32 %v949_v47, 0.0  ;;  %v10016_v47 = vld [vmem:[#allocation2 + $0x55] sm:$0xff] }
 0x188   : > { %v953_v53 = vpop.f32.mrb[54].mxu0 }
 0x189   : > { %1276 = vst.msk [vmem:[#allocation2 + $0xd0] sm:$0xff] %vm1249_vm1, %v1203_v51  ;;  %v954_v55 = vadd.f32 %v9800_v27, %v953_v53  ;;  %v955_v56 = vpop.f32.mrb[55].mxu0  ;;  %8176 = vmatmul.mubr.msk.f32.vlgmr.msra.gmra.mrb[0].mxu1 %vm1249_vm1, %v9930_v54  ;;  %v10021_v51 = vld [vmem:[#allocation2 + $0x6d] sm:$0xff] }
 0x18a   : > { %8178 = vmatprep.mubr.msk.f32.mxu1 %vm1249_vm1, %v9936_v57  ;;  %8877 = vmatpush3.bf16.msra.mxu1 %v9844_v14 }
 0x18b   : > { %v1204_v58 = vmax.f32 %v954_v55, 0.0  ;;  %8879 = vmatprep.subr.bf16.mxu1 %v8878_v52  ;;  %v10025_v55 = vld [vmem:[#allocation2 + $0x85] sm:$0xff] }
 0x18c   : > { %v958_v59 = vpop.f32.mrb[56].mxu0 }
 0x18d   : > { %1277 = vst.msk [vmem:[#allocation2 + $0xd8] sm:$0xff] %vm1249_vm1, %v1204_v58  ;;  %v959_v61 = vadd.f32 %v9800_v27, %v958_v59  ;;  %v960_v62 = vpop.f32.mrb[57].mxu0  ;;  %8179 = vmatmul.mubr.msk.f32.gmra.mrb[2].mxu1 %vm1249_vm1, %v9941_v60  ;;  %v10031_v59 = vld [vmem:[#allocation2 + $0x9d] sm:$0xff] }
 0x18e   : > { %8181 = vmatprep.mubr.msk.f32.mxu1 %vm1249_vm1, %v9947_v0 }
 0x18f   : > { %v1205_v1 = vmax.f32 %v959_v61, 0.0 }
 0x190   : > { %v963_v14 = vpop.f32.mrb[58].mxu0 }
 0x191   : > { %1278 = vst.msk [vmem:[#allocation2 + $0xe0] sm:$0xff] %vm1249_vm1, %v1205_v1  ;;  %v964_v4 = vadd.f32 %v9800_v27, %v963_v14  ;;  %v965_v5 = vpop.f32.mrb[59].mxu0  ;;  %8182 = vmatmul.mubr.msk.f32.gmra.mrb[4].mxu1 %vm1249_vm1, %v9951_v2  ;;  %v10035_v1 = vld [vmem:[#allocation2 + $0xb5] sm:$0xff]  ;;  %v7463_v14 = vld [vmem:[%s11200_s3 + $0x60] sm:$0xff] }
 0x192   : > { %8184 = vmatprep.mubr.msk.f32.mxu1 %vm1249_vm1, %v9957_v6 }
 0x193   : > { %v1206_v7 = vmax.f32 %v964_v4, 0.0  ;;  %v7464_v4 = vld [vmem:[%s11200_s3 + $0x68] sm:$0xff] }
 0x194   : > { %v968_v8 = vpop.f32.mrb[60].mxu0  ;;  %v8890_v11 = vpack.c.bf16 %v7464_v4, %v7463_v14 }
 0x195   : > { %1279 = vst.msk [vmem:[#allocation2 + $0xe8] sm:$0xff] %vm1249_vm1, %v1206_v7  ;;  %v970_v12 = vpop.f32.mrb[61].mxu0  ;;  %8185 = vmatmul.mubr.msk.f32.gmra.mrb[6].mxu1 %vm1249_vm1, %v9961_v9  ;;  %v1897_v8 = vld [vmem:[#allocation2 + $0x2] sm:$0xff] }
 0x196   : > { %8191 = vmatprep.mubr.msk.f32.mxu1 %vm1249_vm1, %v1601_v15  ;;  %v10048_v15 = vld [vmem:[#allocation2 + $0x1a] sm:$0xff] }
 0x198   : > { %v973_v19 = vpop.f32.mrb[62].mxu0 }
 0x199   : > { %v975_v21 = vpop.f32.mrb[63].mxu0  ;;  %8192 = vmatmul.mubr.msk.f32.vlgmr.msra.gmra.mrb[0].mxu1 %vm1249_vm1, %v9973_v20 }
 0x19a   : > { %8194 = vmatprep.mubr.msk.f32.mxu1 %vm1249_vm1, %v9977_v22  ;;  %8881 = vmatpush3.bf16.msra.mxu1 %v8878_v52  ;;  %v10054_v21 = vld [vmem:[#allocation2 + $0x32] sm:$0xff] }
 0x19b   : > { %8883 = vmatprep.subr.bf16.mxu1 %v8882_v18 }
 0x19c   : > { %v978_v23 = vpop.f32.mrb[64].mxu0 }
 0x19d   : > { %v980_v25 = vpop.f32.mrb[65].mxu0  ;;  %8195 = vmatmul.mubr.msk.f32.gmra.mrb[2].mxu1 %vm1249_vm1, %v9981_v24 }
 0x19e   : > { %8197 = vmatprep.mubr.msk.f32.mxu1 %vm1249_vm1, %v9985_v26 }
 0x1a0   : > { %v983_v28 = vpop.f32.mrb[66].mxu0 }
 0x1a1   : > { %v985_v30 = vpop.f32.mrb[67].mxu0  ;;  %8198 = vmatmul.mubr.msk.f32.gmra.mrb[4].mxu1 %vm1249_vm1, %v9989_v16  ;;  %v10058_v28 = vld [vmem:[#allocation2 + $0x4a] sm:$0xff] }
 0x1a2   : > { %8200 = vmatprep.mubr.msk.f32.mxu1 %vm1249_vm1, %v9993_v32 }
 0x1a4   : > { %v988_v33 = vpop.f32.mrb[68].mxu0 }
 0x1a5   : > { %v990_v37 = vpop.f32.mrb[69].mxu0  ;;  %8201 = vmatmul.mubr.msk.f32.gmra.mrb[6].mxu1 %vm1249_vm1, %v9997_v34 }
 0x1a6   : > { %8207 = vmatprep.mubr.msk.f32.mxu1 %vm1249_vm1, %v1749_v39  ;;  %v10068_v39 = vld [vmem:[#allocation2 + $0x7a] sm:$0xff] }
 0x1a8   : > { %v993_v41 = vpop.f32.mrb[70].mxu0 }
 0x1a9   : > { %v995_v43 = vpop.f32.mrb[71].mxu0  ;;  %8208 = vmatmul.mubr.msk.f32.vlgmr.msra.gmra.mrb[0].mxu1 %vm1249_vm1, %v10008_v42 }
 0x1aa   : > { %8210 = vmatprep.mubr.msk.f32.mxu1 %vm1249_vm1, %v10012_v45  ;;  %8885 = vmatpush3.bf16.msra.mxu1 %v8882_v18  ;;  %v10074_v43 = vld [vmem:[#allocation2 + $0x92] sm:$0xff] }
 0x1ab   : > { %8887 = vmatprep.subr.bf16.mxu1 %v8886_v40 }
 0x1ac   : > { %v998_v46 = vpop.f32.mrb[72].mxu0 }
 0x1ad   : > { %v999_v49 = vadd.f32 %v9800_v27, %v998_v46  ;;  %v1000_v50 = vpop.f32.mrb[73].mxu0  ;;  %8211 = vmatmul.mubr.msk.f32.gmra.mrb[2].mxu1 %vm1249_vm1, %v10016_v47 }
 0x1ae   : > { %8213 = vmatprep.mubr.msk.f32.mxu1 %vm1249_vm1, %v10021_v51  ;;  %v10078_v50 = vld [vmem:[#allocation2 + $0xaa] sm:$0xff] }
 0x1af   : > { %v1213_v52 = vmax.f32 %v999_v49, 0.0 }
 0x1b0   : > { %v1003_v53 = vpop.f32.mrb[74].mxu0 }
 0x1b1   : > { %1286 = vst.msk [vmem:[#allocation2 + $0x120] sm:$0xff] %vm1249_vm1, %v1213_v52  ;;  %v1004_v56 = vadd.f32 %v9800_v27, %v1003_v53  ;;  %v1005_v58 = vpop.f32.mrb[75].mxu0  ;;  %8214 = vmatmul.mubr.msk.f32.gmra.mrb[4].mxu1 %vm1249_vm1, %v10025_v55  ;;  %v7473_v52 = vld [vmem:[%s11200_s3 + $0x70] sm:$0xff]  ;;  %v7474_v53 = vld [vmem:[%s11200_s3 + $0x78] sm:$0xff] }
 0x1b2   : > { %8216 = vmatprep.mubr.msk.f32.mxu1 %vm1249_vm1, %v10031_v59  ;;  %v10091_v14 = vpack.c.bf16 %v7474_v53, %v7473_v52 }
 0x1b3   : > { %v1214_v61 = vmax.f32 %v1004_v56, 0.0 }
 0x1b4   : > { %v1008_v62 = vpop.f32.mrb[76].mxu0 }
 0x1b5   : > { %1287 = vst.msk [vmem:[#allocation2 + $0x128] sm:$0xff] %vm1249_vm1, %v1214_v61  ;;  %v1009_v5 = vadd.f32 %v9800_v27, %v1008_v62  ;;  %v1010_v7 = vpop.f32.mrb[77].mxu0  ;;  %8217 = vmatmul.mubr.msk.f32.gmra.mrb[6].mxu1 %vm1249_vm1, %v10035_v1 }
 0x1b6   : > { %8223 = vmatprep.mubr.msk.f32.mxu1 %vm1249_vm1, %v1897_v8 }
 0x1b7   : > { %v1215_v10 = vmax.f32 %v1009_v5, 0.0 }
 0x1b8   : > { %v1013_v12 = vpop.f32.mrb[78].mxu0  ;;  %v2046_v61 = vld [vmem:[#allocation2 + $0x120] sm:$0xff] }
 0x1b9   : > { %1288 = vst.msk [vmem:[#allocation2 + $0x130] sm:$0xff] %vm1249_vm1, %v1215_v10  ;;  %v1014_v18 = vadd.f32 %v9800_v27, %v1013_v12  ;;  %v1015_v19 = vpop.f32.mrb[79].mxu0  ;;  %8224 = vmatmul.mubr.msk.f32.vlgmr.msra.gmra.mrb[0].mxu1 %vm1249_vm1, %v10048_v15 }
 0x1ba   : > { %8226 = vmatprep.mubr.msk.f32.mxu1 %vm1249_vm1, %v10054_v21  ;;  %8889 = vmatpush3.bf16.msra.mxu1 %v8886_v40 }
 0x1bb   : > { %v1216_v23 = vmax.f32 %v1014_v18, 0.0  ;;  %8891 = vmatprep.subr.bf16.mxu1 %v8890_v11 }
 0x1bc   : > { %v1018_v25 = vpop.f32.mrb[80].mxu0 }
 0x1bd   : > { %1289 = vst.msk [vmem:[#allocation2 + $0x138] sm:$0xff] %vm1249_vm1, %v1216_v23  ;;  %v1019_v30 = vadd.f32 %v9800_v27, %v1018_v25  ;;  %v1020_v33 = vpop.f32.mrb[81].mxu0  ;;  %8227 = vmatmul.mubr.msk.f32.gmra.mrb[2].mxu1 %vm1249_vm1, %v10058_v28 }
 0x1be   : > { %8229 = vmatprep.mubr.msk.f32.mxu1 %vm1249_vm1, %v10064_v35 }
 0x1bf   : > { %v1217_v36 = vmax.f32 %v1019_v30, 0.0 }
 0x1c0   : > { %v1023_v37 = vpop.f32.mrb[82].mxu0 }
 0x1c1   : > { %1290 = vst.msk [vmem:[#allocation2 + $0x140] sm:$0xff] %vm1249_vm1, %v1217_v36  ;;  %v1024_v40 = vadd.f32 %v9800_v27, %v1023_v37  ;;  %v1025_v41 = vpop.f32.mrb[83].mxu0  ;;  %8230 = vmatmul.mubr.msk.f32.gmra.mrb[4].mxu1 %vm1249_vm1, %v10068_v39 }
 0x1c2   : > { %8232 = vmatprep.mubr.msk.f32.mxu1 %vm1249_vm1, %v10074_v43 }
 0x1c3   : > { %v1218_v46 = vmax.f32 %v1024_v40, 0.0 }
 0x1c4   : > { %v1028_v49 = vpop.f32.mrb[84].mxu0  ;;  %v10093_v5 = vld [vmem:[#allocation2 + $0x138] sm:$0xff] }
 0x1c5   : > { %1291 = vst.msk [vmem:[#allocation2 + $0x148] sm:$0xff] %vm1249_vm1, %v1218_v46  ;;  %v1029_v56 = vadd.f32 %v9800_v27, %v1028_v49  ;;  %v1030_v58 = vpop.f32.mrb[85].mxu0  ;;  %8233 = vmatmul.mubr.msk.f32.gmra.mrb[6].mxu1 %vm1249_vm1, %v10078_v50 }
 0x1c6   : > { %8239 = vmatprep.mubr.msk.f32.mxu1 %vm1249_vm1, %v2046_v61 }
 0x1c7   : > { %v1219_v62 = vmax.f32 %v1029_v56, 0.0 }
 0x1c8   : > { %v1033_v4 = vpop.f32.mrb[86].mxu0 }
 0x1c9   : > { %1292 = vst.msk [vmem:[#allocation2 + $0x150] sm:$0xff] %vm1249_vm1, %v1219_v62  ;;  %v1034_v7 = vadd.f32 %v9800_v27, %v1033_v4  ;;  %v1035_v8 = vpop.f32.mrb[87].mxu0  ;;  %8240 = vmatmul.mubr.msk.f32.vlgmr.msra.gmra.mrb[0].mxu1 %vm1249_vm1, %v10093_v5 }
 0x1ca   : > { %8893 = vmatpush3.bf16.msra.mxu1 %v8890_v11 }
 0x1cb   : > { %v1220_v10 = vmax.f32 %v1034_v7, 0.0  ;;  %8895 = vmatprep.subr.bf16.mxu1 %v10091_v14 }
 0x1cc   : > { %v1038_v12 = vpop.f32.mrb[88].mxu0 }
 0x1cd   : > { %1293 = vst.msk [vmem:[#allocation2 + $0x158] sm:$0xff] %vm1249_vm1, %v1220_v10  ;;  %v1039_v18 = vadd.f32 %v9800_v27, %v1038_v12  ;;  %v1040_v19 = vpop.f32.mrb[89].mxu0 }
 0x1cf   : > { %v1221_v23 = vmax.f32 %v1039_v18, 0.0 }
 0x1d0   : > { %v1043_v25 = vpop.f32.mrb[90].mxu0  ;;  %v10102_v30 = vld [vmem:[#allocation2 + $0x150] sm:$0xff] }
 0x1d1   : > { %1294 = vst.msk [vmem:[#allocation2 + $0x160] sm:$0xff] %vm1249_vm1, %v1221_v23  ;;  %v1044_v33 = vadd.f32 %v9800_v27, %v1043_v25  ;;  %v1045_v36 = vpop.f32.mrb[91].mxu0  ;;  %8242 = vmatprep.mubr.msk.f32.mxu1 %vm1249_vm1, %v10102_v30 }
 0x1d3   : > { %v1222_v11 = vmax.f32 %v1044_v33, 0.0 }
 0x1d4   : > { %v1048_v37 = vpop.f32.mrb[92].mxu0 }
 0x1d5   : > { %1295 = vst.msk [vmem:[#allocation2 + $0x168] sm:$0xff] %vm1249_vm1, %v1222_v11  ;;  %v1049_v40 = vadd.f32 %v9800_v27, %v1048_v37  ;;  %v1050_v41 = vpop.f32.mrb[93].mxu0 }
 0x1d7   : > { %v1223_v46 = vmax.f32 %v1049_v40, 0.0 }
 0x1d8   : > { %v1053_v49 = vpop.f32.mrb[94].mxu0 }
 0x1d9   : > { %1296 = vst.msk [vmem:[#allocation2 + $0x170] sm:$0xff] %vm1249_vm1, %v1223_v46  ;;  %v1054_v52 = vadd.f32 %v9800_v27, %v1053_v49  ;;  %v1055_v53 = vpop.f32.mrb[95].mxu0 }
 0x1db   : > { %v1224_v56 = vmax.f32 %v1054_v52, 0.0 }
 0x1dc   : > { %v1058_v58 = vpop.f32.mrb[96].mxu0  ;;  %v10112_v61 = vld [vmem:[#allocation2 + $0x168] sm:$0xff] }
 0x1dd   : > { %1297 = vst.msk [vmem:[#allocation2 + $0x178] sm:$0xff] %vm1249_vm1, %v1224_v56  ;;  %v1059_v62 = vadd.f32 %v9800_v27, %v1058_v58  ;;  %v1060_v4 = vpop.f32.mrb[97].mxu0  ;;  %8243 = vmatmul.mubr.msk.f32.gmra.mrb[2].mxu1 %vm1249_vm1, %v10112_v61 }
 0x1df   : > { %v1225_v7 = vmax.f32 %v1059_v62, 0.0 }
 0x1e0   : > { %v1063_v8 = vpop.f32.mrb[98].mxu0 }
 0x1e1   : > { %1298 = vst.msk [vmem:[#allocation2 + $0x180] sm:$0xff] %vm1249_vm1, %v1225_v7  ;;  %v1064_v10 = vadd.f32 %v9800_v27, %v1063_v8  ;;  %v1065_v12 = vpop.f32.mrb[99].mxu0 }
 0x1e3   : > { %v1226_v18 = vmax.f32 %v1064_v10, 0.0 }
 0x1e4   : > { %v1068_v19 = vpop.f32.mrb[100].mxu0 }
 0x1e5   : > { %1299 = vst.msk [vmem:[#allocation2 + $0x188] sm:$0xff] %vm1249_vm1, %v1226_v18  ;;  %v1069_v23 = vadd.f32 %v9800_v27, %v1068_v19  ;;  %v1070_v25 = vpop.f32.mrb[101].mxu0 }
 0x1e7   : > { %v1227_v33 = vmax.f32 %v1069_v23, 0.0 }
 0x1e8   : > { %v1073_v36 = vpop.f32.mrb[102].mxu0  ;;  %v10122_v11 = vld [vmem:[#allocation2 + $0x180] sm:$0xff] }
 0x1e9   : > { %1300 = vst.msk [vmem:[#allocation2 + $0x190] sm:$0xff] %vm1249_vm1, %v1227_v33  ;;  %v1074_v37 = vadd.f32 %v9800_v27, %v1073_v36  ;;  %v1075_v40 = vpop.f32.mrb[103].mxu0  ;;  %8245 = vmatprep.mubr.msk.f32.mxu1 %vm1249_vm1, %v10122_v11 }
 0x1eb   : > { %v1228_v41 = vmax.f32 %v1074_v37, 0.0 }
 0x1ec   : > { %v1078_v46 = vpop.f32.mrb[104].mxu0 }
 0x1ed   : > { %1301 = vst.msk [vmem:[#allocation2 + $0x198] sm:$0xff] %vm1249_vm1, %v1228_v41  ;;  %v1079_v49 = vadd.f32 %v9800_v27, %v1078_v46  ;;  %v1080_v52 = vpop.f32.mrb[105].mxu0 }
 0x1ef   : > { %v1229_v53 = vmax.f32 %v1079_v49, 0.0 }
 0x1f0   : > { %v1083_v56 = vpop.f32.mrb[106].mxu0 }
 0x1f1   : > { %1302 = vst.msk [vmem:[#allocation2 + $0x1a0] sm:$0xff] %vm1249_vm1, %v1229_v53  ;;  %v1084_v58 = vadd.f32 %v9800_v27, %v1083_v56  ;;  %v1085_v62 = vpop.f32.mrb[107].mxu0 }
 0x1f3   : > { %v1230_v4 = vmax.f32 %v1084_v58, 0.0 }
 0x1f4   : > { %v1088_v7 = vpop.f32.mrb[108].mxu0  ;;  %v10132_v8 = vld [vmem:[#allocation2 + $0x198] sm:$0xff] }
 0x1f5   : > { %1303 = vst.msk [vmem:[#allocation2 + $0x1a8] sm:$0xff] %vm1249_vm1, %v1230_v4  ;;  %v1089_v10 = vadd.f32 %v9800_v27, %v1088_v7  ;;  %v1090_v12 = vpop.f32.mrb[109].mxu0  ;;  %8246 = vmatmul.mubr.msk.f32.gmra.mrb[4].mxu1 %vm1249_vm1, %v10132_v8 }
 0x1f7   : > { %v1231_v18 = vmax.f32 %v1089_v10, 0.0 }
 0x1f8   : > { %v1093_v19 = vpop.f32.mrb[110].mxu0 }
 0x1f9   : > { %1304 = vst.msk [vmem:[#allocation2 + $0x1b0] sm:$0xff] %vm1249_vm1, %v1231_v18  ;;  %v1094_v23 = vadd.f32 %v9800_v27, %v1093_v19  ;;  %v1095_v25 = vpop.f32.mrb[111].mxu0 }
 0x1fa   : > { %v7483_v25 = vld [vmem:[%s11200_s3 + $0x80] sm:$0xff] }
 0x1fb   : > { %v1232_v33 = vmax.f32 %v1094_v23, 0.0 }
 0x1fc   : > { %v1098_v36 = vpop.f32.mrb[112].mxu0 }
 0x1fd   : > { %1305 = vst.msk [vmem:[#allocation2 + $0x1b8] sm:$0xff] %vm1249_vm1, %v1232_v33  ;;  %v1099_v37 = vadd.f32 %v9800_v27, %v1098_v36  ;;  %v1100_v40 = vpop.f32.mrb[113].mxu0  ;;  %v7484_v33 = vld [vmem:[%s11200_s3 + $0x88] sm:$0xff] }
 0x1fe   : > { %v2194_v36 = vld [vmem:[#allocation2 + $0x12c] sm:$0xff]  ;;  %v10164_v40 = vld [vmem:[#allocation2 + $0x144] sm:$0xff] }
 0x1ff   : > { %v1233_v41 = vmax.f32 %v1099_v37, 0.0  ;;  %v8898_v37 = vpack.c.bf16 %v7484_v33, %v7483_v25 }
 0x200   : > { %v1103_v46 = vpop.f32.mrb[114].mxu0  ;;  %v10142_v49 = vld [vmem:[#allocation2 + $0x1b0] sm:$0xff] }
 0x201   : > { %1306 = vst.msk [vmem:[#allocation2 + $0x1c0] sm:$0xff] %vm1249_vm1, %v1233_v41  ;;  %v1104_v52 = vadd.f32 %v9800_v27, %v1103_v46  ;;  %v1105_v53 = vpop.f32.mrb[115].mxu0  ;;  %8248 = vmatprep.mubr.msk.f32.mxu1 %vm1249_vm1, %v10142_v49  ;;  %v10168_v41 = vld [vmem:[#allocation2 + $0x15c] sm:$0xff]  ;;  %v10173_v46 = vld [vmem:[#allocation2 + $0x174] sm:$0xff] }
 0x202   : > { %v10181_v53 = vld [vmem:[#allocation2 + $0x1a4] sm:$0xff] }
 0x203   : > { %v1234_v56 = vmax.f32 %v1104_v52, 0.0  ;;  %v10177_v52 = vld [vmem:[#allocation2 + $0x18c] sm:$0xff] }
 0x204   : > { %v1108_v58 = vpop.f32.mrb[116].mxu0 }
 0x205   : > { %1307 = vst.msk [vmem:[#allocation2 + $0x1c8] sm:$0xff] %vm1249_vm1, %v1234_v56  ;;  %v1109_v62 = vadd.f32 %v9800_v27, %v1108_v58  ;;  %v1110_v4 = vpop.f32.mrb[117].mxu0  ;;  %v7493_v58 = vld [vmem:[%s11200_s3 + $0x90] sm:$0xff] }
 0x206   : > { %v2342_v4 = vld [vmem:[#allocation2 + $0x121] sm:$0xff] }
 0x207   : > { %v1235_v7 = vmax.f32 %v1109_v62, 0.0  ;;  %v7494_v62 = vld [vmem:[%s11200_s3 + $0x98] sm:$0xff] }
 0x208   : > { %v1113_v10 = vpop.f32.mrb[118].mxu0 }
 0x209   : > { %1308 = vst.msk [vmem:[#allocation2 + $0x1d0] sm:$0xff] %vm1249_vm1, %v1235_v7  ;;  %v1114_v12 = vadd.f32 %v9800_v27, %v1113_v10  ;;  %v1115_v18 = vpop.f32.mrb[119].mxu0 }
 0x20a   : > { %v8902_v18 = vpack.c.bf16 %v7494_v62, %v7493_v58  ;;  %v10211_v62 = vld [vmem:[#allocation2 + $0x169] sm:$0xff] }
 0x20b   : > { %v1236_v19 = vmax.f32 %v1114_v12, 0.0  ;;  %11223 = vst [vmem:[#allocation7_spill] sm:$0xff] %v10211_v62 }
 0x20c   : > { %v10152_v23 = vld [vmem:[#allocation2 + $0x1c8] sm:$0xff]  ;;  %v1118_v7 = vpop.f32.mrb[120].mxu0 }
 0x20d   : > { %1309 = vst.msk [vmem:[#allocation2 + $0x1d8] sm:$0xff] %vm1249_vm1, %v1236_v19  ;;  %8249 = vmatmul.mubr.msk.f32.gmra.mrb[6].mxu1 %vm1249_vm1, %v10152_v23  ;;  %v1119_v10 = vadd.f32 %v9800_v27, %v1118_v7  ;;  %v1120_v12 = vpop.f32.mrb[121].mxu0  ;;  %v10201_v19 = vld [vmem:[#allocation2 + $0x139] sm:$0xff]  ;;  %v7504_v7 = vld [vmem:[%s11200_s3 + $0xa8] sm:$0xff] }
 0x20e   : > { %8255 = vmatprep.mubr.msk.f32.mxu1 %vm1249_vm1, %v2194_v36  ;;  %v10205_v36 = vld [vmem:[#allocation2 + $0x151] sm:$0xff] }
 0x20f   : > { %v1237_v25 = vmax.f32 %v1119_v10, 0.0  ;;  %v2490_v12 = vld [vmem:[#allocation2 + $0x12d] sm:$0xff] }
 0x210   : > { %v1123_v33 = vpop.f32.mrb[122].mxu0 }
 0x211   : > { %8256 = vmatmul.mubr.msk.f32.vlgmr.msra.gmra.mrb[0].mxu1 %vm1249_vm1, %v10164_v40  ;;  %v1124_v38 = vadd.f32 %v9800_v27, %v1123_v33  ;;  %v1125_v3 = vpop.f32.mrb[123].mxu0  ;;  %1310 = vst.msk [vmem:[#allocation2 + $0x1e0] sm:$0xff] %vm1249_vm1, %v1237_v25  ;;  %v10224_v27 = vld [vmem:[#allocation2 + $0x1b1] sm:$0xff]  ;;  %v9354_v25 = vld [vmem:[%s11199_s2] ss:$0 sm:$0xff] }
 0x212   : > { %8897 = vmatpush3.bf16.msra.mxu1 %v10091_v14  ;;  %8258 = vmatprep.mubr.msk.f32.mxu1 %vm1249_vm1, %v10168_v41  ;;  %v10185_v14 = vld [vmem:[#allocation2 + $0x1bc] sm:$0xff]  ;;  %11226 = vst [vmem:[#allocation10_spill] sm:$0xff] %v10224_v27 }
 0x213   : > { %8899 = vmatprep.subr.bf16.mxu1 %v8898_v37  ;;  %v1238_v58 = vmax.f32 %v1124_v38, 0.0  ;;  %v10220_v3 = vld [vmem:[#allocation2 + $0x199] sm:$0xff]  ;;  %v10228_v38 = vld [vmem:[#allocation2 + $0x1c9] sm:$0xff] }
 0x214   : > { %v10189_v56 = vld [vmem:[#allocation2 + $0x1d4] sm:$0xff]  ;;  %11225 = vst [vmem:[#allocation9_spill] sm:$0xff] %v10220_v3  ;;  %v1128_v10 = vpop.f32.mrb[124].mxu0 }
 0x215   : > { %8259 = vmatmul.mubr.msk.f32.gmra.mrb[2].mxu1 %vm1249_vm1, %v10173_v46  ;;  %1311 = vst.msk [vmem:[#allocation2 + $0x1e8] sm:$0xff] %vm1249_vm1, %v1238_v58  ;;  %v1129_v33 = vadd.f32 %v9354_v25, %v1128_v10  ;;  %v1130_v58 = vpop.f32.mrb[125].mxu0  ;;  %v10251_v10 = vld [vmem:[#allocation2 + $0x175] sm:$0xff] }
 0x216   : > { %8261 = vmatprep.mubr.msk.f32.mxu1 %vm1249_vm1, %v10177_v52  ;;  %v7514_v25 = vld [vmem:[%s11200_s3 + $0xb8] sm:$0xff] }
 0x219   : > { %8262 = vmatmul.mubr.msk.f32.gmra.mrb[4].mxu1 %vm1249_vm1, %v10181_v53 }
 0x21a   : > { %8264 = vmatprep.mubr.msk.f32.mxu1 %vm1249_vm1, %v10185_v14 }
 0x21d   : > { %8265 = vmatmul.mubr.msk.f32.gmra.mrb[6].mxu1 %vm1249_vm1, %v10189_v56 }
 0x21e   : > { %8271 = vmatprep.mubr.msk.f32.mxu1 %vm1249_vm1, %v2342_v4  ;;  %v10215_v4 = vld [vmem:[#allocation2 + $0x181] sm:$0xff] }
 0x21f   : > { %11224 = vst [vmem:[#allocation8_spill] sm:$0xff] %v10215_v4 }
 0x221   : > { %8272 = vmatmul.mubr.msk.f32.vlgmr.msra.gmra.mrb[0].mxu1 %vm1249_vm1, %v10201_v19 }
 0x222   : > { %8901 = vmatpush3.bf16.msra.mxu1 %v8898_v37  ;;  %8274 = vmatprep.mubr.msk.f32.mxu1 %vm1249_vm1, %v10205_v36  ;;  %v7503_v37 = vld [vmem:[%s11200_s3 + $0xa0] sm:$0xff] }
 0x223   : > { %8903 = vmatprep.subr.bf16.mxu1 %v8902_v18 }
 0x225   : > { %8275 = vmatmul.mubr.msk.f32.gmra.mrb[2].mxu1 %vm1249_vm1, %v10211_v62  ;;  %v10246_v62 = vld [vmem:[#allocation2 + $0x15d] sm:$0xff] }
 0x226   : > { %8277 = vmatprep.mubr.msk.f32.mxu1 %vm1249_vm1, %v10215_v4  ;;  %v10242_v4 = vld [vmem:[#allocation2 + $0x145] sm:$0xff] }
 0x229   : > { %8278 = vmatmul.mubr.msk.f32.gmra.mrb[4].mxu1 %vm1249_vm1, %v10220_v3  ;;  %v1239_v3 = vmax.f32 %v1129_v33, 0.0  ;;  %v2638_v33 = vld [vmem:[#allocation2 + $0x122] sm:$0xff] }
 0x22a   : > { %8280 = vmatprep.mubr.msk.f32.mxu1 %vm1249_vm1, %v10224_v27  ;;  %v8906_v27 = vpack.c.bf16 %v7504_v7, %v7503_v37  ;;  %v10255_v37 = vld [vmem:[#allocation2 + $0x18d] sm:$0xff]  ;;  %v10259_v7 = vld [vmem:[#allocation2 + $0x1a5] sm:$0xff] }
 0x22b   : > { %1312 = vst.msk [vmem:[#allocation2 + $0x1f0] sm:$0xff] %vm1249_vm1, %v1239_v3  ;;  %11227 = vst [vmem:[#allocation11_spill] sm:$0xff] %v10255_v37  ;;  %v10267_v3 = vld [vmem:[#allocation2 + $0x1d5] sm:$0xff] }
 0x22c   : > { %11228 = vst [vmem:[#allocation12_spill] sm:$0xff] %v10259_v7  ;;  %11230 = vst [vmem:[#allocation14_spill] sm:$0xff] %v10267_v3 }
 0x22d   : > { %8281 = vmatmul.mubr.msk.f32.gmra.mrb[6].mxu1 %vm1249_vm1, %v10228_v38 }
 0x22e   : > { %8287 = vmatprep.mubr.msk.f32.mxu1 %vm1249_vm1, %v2490_v12  ;;  %v7513_v12 = vld [vmem:[%s11200_s3 + $0xb0] sm:$0xff] }
 0x22f   : > { %v8910_v58 = vpack.c.bf16 %v7514_v25, %v7513_v12  ;;  %v10294_v12 = vld [vmem:[#allocation2 + $0x19a] sm:$0xff]  ;;  %v10302_v25 = vld [vmem:[#allocation2 + $0x1ca] sm:$0xff] }
 0x230   : > { %11232 = vst [vmem:[#allocation16_spill] sm:$0xff] %v10294_v12 }
 0x231   : > { %8288 = vmatmul.mubr.msk.f32.vlgmr.msra.gmra.mrb[0].mxu1 %vm1249_vm1, %v10242_v4 }
 0x232   : > { %8905 = vmatpush3.bf16.msra.mxu1 %v8902_v18  ;;  %8290 = vmatprep.mubr.msk.f32.mxu1 %vm1249_vm1, %v10246_v62  ;;  %v10263_v18 = vld [vmem:[#allocation2 + $0x1bd] sm:$0xff] }
 0x233   : > { %8907 = vmatprep.subr.bf16.mxu1 %v8906_v27  ;;  %11229 = vst [vmem:[#allocation13_spill] sm:$0xff] %v10263_v18 }
 0x235   : > { %8291 = vmatmul.mubr.msk.f32.gmra.mrb[2].mxu1 %vm1249_vm1, %v10251_v10 }
 0x236   : > { %8293 = vmatprep.mubr.msk.f32.mxu1 %vm1249_vm1, %v10255_v37  ;;  %v10286_v37 = vld [vmem:[#allocation2 + $0x16a] sm:$0xff] }
 0x239   : > { %8294 = vmatmul.mubr.msk.f32.gmra.mrb[4].mxu1 %vm1249_vm1, %v10259_v7  ;;  %v10278_v7 = vld [vmem:[#allocation2 + $0x13a] sm:$0xff] }
 0x23a   : > { %8296 = vmatprep.mubr.msk.f32.mxu1 %vm1249_vm1, %v10263_v18  ;;  %v10282_v18 = vld [vmem:[#allocation2 + $0x152] sm:$0xff] }
 0x23d   : > { %8297 = vmatmul.mubr.msk.f32.gmra.mrb[6].mxu1 %vm1249_vm1, %v10267_v3  ;;  %v10290_v3 = vld [vmem:[#allocation2 + $0x182] sm:$0xff] }
 0x23e   : > { %8303 = vmatprep.mubr.msk.f32.mxu1 %vm1249_vm1, %v2638_v33  ;;  %11231 = vst [vmem:[#allocation15_spill] sm:$0xff] %v10290_v3  ;;  %v7523_v33 = vld [vmem:[%s11200_s3 + $0xc0] sm:$0xff] }
 0x241   : > { %8304 = vmatmul.mubr.msk.f32.vlgmr.msra.gmra.mrb[0].mxu1 %vm1249_vm1, %v10278_v7 }
 0x242   : > { %8909 = vmatpush3.bf16.msra.mxu1 %v8906_v27  ;;  %8306 = vmatprep.mubr.msk.f32.mxu1 %vm1249_vm1, %v10282_v18  ;;  %v10298_v27 = vld [vmem:[#allocation2 + $0x1b2] sm:$0xff] }
 0x243   : > { %8911 = vmatprep.subr.bf16.mxu1 %v8910_v58 }
 0x245   : > { %8307 = vmatmul.mubr.msk.f32.gmra.mrb[2].mxu1 %vm1249_vm1, %v10286_v37 }
 0x246   : > { %8309 = vmatprep.mubr.msk.f32.mxu1 %vm1249_vm1, %v10290_v3  ;;  %v7524_v3 = vld [vmem:[%s11200_s3 + $0xc8] sm:$0xff] }
 0x249   : > { %8310 = vmatmul.mubr.msk.f32.gmra.mrb[4].mxu1 %vm1249_vm1, %v10294_v12  ;;  %v8914_v12 = vpack.c.bf16 %v7524_v3, %v7523_v33  ;;  %v493_v3 = vld [vmem:[%s9551_s25 + $0x430] sm:$0xff]  ;;  %v11240_v33 = vld [vmem:[#allocation13_spill] sm:$0xff] }
 0x24a   : > { %8312 = vmatprep.mubr.msk.f32.mxu1 %vm1249_vm1, %v10298_v27 }
 0x24d   : > { %8313 = vmatmul.mubr.msk.f32.gmra.mrb[6].mxu1 %vm1249_vm1, %v10302_v25 }
 0x24e   : > { %8319 = vmatprep.mubr.msk.f32.mxu1 %vm1249_vm1, %v9930_v54  ;;  %v10326_v54 = vld [vmem:[#allocation2 + $0xc0] sm:$0xff] }
 0x251   : > { %8320 = vmatmul.mubr.msk.f32.vlgmr.msra.gmra.mrb[0].mxu1 %vm1249_vm1, %v9936_v57  ;;  %v7533_v57 = vld [vmem:[%s11200_s3 + $0xd0] sm:$0xff] }
 0x252   : > { %8913 = vmatpush3.bf16.msra.mxu1 %v8910_v58  ;;  %8322 = vmatprep.mubr.msk.f32.mxu1 %vm1249_vm1, %v9941_v60  ;;  %v7534_v60 = vld [vmem:[%s11200_s3 + $0xd8] sm:$0xff] }
 0x253   : > { %8915 = vmatprep.subr.bf16.mxu1 %v8914_v12 }
 0x255   : > { %8323 = vmatmul.mubr.msk.f32.gmra.mrb[2].mxu1 %vm1249_vm1, %v9947_v0  ;;  %v8918_v0 = vpack.c.bf16 %v7534_v60, %v7533_v57  ;;  %v3979_v57 = vld [vmem:[#allocation2 + $0x1ed] sm:$0xff] }
 0x256   : > { %8325 = vmatprep.mubr.msk.f32.mxu1 %vm1249_vm1, %v9951_v2  ;;  %v10380_v2 = vld [vmem:[#allocation2 + $0xc1] sm:$0xff] }
 0x259   : > { %8326 = vmatmul.mubr.msk.f32.gmra.mrb[4].mxu1 %vm1249_vm1, %v9957_v6  ;;  %v7553_v6 = vld [vmem:[%s11200_s3 + $0xf0] sm:$0xff] }
 0x25a   : > { %8328 = vmatprep.mubr.msk.f32.mxu1 %vm1249_vm1, %v9961_v9  ;;  %v7554_v9 = vld [vmem:[%s11200_s3 + $0xf8] sm:$0xff] }
 0x25d   : > { %8329 = vmatmul.mubr.msk.f32.gmra.mrb[6].mxu1 %vm1249_vm1, %v10326_v54 }
 0x25e   : > { %8335 = vmatprep.mubr.msk.f32.mxu1 %vm1249_vm1, %v9846_v17  ;;  %v10350_v17 = vld [vmem:[#allocation2 + $0xcc] sm:$0xff] }
 0x261   : > { %8336 = vmatmul.mubr.msk.f32.vlgmr.msra.gmra.mrb[0].mxu1 %vm1249_vm1, %v9859_v31  ;;  %v7543_v31 = vld [vmem:[%s11200_s3 + $0xe0] sm:$0xff] }
 0x262   : > { %8917 = vmatpush3.bf16.msra.mxu1 %v8914_v12  ;;  %8338 = vmatprep.mubr.msk.f32.mxu1 %vm1249_vm1, %v9874_v48  ;;  %v7544_v48 = vld [vmem:[%s11200_s3 + $0xe8] sm:$0xff]  ;;  %v11239_v12 = vld [vmem:[#allocation12_spill] sm:$0xff] }
 0x263   : > { %8919 = vmatprep.subr.bf16.mxu1 %v8918_v0 }
 0x265   : > { %8339 = vmatmul.mubr.msk.f32.gmra.mrb[2].mxu1 %vm1249_vm1, %v9887_v63  ;;  %v8922_v63 = vpack.c.bf16 %v7544_v48, %v7543_v31  ;;  %v11243_v31 = vld [vmem:[#allocation16_spill] sm:$0xff] }
 0x266   : > { %8341 = vmatprep.mubr.msk.f32.mxu1 %vm1249_vm1, %v9897_v13  ;;  %v7654_v13 = vld [vmem:[%s11202_s5 + $0x20] sm:$0xff]  ;;  %v4269_v48 = vld [vmem:[#allocation2 + $0x30] sm:$0xff] }
 0x269   : > { %8342 = vmatmul.mubr.msk.f32.gmra.mrb[4].mxu1 %vm1249_vm1, %v9907_v29  ;;  %v7655_v29 = vld [vmem:[%s11202_s5 + $0x28] sm:$0xff] }
 0x26a   : > { %8344 = vmatprep.mubr.msk.f32.mxu1 %vm1249_vm1, %v9917_v44  ;;  %v8967_v44 = vpack.c.bf16 %v7655_v29, %v7654_v13  ;;  %v4270_v13 = vld [vmem:[#allocation2 + $0x48] sm:$0xff]  ;;  %v4273_v29 = vld [vmem:[#allocation2 + $0x90] sm:$0xff] }
 0x26c   : > { %8968 = vmatpush3.bf16.msra.mxu0 %v8967_v44  ;;  %v4274_v44 = vld [vmem:[#allocation2 + $0xa8] sm:$0xff] }
 0x26d   : > { %8345 = vmatmul.mubr.msk.f32.gmra.mrb[6].mxu1 %vm1249_vm1, %v10350_v17 }
 0x26e   : > { %8351 = vmatprep.mubr.msk.f32.mxu1 %vm1249_vm1, %v9973_v20  ;;  %v11233_v20 = vmov 0.0|0.0  }
 0x26f   : > { %8969 = vmatprep.subr.bf16.mxu0 %v11233_v20 }
 0x271   : > { %8352 = vmatmul.mubr.msk.f32.vlgmr.msra.gmra.mrb[0].mxu1 %vm1249_vm1, %v9977_v22  ;;  %v8926_v22 = vpack.c.bf16 %v7554_v9, %v7553_v6  ;;  %v4276_v6 = vld [vmem:[#allocation2 + $0xd8] sm:$0xff]  ;;  %v7633_v9 = vld [vmem:[%s11200_s3 + $0x170] sm:$0xff] }
 0x272   : > { %8921 = vmatpush3.bf16.msra.mxu1 %v8918_v0  ;;  %8354 = vmatprep.mubr.msk.f32.mxu1 %vm1249_vm1, %v9981_v24  ;;  %v10405_v24 = vld [vmem:[#allocation2 + $0xcd] sm:$0xff] }
 0x273   : > { %8923 = vmatprep.subr.bf16.mxu1 %v8922_v63  ;;  %v11242_v0 = vld [vmem:[#allocation15_spill] sm:$0xff] }
 0x275   : > { %8355 = vmatmul.mubr.msk.f32.gmra.mrb[2].mxu1 %vm1249_vm1, %v9985_v26  ;;  %v7563_v26 = vld [vmem:[%s11200_s3 + $0x100] sm:$0xff] }
 0x276   : > { %8357 = vmatprep.mubr.msk.f32.mxu1 %vm1249_vm1, %v9989_v16  ;;  %v7564_v16 = vld [vmem:[%s11200_s3 + $0x108] sm:$0xff] }
 0x279   : > { %8358 = vmatmul.mubr.msk.f32.gmra.mrb[4].mxu1 %vm1249_vm1, %v9993_v32  ;;  %v8930_v32 = vpack.c.bf16 %v7564_v16, %v7563_v26  ;;  %v4417_v26 = vld [vmem:[#allocation2 + $0x3c] sm:$0xff] }
 0x27a   : > { %8360 = vmatprep.mubr.msk.f32.mxu1 %vm1249_vm1, %v9997_v34  ;;  %v10429_v34 = vld [vmem:[#allocation2 + $0xc2] sm:$0xff] }
 0x27d   : > { %8361 = vmatmul.mubr.msk.f32.gmra.mrb[6].mxu1 %vm1249_vm1, %v10380_v2 }
 0x27e   : > { %8367 = vmatprep.mubr.msk.f32.mxu1 %vm1249_vm1, %v10008_v42  ;;  %v7573_v42 = vld [vmem:[%s11200_s3 + $0x110] sm:$0xff] }
 0x281   : > { %8368 = vmatmul.mubr.msk.f32.vlgmr.msra.gmra.mrb[0].mxu1 %vm1249_vm1, %v10012_v45  ;;  %v7574_v45 = vld [vmem:[%s11200_s3 + $0x118] sm:$0xff] }
 0x282   : > { %8925 = vmatpush3.bf16.msra.mxu1 %v8922_v63  ;;  %8370 = vmatprep.mubr.msk.f32.mxu1 %vm1249_vm1, %v10016_v47  ;;  %v8934_v47 = vpack.c.bf16 %v7574_v45, %v7573_v42  ;;  %v4419_v42 = vld [vmem:[#allocation2 + $0x6c] sm:$0xff]  ;;  %v4421_v45 = vld [vmem:[#allocation2 + $0x9c] sm:$0xff] }
 0x283   : > { %8927 = vmatprep.subr.bf16.mxu1 %v8926_v22 }
 0x285   : > { %8371 = vmatmul.mubr.msk.f32.gmra.mrb[2].mxu1 %vm1249_vm1, %v10021_v51  ;;  %v3535_v51 = vld [vmem:[#allocation2 + $0x1e0] sm:$0xff] }
 0x286   : > { %8373 = vmatprep.mubr.msk.f32.mxu1 %vm1249_vm1, %v10025_v55  ;;  %v7583_v55 = vld [vmem:[%s11200_s3 + $0x120] sm:$0xff] }
 0x289   : > { %8374 = vmatmul.mubr.msk.f32.gmra.mrb[4].mxu1 %vm1249_vm1, %v10031_v59  ;;  %v7584_v59 = vld [vmem:[%s11200_s3 + $0x128] sm:$0xff] }
 0x28a   : > { %8376 = vmatprep.mubr.msk.f32.mxu1 %vm1249_vm1, %v10035_v1  ;;  %v8938_v1 = vpack.c.bf16 %v7584_v59, %v7583_v55  ;;  %v7643_v55 = vld [vmem:[%s11200_s3 + $0x180] sm:$0xff]  ;;  %v7644_v59 = vld [vmem:[%s11200_s3 + $0x188] sm:$0xff] }
 0x28d   : > { %8377 = vmatmul.mubr.msk.f32.gmra.mrb[6].mxu1 %vm1249_vm1, %v10405_v24 }
 0x28e   : > { %8383 = vmatprep.mubr.msk.f32.mxu1 %vm1249_vm1, %v10048_v15  ;;  %v3683_v15 = vld [vmem:[#allocation2 + $0x1ec] sm:$0xff] }
 0x291   : > { %8384 = vmatmul.mubr.msk.f32.vlgmr.msra.gmra.mrb[0].mxu1 %vm1249_vm1, %v10054_v21  ;;  %v7593_v21 = vld [vmem:[%s11200_s3 + $0x130] sm:$0xff] }
 0x292   : > { %8929 = vmatpush3.bf16.msra.mxu1 %v8926_v22  ;;  %8386 = vmatprep.mubr.msk.f32.mxu1 %vm1249_vm1, %v10058_v28  ;;  %v7594_v28 = vld [vmem:[%s11200_s3 + $0x138] sm:$0xff] }
 0x293   : > { %8931 = vmatprep.subr.bf16.mxu1 %v8930_v32  ;;  %v7634_v22 = vld [vmem:[%s11200_s3 + $0x178] sm:$0xff] }
 0x294   : > { %v8958_v16 = vpack.c.bf16 %v7634_v22, %v7633_v9 }
 0x295   : > { %8387 = vmatmul.mubr.msk.f32.gmra.mrb[2].mxu1 %vm1249_vm1, %v10064_v35  ;;  %v7656_v35 = vld [vmem:[%s11202_s5 + $0x30] sm:$0xff] }
 0x296   : > { %8389 = vmatprep.mubr.msk.f32.mxu1 %vm1249_vm1, %v10068_v39  ;;  %v7657_v39 = vld [vmem:[%s11202_s5 + $0x38] sm:$0xff] }
 0x299   : > { %8390 = vmatmul.mubr.msk.f32.gmra.mrb[4].mxu1 %vm1249_vm1, %v10074_v43  ;;  %v486_v43 = vld [vmem:[%s9551_s25 + $0x3f8] sm:$0xff] }
 0x29a   : > { %8392 = vmatprep.mubr.msk.f32.mxu1 %vm1249_vm1, %v10078_v50  ;;  %v8970_v50 = vpack.c.bf16 %v7657_v39, %v7656_v35  ;;  %7396 = vmatprep.mubr.msk.f32.mxu0 %vm535_vm0, %v486_v43  ;;  %v4569_v35 = vld [vmem:[#allocation2 + $0x91] sm:$0xff]  ;;  %v4570_v39 = vld [vmem:[#allocation2 + $0xa9] sm:$0xff]  ;;  %v4572_v43 = vld [vmem:[#allocation2 + $0xd9] sm:$0xff] }
 0x29c   : > { %8971 = vmatpush3.bf16.msra.mxu0 %v8970_v50  ;;  %v4713_v50 = vld [vmem:[#allocation2 + $0x3d] sm:$0xff] }
 0x29d   : > { %8393 = vmatmul.mubr.msk.f32.gmra.mrb[6].mxu1 %vm1249_vm1, %v10429_v34  ;;  %8972 = vmatprep.subr.bf16.mxu0 %v11233_v20 }
 0x29e   : > { %8399 = vmatprep.mubr.msk.f32.mxu1 %vm1249_vm1, %v10093_v5  ;;  %v485_v5 = vld [vmem:[%s9551_s25 + $0x3f0] sm:$0xff] }
 0x29f   : > { %1132 = vmatmul.mubr.f32.gmra.mrb[126].mxu0 %v485_v5  ;;  %v4714_v5 = vld [vmem:[#allocation2 + $0x55] sm:$0xff] }
 0x2a1   : > { %8400 = vmatmul.mubr.msk.f32.vlgmr.msra.gmra.mrb[0].mxu1 %vm1249_vm1, %v10102_v30  ;;  %v488_v30 = vld [vmem:[%s9551_s25 + $0x408] sm:$0xff] }
 0x2a2   : > { %8933 = vmatpush3.bf16.msra.mxu1 %v8930_v32  ;;  %8402 = vmatprep.mubr.msk.f32.mxu1 %vm1249_vm1, %v10112_v61  ;;  %v8942_v61 = vpack.c.bf16 %v7594_v28, %v7593_v21  ;;  %v4418_v32 = vld [vmem:[#allocation2 + $0x54] sm:$0xff]  ;;  %v4566_v21 = vld [vmem:[#allocation2 + $0x49] sm:$0xff]  ;;  %v4567_v28 = vld [vmem:[#allocation2 + $0x61] sm:$0xff] }
 0x2a3   : > { %8935 = vmatprep.subr.bf16.mxu1 %v8934_v47  ;;  %7397 = vmatprep.mubr.msk.f32.mxu0 %vm535_vm0, %v488_v30  ;;  %v4715_v30 = vld [vmem:[#allocation2 + $0x6d] sm:$0xff] }
 0x2a5   : > { %8403 = vmatmul.mubr.msk.f32.gmra.mrb[2].mxu1 %vm1249_vm1, %v10122_v11  ;;  %v487_v11 = vld [vmem:[%s9551_s25 + $0x400] sm:$0xff] }
 0x2a6   : > { %8405 = vmatprep.mubr.msk.f32.mxu1 %vm1249_vm1, %v10132_v8  ;;  %v490_v8 = vld [vmem:[%s9551_s25 + $0x418] sm:$0xff]  ;;  %1137 = vmatmul.mubr.f32.gmra.mrb[128].mxu0 %v487_v11 }
 0x2a7   : > { %7398 = vmatprep.mubr.msk.f32.mxu0 %vm535_vm0, %v490_v8  ;;  %v4717_v11 = vld [vmem:[#allocation2 + $0x9d] sm:$0xff]  ;;  %v4720_v8 = vld [vmem:[#allocation2 + $0xe5] sm:$0xff] }
 0x2a9   : > { %8406 = vmatmul.mubr.msk.f32.gmra.mrb[4].mxu1 %vm1249_vm1, %v10142_v49  ;;  %v11234_v49 = vld [vmem:[#allocation7_spill] sm:$0xff] }
 0x2aa   : > { %8408 = vmatprep.mubr.msk.f32.mxu1 %vm1249_vm1, %v10152_v23  ;;  %v489_v23 = vld [vmem:[%s9551_s25 + $0x410] sm:$0xff] }
 0x2ab   : > { %1142 = vmatmul.mubr.f32.gmra.mrb[130].mxu0 %v489_v23  ;;  %v4862_v23 = vld [vmem:[#allocation2 + $0x4a] sm:$0xff] }
 0x2ad   : > { %8409 = vmatmul.mubr.msk.f32.gmra.mrb[6].mxu1 %vm1249_vm1, %v3535_v51  ;;  %v4424_v51 = vld [vmem:[#allocation2 + $0xe4] sm:$0xff] }
 0x2ae   : > { %8415 = vmatprep.mubr.msk.f32.mxu1 %vm1249_vm1, %v10164_v40  ;;  %v11235_v40 = vld [vmem:[#allocation8_spill] sm:$0xff] }
 0x2b1   : > { %8416 = vmatmul.mubr.msk.f32.vlgmr.msra.gmra.mrb[0].mxu1 %vm1249_vm1, %v10168_v41  ;;  %v492_v41 = vld [vmem:[%s9551_s25 + $0x428] sm:$0xff] }
 0x2b2   : > { %8937 = vmatpush3.bf16.msra.mxu1 %v8934_v47  ;;  %8418 = vmatprep.mubr.msk.f32.mxu1 %vm1249_vm1, %v10173_v46  ;;  %v11236_v46 = vld [vmem:[#allocation9_spill] sm:$0xff] }
 0x2b3   : > { %8939 = vmatprep.subr.bf16.mxu1 %v8938_v1  ;;  %7399 = vmatprep.mubr.msk.f32.mxu0 %vm535_vm0, %v492_v41  ;;  %v4422_v47 = vld [vmem:[#allocation2 + $0xb4] sm:$0xff] }
 0x2b4   : > { %v4864_v41 = vld [vmem:[#allocation2 + $0x7a] sm:$0xff] }
 0x2b5   : > { %8419 = vmatmul.mubr.msk.f32.gmra.mrb[2].mxu1 %vm1249_vm1, %v10177_v52  ;;  %v491_v52 = vld [vmem:[%s9551_s25 + $0x420] sm:$0xff] }
 0x2b6   : > { %8421 = vmatprep.mubr.msk.f32.mxu1 %vm1249_vm1, %v10181_v53  ;;  %v11237_v53 = vld [vmem:[#allocation10_spill] sm:$0xff]  ;;  %1147 = vmatmul.mubr.f32.gmra.mrb[132].mxu0 %v491_v52 }
 0x2b7   : > { %v4868_v52 = vld [vmem:[#allocation2 + $0xda] sm:$0xff] }
 0x2b9   : > { %8422 = vmatmul.mubr.msk.f32.gmra.mrb[4].mxu1 %vm1249_vm1, %v10185_v14  ;;  %v494_v14 = vld [vmem:[%s9551_s25 + $0x438] sm:$0xff] }
 0x2ba   : > { %8424 = vmatprep.mubr.msk.f32.mxu1 %vm1249_vm1, %v10189_v56  ;;  %v3831_v56 = vld [vmem:[#allocation2 + $0x1e1] sm:$0xff]  ;;  %7400 = vmatprep.mubr.msk.f32.mxu0 %vm535_vm0, %v494_v14 }
 0x2bb   : > { %1152 = vmatmul.mubr.f32.gmra.mrb[134].mxu0 %v493_v3  ;;  %v495_v14 = vld [vmem:[%s9551_s25 + $0x440] sm:$0xff]  ;;  %v500_v3 = vld [vmem:[%s9551_s25 + $0x468] sm:$0xff] }
 0x2bd   : > { %8425 = vmatmul.mubr.msk.f32.gmra.mrb[6].mxu1 %vm1249_vm1, %v3683_v15  ;;  %v8962_v15 = vpack.c.bf16 %v7644_v59, %v7643_v55  ;;  %v5049_v55 = vld [vmem:[%s11202_s5] sm:$0xff]  ;;  %v5050_v59 = vld [vmem:[%s11202_s5 + $0x8] sm:$0xff] }
 0x2be   : > { %8431 = vmatprep.mubr.msk.f32.mxu1 %vm1249_vm1, %v10201_v19  ;;  %v7603_v19 = vld [vmem:[%s11200_s3 + $0x140] sm:$0xff] }
 0x2c1   : > { %8432 = vmatmul.mubr.msk.f32.vlgmr.msra.gmra.mrb[0].mxu1 %vm1249_vm1, %v10205_v36  ;;  %v7604_v36 = vld [vmem:[%s11200_s3 + $0x148] sm:$0xff] }
 0x2c2   : > { %8941 = vmatpush3.bf16.msra.mxu1 %v8938_v1  ;;  %8434 = vmatprep.mubr.msk.f32.mxu1 %vm1249_vm1, %v11234_v49  ;;  %v8946_v58 = vpack.c.bf16 %v7604_v36, %v7603_v19  ;;  %v4565_v1 = vld [vmem:[#allocation2 + $0x31] sm:$0xff]  ;;  %v7696_v36 = vld [vmem:[%s11202_s5 + $0x128] sm:$0xff] }
 0x2c3   : > { %8943 = vmatprep.subr.bf16.mxu1 %v8942_v61  ;;  %v4861_v49 = vld [vmem:[#allocation2 + $0x32] sm:$0xff] }
 0x2c4   : > { %v497_v19 = vld [vmem:[%s9551_s25 + $0x450] sm:$0xff] }
 0x2c5   : > { %8435 = vmatmul.mubr.msk.f32.gmra.mrb[2].mxu1 %vm1249_vm1, %v11235_v40  ;;  %v4863_v40 = vld [vmem:[#allocation2 + $0x62] sm:$0xff] }
 0x2c6   : > { %8437 = vmatprep.mubr.msk.f32.mxu1 %vm1249_vm1, %v11236_v46  ;;  %v4866_v46 = vld [vmem:[#allocation2 + $0xaa] sm:$0xff] }
 0x2c9   : > { %8438 = vmatmul.mubr.msk.f32.gmra.mrb[4].mxu1 %vm1249_vm1, %v11237_v53  ;;  %v496_v53 = vld [vmem:[%s9551_s25 + $0x448] sm:$0xff] }
 0x2ca   : > { %8440 = vmatprep.mubr.msk.f32.mxu1 %vm1249_vm1, %v10228_v38  ;;  %v11238_v38 = vld [vmem:[#allocation11_spill] sm:$0xff]  ;;  %7401 = vmatprep.mubr.msk.f32.mxu0 %vm535_vm0, %v496_v53  ;;  %v7660_v53 = vld [vmem:[%s11202_s5 + $0x40] sm:$0xff] }
 0x2cb   : > { %1157 = vmatmul.mubr.f32.gmra.mrb[136].mxu0 %v495_v14  ;;  %v7661_v14 = vld [vmem:[%s11202_s5 + $0x48] sm:$0xff] }
 0x2cd   : > { %8441 = vmatmul.mubr.msk.f32.gmra.mrb[6].mxu1 %vm1249_vm1, %v3831_v56  ;;  %v498_v56 = vld [vmem:[%s9551_s25 + $0x458] sm:$0xff] }
 0x2ce   : > { %8447 = vmatprep.mubr.msk.f32.mxu1 %vm1249_vm1, %v10242_v4  ;;  %v11241_v4 = vld [vmem:[#allocation14_spill] sm:$0xff]  ;;  %7402 = vmatprep.mubr.msk.f32.mxu0 %vm535_vm0, %v498_v56 }
 0x2cf   : > { %1162 = vmatmul.mubr.f32.gmra.mrb[138].mxu0 %v497_v19 }
 0x2d0   : > { %7403 = vmatprep.mubr.msk.f32.mxu0 %vm535_vm0, %v500_v3 }
 0x2d1   : > { %8448 = vmatmul.mubr.msk.f32.vlgmr.msra.gmra.mrb[0].mxu1 %vm1249_vm1, %v10246_v62  ;;  %v7613_v62 = vld [vmem:[%s11200_s3 + $0x150] sm:$0xff] }
 0x2d2   : > { %8945 = vmatpush3.bf16.msra.mxu1 %v8942_v61  ;;  %8450 = vmatprep.mubr.msk.f32.mxu1 %vm1249_vm1, %v10251_v10  ;;  %v7614_v10 = vld [vmem:[%s11200_s3 + $0x158] sm:$0xff]  ;;  %v4716_v61 = vld [vmem:[#allocation2 + $0x85] sm:$0xff] }
 0x2d3   : > { %8947 = vmatprep.subr.bf16.mxu1 %v8946_v58  ;;  %v8950_v60 = vpack.c.bf16 %v7614_v10, %v7613_v62  ;;  %v501_v62 = vld [vmem:[%s9551_s25 + $0x470] sm:$0xff]  ;;  %v11244_v10 = vmov 0.0  }
 0x2d5   : > { %8451 = vmatmul.mubr.msk.f32.gmra.mrb[2].mxu1 %vm1249_vm1, %v11238_v38  ;;  %v499_v38 = vld [vmem:[%s9551_s25 + $0x460] sm:$0xff] }
 0x2d6   : > { %8453 = vmatprep.mubr.msk.f32.mxu1 %vm1249_vm1, %v11239_v12  ;;  %1167 = vmatmul.mubr.f32.gmra.mrb[140].mxu0 %v499_v38  ;;  %v7697_v12 = vld [vmem:[%s11202_s5 + $0x130] sm:$0xff] }
 0x2d7   : > { %v7717_v38 = vld [vmem:[%s11202_s5 + $0x1b0] sm:$0xff] }
 0x2d9   : > { %8454 = vmatmul.mubr.msk.f32.gmra.mrb[4].mxu1 %vm1249_vm1, %v11240_v33  ;;  %v7698_v33 = vld [vmem:[%s11202_s5 + $0x138] sm:$0xff] }
 0x2da   : > { %8456 = vmatprep.mubr.msk.f32.mxu1 %vm1249_vm1, %v11241_v4  ;;  %v502_v4 = vld [vmem:[%s9551_s25 + $0x478] sm:$0xff]  ;;  %s345_s25 = scalar_lea.vmem [#allocation4], %s7328_s23 }
 0x2db   : > { %7404 = vmatprep.mubr.msk.f32.mxu0 %vm535_vm0, %v502_v4  ;;  %s7229_s29 = sshll.u32 %s345_s25, 4  ;;  %s11157_s29 = int_to_ptr.vmem [resolvable:$true] %s7229_s29 }
 0x2dc   : > { %1172 = vmatmul.mubr.f32.gmra.mrb[142].mxu0 %v501_v62  ;;  %v7662_v62 = vld [vmem:[%s11202_s5 + $0x50] sm:$0xff]  ;;  %s9356_s16 = scalar_lea.vmem %s11157_s29, 64  ;;  %p9363_p0 = scmp.lt.s32.totalorder %s11157_s29, %s9361_s17 }
 0x2dd   : > { %8457 = vmatmul.mubr.msk.f32.gmra.mrb[6].mxu1 %vm1249_vm1, %v3979_v57  ;;  %v9024_v57 = vpack.c.bf16 %v7698_v33, %v7697_v12  ;;  %8563 = vmatprep.mubr.msk.f32.mxu0 %vm9422_vm2, %v11244_v10  ;;  %v7718_v12 = vld [vmem:[%s11202_s5 + $0x1b8] sm:$0xff]  ;;  %p9357_p11 = scmp.ne.s32.totalorder %s11157_s29, %s9356_s16 }
 0x2de   : > { %8463 = vmatprep.mubr.msk.f32.mxu1 %vm1249_vm1, %v10278_v7  ;;  %v4127_v7 = vld [vmem:[#allocation2 + $0x1e2] sm:$0xff] }
 0x2df   : > { %p9358_p12 = pnand %p9357_p11, %p9513_p5 }
 0x2e1   : > { %8464 = vmatmul.mubr.msk.f32.vlgmr.msra.gmra.mrb[0].mxu1 %vm1249_vm1, %v10282_v18  ;;  %v7623_v18 = vld [vmem:[%s11200_s3 + $0x160] sm:$0xff]  ;;  %p9359_p13 = pneg %p9358_p12 }
 0x2e2   : > { %8949 = vmatpush3.bf16.msra.mxu1 %v8946_v58  ;;  %8466 = vmatprep.mubr.msk.f32.mxu1 %vm1249_vm1, %v10286_v37  ;;  %v7624_v37 = vld [vmem:[%s11200_s3 + $0x168] sm:$0xff] }
 0x2e3   : > { %8951 = vmatprep.subr.bf16.mxu1 %v8950_v60  ;;  %v8954_v63 = vpack.c.bf16 %v7624_v37, %v7623_v18 }
 0x2e5   : > { %8467 = vmatmul.mubr.msk.f32.gmra.mrb[2].mxu1 %vm1249_vm1, %v11242_v0 }
 0x2e6   : > { %8469 = vmatprep.mubr.msk.f32.mxu1 %vm1249_vm1, %v11243_v31 }
 0x2e9   : > { %8470 = vmatmul.mubr.msk.f32.gmra.mrb[4].mxu1 %vm1249_vm1, %v10298_v27  ;;  %v4271_v27 = vld [vmem:[#allocation2 + $0x60] sm:$0xff] }
 0x2ea   : > { %8472 = vmatprep.mubr.msk.f32.mxu1 %vm1249_vm1, %v10302_v25  ;;  %v4272_v25 = vld [vmem:[#allocation2 + $0x78] sm:$0xff] }
 0x2ed   : > { %8473 = vmatmul.mubr.msk.f32.gmra.mrb[6].mxu1 %vm1249_vm1, %v4127_v7 }
 0x2ee   : > { %8479 = vmatprep.mubr.msk.f32.mxu1 %vm1249_vm1, %v4269_v48 }
 0x2f1   : > { %8480 = vmatmul.mubr.msk.f32.vlgmr.msra.gmra.mrb[0].mxu1 %vm1249_vm1, %v4270_v13 }
 0x2f2   : > { %8953 = vmatpush3.bf16.msra.mxu1 %v8950_v60  ;;  %8482 = vmatprep.mubr.msk.f32.mxu1 %vm1249_vm1, %v4271_v27  ;;  %v7653_v60 = vld [vmem:[%s11201_s4] ss:$0 sm:$0xff] }
 0x2f3   : > { %8955 = vmatprep.subr.bf16.mxu1 %v8954_v63 }
 0x2f5   : > { %8483 = vmatmul.mubr.msk.f32.gmra.mrb[2].mxu1 %vm1249_vm1, %v4272_v25 }
 0x2f6   : > { %8485 = vmatprep.mubr.msk.f32.mxu1 %vm1249_vm1, %v4273_v29 }
 0x2f9   : > { %8486 = vmatmul.mubr.msk.f32.gmra.mrb[4].mxu1 %vm1249_vm1, %v4274_v44 }
 0x2fa   : > { %8488 = vmatprep.mubr.msk.f32.mxu1 %vm1249_vm1, %v10326_v54  ;;  %v4420_v54 = vld [vmem:[#allocation2 + $0x84] sm:$0xff] }
 0x2fd   : > { %8489 = vmatmul.mubr.msk.f32.gmra.mrb[6].mxu1 %vm1249_vm1, %v4276_v6 }
 0x2fe   : > { %8495 = vmatprep.mubr.msk.f32.mxu1 %vm1249_vm1, %v4417_v26 }
 0x301   : > { %8496 = vmatmul.mubr.msk.f32.vlgmr.msra.gmra.mrb[0].mxu1 %vm1249_vm1, %v4418_v32 }
 0x302   : > { %8957 = vmatpush3.bf16.msra.mxu1 %v8954_v63  ;;  %8498 = vmatprep.mubr.msk.f32.mxu1 %vm1249_vm1, %v4419_v42 }
 0x303   : > { %8959 = vmatprep.subr.bf16.mxu1 %v8958_v16 }
 0x305   : > { %8499 = vmatmul.mubr.msk.f32.gmra.mrb[2].mxu1 %vm1249_vm1, %v4420_v54 }
 0x306   : > { %8501 = vmatprep.mubr.msk.f32.mxu1 %vm1249_vm1, %v4421_v45 }
 0x309   : > { %8502 = vmatmul.mubr.msk.f32.gmra.mrb[4].mxu1 %vm1249_vm1, %v4422_v47  ;;  %v7705_v47 = vld [vmem:[%s11202_s5 + $0x160] sm:$0xff] }
 0x30a   : > { %8504 = vmatprep.mubr.msk.f32.mxu1 %vm1249_vm1, %v10350_v17  ;;  %v4568_v17 = vld [vmem:[#allocation2 + $0x79] sm:$0xff] }
 0x30d   : > { %8505 = vmatmul.mubr.msk.f32.gmra.mrb[6].mxu1 %vm1249_vm1, %v4424_v51  ;;  %v7706_v51 = vld [vmem:[%s11202_s5 + $0x168] sm:$0xff] }
 0x30e   : > { %8511 = vmatprep.mubr.msk.f32.mxu1 %vm1249_vm1, %v4565_v1 }
 0x311   : > { %8512 = vmatmul.mubr.msk.f32.vlgmr.msra.gmra.mrb[0].mxu1 %vm1249_vm1, %v4566_v21 }
 0x312   : > { %8961 = vmatpush3.bf16.msra.mxu1 %v8958_v16  ;;  %8514 = vmatprep.mubr.msk.f32.mxu1 %vm1249_vm1, %v4567_v28  ;;  %v9033_v28 = vpack.c.bf16 %v7706_v51, %v7705_v47  ;;  %v7668_v47 = vld [vmem:[%s11202_s5 + $0x78] sm:$0xff] }
 0x313   : > { %8963 = vmatprep.subr.bf16.mxu1 %v8962_v15 }
 0x315   : > { %8515 = vmatmul.mubr.msk.f32.gmra.mrb[2].mxu1 %vm1249_vm1, %v4568_v17 }
 0x316   : > { %8517 = vmatprep.mubr.msk.f32.mxu1 %vm1249_vm1, %v4569_v35 }
 0x319   : > { %8518 = vmatmul.mubr.msk.f32.gmra.mrb[4].mxu1 %vm1249_vm1, %v4570_v39 }
 0x31a   : > { %8520 = vmatprep.mubr.msk.f32.mxu1 %vm1249_vm1, %v10380_v2  ;;  %v4718_v2 = vld [vmem:[#allocation2 + $0xb5] sm:$0xff] }
 0x31d   : > { %8521 = vmatmul.mubr.msk.f32.gmra.mrb[6].mxu1 %vm1249_vm1, %v4572_v43  ;;  %v8973_v43 = vpack.c.bf16 %v5050_v59, %v5049_v55 }
 0x31e   : > { %8527 = vmatprep.mubr.msk.f32.mxu1 %vm1249_vm1, %v4713_v50  ;;  %v7707_v50 = vld [vmem:[%s11202_s5 + $0x170] sm:$0xff] }
 0x321   : > { %8528 = vmatmul.mubr.msk.f32.vlgmr.msra.gmra.mrb[0].mxu1 %vm1249_vm1, %v4714_v5  ;;  %v7708_v5 = vld [vmem:[%s11202_s5 + $0x178] sm:$0xff] }
 0x322   : > { %8965 = vmatpush3.bf16.msra.mxu1 %v8962_v15  ;;  %8530 = vmatprep.mubr.msk.f32.mxu1 %vm1249_vm1, %v4715_v30 }
 0x323   : > { %9020 = vmatprep.subr.bf16.mxu1 %v11233_v20 }
 0x325   : > { %8531 = vmatmul.mubr.msk.f32.gmra.mrb[2].mxu1 %vm1249_vm1, %v4716_v61 }
 0x326   : > { %8533 = vmatprep.mubr.msk.f32.mxu1 %vm1249_vm1, %v4717_v11  ;;  %v5051_v11 = vld [vmem:[%s11202_s5 + $0x10] sm:$0xff] }
 0x329   : > { %8534 = vmatmul.mubr.msk.f32.gmra.mrb[4].mxu1 %vm1249_vm1, %v4718_v2  ;;  %v5052_v2 = vld [vmem:[%s11202_s5 + $0x18] sm:$0xff] }
 0x32a   : > { %8536 = vmatprep.mubr.msk.f32.mxu1 %vm1249_vm1, %v10405_v24  ;;  %v4865_v24 = vld [vmem:[#allocation2 + $0x92] sm:$0xff] }
 0x32d   : > { %8537 = vmatmul.mubr.msk.f32.gmra.mrb[6].mxu1 %vm1249_vm1, %v4720_v8 }
 0x32e   : > { %8543 = vmatprep.mubr.msk.f32.mxu1 %vm1249_vm1, %v4861_v49  ;;  %v9036_v49 = vpack.c.bf16 %v7708_v5, %v7707_v50 }
 0x331   : > { %8544 = vmatmul.mubr.msk.f32.vlgmr.msra.gmra.mrb[0].mxu1 %vm1249_vm1, %v4862_v23 }
 0x332   : > { %8546 = vmatprep.mubr.msk.f32.mxu1 %vm1249_vm1, %v4863_v40 }
 0x335   : > { %8547 = vmatmul.mubr.msk.f32.gmra.mrb[2].mxu1 %vm1249_vm1, %v4864_v41  ;;  %v8976_v41 = vpack.c.bf16 %v5052_v2, %v5051_v11  ;;  %v7736_v11 = vld [vmem:[%s11202_s5 + $0x228] sm:$0xff] }
 0x336   : > { %8549 = vmatprep.mubr.msk.f32.mxu1 %vm1249_vm1, %v4865_v24  ;;  %v7715_v24 = vld [vmem:[%s11202_s5 + $0x1a0] sm:$0xff] }
 0x339   : > { %8550 = vmatmul.mubr.msk.f32.gmra.mrb[4].mxu1 %vm1249_vm1, %v4866_v46  ;;  %v7716_v46 = vld [vmem:[%s11202_s5 + $0x1a8] sm:$0xff] }
 0x33a   : > { %8552 = vmatprep.mubr.msk.f32.mxu1 %vm1249_vm1, %v10429_v34  ;;  %v7695_v34 = vld [vmem:[%s11202_s5 + $0x120] sm:$0xff] }
 0x33b   : > { %v9021_v58 = vpack.c.bf16 %v7696_v36, %v7695_v34  ;;  %v9045_v36 = vpack.c.bf16 %v7716_v46, %v7715_v24 }
 0x33d   : > { %8553 = vmatmul.mubr.msk.f32.gmra.mrb[6].mxu1 %vm1249_vm1, %v4868_v52 }
 0x33e   : > { %9022 = vmatpush3.bf16.msra.mxu1 %v9021_v58  ;;  %8662 = vmatprep.mubr.msk.f32.mxu1 %vm9422_vm2, %v11244_v10  ;;  %v8979_v58 = vpack.c.bf16 %v7661_v14, %v7660_v53  ;;  %v7737_v53 = vld [vmem:[%s11202_s5 + $0x230] sm:$0xff]  ;;  %v7738_v14 = vld [vmem:[%s11202_s5 + $0x238] sm:$0xff] }
 0x33f   : > { %9023 = vmatprep.subr.bf16.mxu1 %v11233_v20 }
 0x342   : > { %9025 = vmatpush3.bf16.msra.mxu1 %v9024_v57 }
 0x343   : > { %9032 = vmatprep.subr.bf16.mxu1 %v11233_v20 }
 0x372   : > { %v1133_v56 = vpop.f32.mrb[126].mxu0 }
 0x373   : > { %v1135_v34 = vpop.f32.mrb[127].mxu0 }
 0x374   : > { %v7672_v34 = vld [vmem:[%s11202_s5 + $0x90] sm:$0xff] }
 0x379   : > { %v1138_v3 = vpop.f32.mrb[128].mxu0 }
 0x37a   : > { %v1140_v33 = vpop.f32.mrb[129].mxu0 }
 0x404   : > { %v8545_v0 = vpop.f32.mrb[0].mxu1 }
 0x405   : > { %v5017_v31 = vadd.f32 %v8545_v0, %v7653_v60  ;;  %v4962_v7 = vpop.f32.mrb[1].mxu1 }
 0x406   : > { %v5016_v18 = vadd.f32 %v7653_v60, %v4962_v7  ;;  %v9048_v7 = vpack.c.bf16 %v7718_v12, %v7717_v38  ;;  %v9072_v38 = vpack.c.bf16 %v7738_v14, %v7737_v53  ;;  %v7767_v14 = vld [vmem:[%s11202_s5 + $0x2f0] sm:$0xff] }
 0x407   : > { %v5025_v37 = vmax.f32 %v5017_v31, 0.0 }
 0x408   : > { %v5024_v48 = vmax.f32 %v5016_v18, 0.0  ;;  %v8548_v63 = vpop.f32.mrb[2].mxu1 }
 0x409   : > { %5034 = vst.msk [vmem:[#allocation3 + $0x8] sm:$0xff] %vm5032_vm3, %v5025_v37  ;;  %v5019_v13 = vadd.f32 %v8548_v63, %v7653_v60  ;;  %v4972_v27 = vpop.f32.mrb[3].mxu1  ;;  %v7726_v63 = vld [vmem:[%s11202_s5 + $0x1e8] sm:$0xff] }
 0x40a   : > { %5033 = vst.msk [vmem:[#allocation3] sm:$0xff] %vm5032_vm3, %v5024_v48  ;;  %v5018_v25 = vadd.f32 %v7653_v60, %v4972_v27  ;;  %v7725_v48 = vld [vmem:[%s11202_s5 + $0x1e0] sm:$0xff] }
 0x40b   : > { %v5027_v29 = vmax.f32 %v5019_v13, 0.0  ;;  %v1143_v13 = vpop.f32.mrb[130].mxu0 }
 0x40c   : > { %v5026_v44 = vmax.f32 %v5018_v25, 0.0  ;;  %v8551_v6 = vpop.f32.mrb[4].mxu1  ;;  %v7665_v25 = vld [vmem:[%s11202_s5 + $0x60] sm:$0xff]  ;;  %v7748_v13 = vld [vmem:[%s11202_s5 + $0x278] sm:$0xff] }
 0x40d   : > { %5036 = vst.msk [vmem:[#allocation3 + $0x18] sm:$0xff] %vm5032_vm3, %v5027_v29  ;;  %v5021_v9 = vadd.f32 %v8551_v6, %v7653_v60  ;;  %v4982_v22 = vpop.f32.mrb[5].mxu1  ;;  %v7666_v29 = vld [vmem:[%s11202_s5 + $0x68] sm:$0xff] }
 0x40e   : > { %5035 = vst.msk [vmem:[#allocation3 + $0x10] sm:$0xff] %vm5032_vm3, %v5026_v44  ;;  %v5020_v26 = vadd.f32 %v7653_v60, %v4982_v22  ;;  %v1145_v44 = vpop.f32.mrb[131].mxu0  ;;  %v7728_v22 = vld [vmem:[%s11202_s5 + $0x1f8] sm:$0xff] }
 0x40f   : > { %v5029_v16 = vmax.f32 %v5021_v9, 0.0  ;;  %v7727_v9 = vld [vmem:[%s11202_s5 + $0x1f0] sm:$0xff]  ;;  %v7678_v44 = vld [vmem:[%s11202_s5 + $0xb8] sm:$0xff] }
 0x410   : > { %v5028_v32 = vmax.f32 %v5020_v26, 0.0  ;;  %v8554_v42 = vpop.f32.mrb[6].mxu1  ;;  %v5822_v35 = vld [vmem:[#allocation3 + $0xc] ss:$2 sm:$0x3]  ;;  %v1148_v26 = vpop.f32.mrb[132].mxu0  ;;  %v9060_v50 = vpack.c.bf16 %v7728_v22, %v7727_v9 }
 0x411   : > { %5038 = vst.msk [vmem:[#allocation3 + $0x28] sm:$0xff] %vm5032_vm3, %v5029_v16  ;;  %v4992_v54 = vpop.f32.mrb[7].mxu1  ;;  %v5054_v61 = vld [vmem:[#allocation3 + $0x1] ss:$2 sm:$0x3]  ;;  %v9057_v42 = vpack.c.bf16 %v7726_v63, %v7725_v48  ;;  %v1150_v55 = vpop.f32.mrb[133].mxu0 }
 0x412   : > { %5037 = vst.msk [vmem:[#allocation3 + $0x20] sm:$0xff] %vm5032_vm3, %v5028_v32  ;;  %v5022_v45 = vadd.f32 %v7653_v60, %v4992_v54  ;;  %v5041_v57 = vld [vmem:[#allocation3] ss:$2 sm:$0x3]  ;;  %v7663_v60 = vld [vmem:[%s11202_s5 + $0x58] sm:$0xff]  ;;  %v7667_v54 = vld [vmem:[%s11202_s5 + $0x70] sm:$0xff] }
 0x413   : > { %v8982_v37 = vpack.c.bf16 %v7663_v60, %v7662_v62  ;;  %v5213_v32 = vld [vmem:[#allocation3 + $0x2] ss:$2 sm:$0x3]  ;;  %v7747_v63 = vld [vmem:[%s11202_s5 + $0x270] sm:$0xff] }
 0x414   : > { %v5030_v1 = vmax.f32 %v5022_v45, 0.0  ;;  %v10675_v15 = vld [vmem:[#allocation3 + $0x1c] ss:$2 sm:$0x3]  ;;  %v8985_v45 = vpack.c.bf16 %v7666_v29, %v7665_v25  ;;  %v7675_v60 = vld [vmem:[%s11202_s5 + $0xa0] sm:$0xff]  ;;  %v7677_v29 = vld [vmem:[%s11202_s5 + $0xb0] sm:$0xff]  ;;  %v9084_v22 = vpack.c.bf16 %v7748_v13, %v7747_v63 }
 0x415   : > { %v5826_v21 = vrot.slane %v10675_v15, 6  ;;  %v5056_v17 = vld [vmem:[#allocation3 + $0x11] ss:$2 sm:$0x3]  ;;  %v9000_v26 = vpack.c.bf16 %v7678_v44, %v7677_v29 }
 0x416   : > { %5039 = vst.msk [vmem:[#allocation3 + $0x30] sm:$0xff] %vm5032_vm3, %v5030_v1  ;;  %v5058_v39 = vrot.slane %v5056_v17, 6  ;;  %v10697_v40 = vld [vmem:[#allocation3 + $0x10] ss:$2 sm:$0x3] }
 0x417   : > { %v5828_v30 = vsel %vm5047_vm4, %v5822_v35, %v5826_v21  ;;  %v5045_v19 = vrot.slane %v10697_v40, 6  ;;  %v5215_v18 = vld [vmem:[#allocation3 + $0x12] ss:$2 sm:$0x3] }
 0x418   : > { %8663 = vmatmul.mubr.msk.f32.vlgmr.msra.gmra.mrb[8].mxu1 %vm5032_vm3, %v5828_v30  ;;  %v5060_v8 = vsel %vm5047_vm4, %v5054_v61, %v5058_v39  ;;  %v5217_v6 = vrot.slane %v5215_v18, 6  ;;  %v5302_v16 = vld [vmem:[#allocation3 + $0x13] ss:$2 sm:$0x3]  ;;  %v8988_v30 = vpack.c.bf16 %v7668_v47, %v7667_v54  ;;  %v7735_v61 = vld [vmem:[%s11202_s5 + $0x220] sm:$0xff] }
 0x419   : > { %9034 = vmatpush3.bf16.msra.mxu1 %v9033_v28  ;;  %8564 = vmatmul.mubr.msk.f32.vlgmr.msra.gmra.mrb[144].mxu0 %vm5032_vm3, %v5060_v8  ;;  %v10695_v23 = vld [vmem:[#allocation3 + $0x21] ss:$2 sm:$0x3]  ;;  %v5048_v0 = vsel %vm5047_vm4, %v5041_v57, %v5045_v19  ;;  %v10771_v51 = vld [vmem:[#allocation3 + $0x20] ss:$2 sm:$0x3]  ;;  %v9069_v24 = vpack.c.bf16 %v7736_v11, %v7735_v61 }
 0x41a   : > { %8974 = vmatpush3.bf16.msra.mxu0 %v8973_v43  ;;  %9035 = vmatprep.subr.bf16.mxu1 %v11233_v20  ;;  %v5996_v52 = vrot.slane %v10695_v23, 6  ;;  %v10736_v31 = vld [vmem:[#allocation3 + $0x23] ss:$2 sm:$0x3]  ;;  %v5911_v1 = vrot.slane %v10771_v51, 6  ;;  %v1153_v28 = vpop.f32.mrb[134].mxu0 }
 0x41b   : > { %8975 = vmatprep.subr.bf16.mxu0 %v11233_v20  ;;  %8684 = vmatprep.mubr.msk.f32.mxu1 %vm9422_vm2, %v11244_v10  ;;  %v6166_v27 = vrot.slane %v10736_v31, 6  ;;  %v10776_v21 = vld [vmem:[#allocation3 + $0x22] ss:$2 sm:$0x3]  ;;  %v1155_v43 = vpop.f32.mrb[135].mxu0  ;;  %v7746_v57 = vld [vmem:[%s11202_s5 + $0x268] sm:$0xff] }
 0x41c   : > { %8574 = vmatprep.mubr.msk.f32.mxu0 %vm9422_vm2, %v11244_v10  ;;  %v5998_v4 = vsel %vm5047_vm4, %v5056_v17, %v5996_v52  ;;  %v5219_v17 = vsel %vm5047_vm4, %v5213_v32, %v5217_v6  ;;  %v6334_v35 = vld [vmem:[#allocation3 + $0x28] ss:$2 sm:$0x3]  ;;  %v6081_v39 = vrot.slane %v10776_v21, 6  ;;  %v10784_v5 = vsel %vm5047_vm4, %v10697_v40, %v5911_v1  ;;  %v7680_v54 = vld [vmem:[%s11202_s5 + $0xc0] sm:$0xff]  ;;  %v7757_v1 = vld [vmem:[%s11202_s5 + $0x2b0] sm:$0xff] }
 0x41d   : > { %9037 = vmatpush3.bf16.msra.mxu1 %v9036_v49  ;;  %v6168_v59 = vsel %vm5047_vm4, %v5302_v16, %v6166_v27  ;;  %v6336_v8 = vrot.slane %v6334_v35, 6  ;;  %v7670_v49 = vld [vmem:[%s11202_s5 + $0x80] sm:$0xff]  ;;  %v7671_v40 = vld [vmem:[%s11202_s5 + $0x88] sm:$0xff]  ;;  %v10807_v46 = vld [vmem:[#allocation3 + $0x18] ss:$2 sm:$0x3] }
 0x41e   : > { %8977 = vmatpush3.bf16.msra.mxu0 %v8976_v41  ;;  %9044 = vmatprep.subr.bf16.mxu1 %v11233_v20  ;;  %v10794_v2 = vsel %vm5047_vm4, %v5215_v18, %v6081_v39  ;;  %v5304_v41 = vrot.slane %v5302_v16, 6  ;;  %v8991_v52 = vpack.c.bf16 %v7671_v40, %v7670_v49  ;;  %v5300_v19 = vld [vmem:[#allocation3 + $0x3] ss:$2 sm:$0x3]  ;;  %v7756_v32 = vld [vmem:[%s11202_s5 + $0x2a8] sm:$0xff]  ;;  %v5478_v47 = vrot.slane %v10807_v46, 6 }
 0x41f   : > { %8978 = vmatprep.subr.bf16.mxu0 %v11233_v20  ;;  %v6338_v56 = vsel %vm5047_vm4, %v10807_v46, %v6336_v8  ;;  %v10828_v12 = vld [vmem:[#allocation3 + $0x14] ss:$2 sm:$0x3]  ;;  %v5387_v25 = vld [vmem:[#allocation3 + $0x4] ss:$2 sm:$0x3] }
 0x420   : > { %8685 = vmatmul.mubr.msk.f32.vlgmr.msra.gmra.mrb[10].mxu1 %vm5032_vm3, %v5998_v4  ;;  %v5306_v3 = vsel %vm5047_vm4, %v5300_v19, %v5304_v41  ;;  %v7745_v4 = vld [vmem:[%s11202_s5 + $0x260] sm:$0xff]  ;;  %v6674_v9 = vld [vmem:[#allocation3 + $0x2c] ss:$2 sm:$0x3]  ;;  %v7758_v28 = vld [vmem:[%s11202_s5 + $0x2b8] sm:$0xff] }
 0x421   : > { %8575 = vmatmul.mubr.msk.f32.vlgmr.msra.gmra.mrb[146].mxu0 %vm5032_vm3, %v5048_v0  ;;  %9046 = vmatpush3.bf16.msra.mxu1 %v9045_v36  ;;  %v7673_v36 = vld [vmem:[%s11202_s5 + $0x98] sm:$0xff]  ;;  %v7676_v0 = vld [vmem:[%s11202_s5 + $0xa8] sm:$0xff]  ;;  %v9081_v18 = vpack.c.bf16 %v7746_v57, %v7745_v4  ;;  %v7755_v16 = vld [vmem:[%s11202_s5 + $0x2a0] sm:$0xff] }
 0x422   : > { %8980 = vmatpush3.bf16.msra.mxu0 %v8979_v58  ;;  %9047 = vmatprep.subr.bf16.mxu1 %v11233_v20  ;;  %v6504_v58 = vld [vmem:[#allocation3 + $0x2a] ss:$2 sm:$0x3]  ;;  %v8994_v33 = vpack.c.bf16 %v7673_v36, %v7672_v34  ;;  %v8997_v48 = vpack.c.bf16 %v7676_v0, %v7675_v60  ;;  %v9093_v55 = vpack.c.bf16 %v7756_v32, %v7755_v16  ;;  %v7682_v39 = vld [vmem:[%s11202_s5 + $0xd0] sm:$0xff]  ;;  %v7683_v43 = vld [vmem:[%s11202_s5 + $0xd8] sm:$0xff] }
 0x423   : > { %8981 = vmatprep.subr.bf16.mxu0 %v11233_v20  ;;  %8706 = vmatprep.mubr.msk.f32.mxu1 %vm9422_vm2, %v11244_v10  ;;  %v6506_v62 = vrot.slane %v6504_v58, 6  ;;  %v5474_v35 = vld [vmem:[#allocation3 + $0x8] ss:$2 sm:$0x3]  ;;  %v9006_v11 = vpack.c.bf16 %v7683_v43, %v7682_v39  ;;  %v7765_v8 = vld [vmem:[%s11202_s5 + $0x2e0] sm:$0xff]  ;;  %v7687_v36 = vld [vmem:[%s11202_s5 + $0xf0] sm:$0xff] }
 0x424   : > { %8585 = vmatprep.mubr.msk.f32.mxu0 %vm9422_vm2, %v11244_v10  ;;  %v10908_v61 = vld [vmem:[#allocation3 + $0x19] ss:$2 sm:$0x3]  ;;  %v7766_v49 = vld [vmem:[%s11202_s5 + $0x2e8] sm:$0xff]  ;;  %v7685_v41 = vld [vmem:[%s11202_s5 + $0xe0] sm:$0xff] }
 0x425   : > { %9049 = vmatpush3.bf16.msra.mxu1 %v9048_v7  ;;  %v5391_v7 = vrot.slane %v10828_v12, 6  ;;  %v5565_v46 = vrot.slane %v10908_v61, 6  ;;  %v5561_v34 = vld [vmem:[#allocation3 + $0x9] ss:$2 sm:$0x3]  ;;  %v7690_v57 = vld [vmem:[%s11202_s5 + $0x100] sm:$0xff] }
 0x426   : > { %8983 = vmatpush3.bf16.msra.mxu0 %v8982_v37  ;;  %9056 = vmatprep.subr.bf16.mxu1 %v11233_v20  ;;  %v10849_v37 = vld [vmem:[#allocation3 + $0x1a] ss:$2 sm:$0x3]  ;;  %v10973_v13 = vld [vmem:[#allocation3 + $0x1b] ss:$2 sm:$0x3] }
 0x427   : > { %8984 = vmatprep.subr.bf16.mxu0 %v11233_v20  ;;  %v6508_v27 = vsel %vm5047_vm4, %v10849_v37, %v6506_v62  ;;  %v5393_v6 = vsel %vm5047_vm4, %v5387_v25, %v5391_v7  ;;  %v5567_v58 = vsel %vm5047_vm4, %v5561_v34, %v5565_v46  ;;  %v7691_v62 = vld [vmem:[%s11202_s5 + $0x108] sm:$0xff]  ;;  %v5652_v60 = vrot.slane %v10849_v37, 6  ;;  %v7693_v37 = vld [vmem:[%s11202_s5 + $0x118] sm:$0xff]  ;;  %v7710_v32 = vld [vmem:[%s11202_s5 + $0x180] sm:$0xff] }
 0x428   : > { %8707 = vmatmul.mubr.msk.f32.vlgmr.msra.gmra.mrb[12].mxu1 %vm5032_vm3, %v6168_v59  ;;  %v9015_v0 = vpack.c.bf16 %v7691_v62, %v7690_v57  ;;  %v7701_v25 = vld [vmem:[%s11202_s5 + $0x148] sm:$0xff]  ;;  %v5739_v29 = vrot.slane %v10973_v13, 6  ;;  %v7740_v34 = vld [vmem:[%s11202_s5 + $0x240] sm:$0xff] }
 0x429   : > { %8586 = vmatmul.mubr.msk.f32.vlgmr.msra.gmra.mrb[148].mxu0 %vm5032_vm3, %v5219_v17  ;;  %9058 = vmatpush3.bf16.msra.mxu1 %v9057_v42  ;;  %v6676_v42 = vrot.slane %v6674_v9, 6  ;;  %v7702_v9 = vld [vmem:[%s11202_s5 + $0x150] sm:$0xff]  ;;  %v7721_v39 = vld [vmem:[%s11202_s5 + $0x1c8] sm:$0xff]  ;;  %v7750_v57 = vld [vmem:[%s11202_s5 + $0x280] sm:$0xff] }
 0x42a   : > { %8986 = vmatpush3.bf16.msra.mxu0 %v8985_v45  ;;  %9059 = vmatprep.subr.bf16.mxu1 %v11233_v20  ;;  %v7681_v45 = vld [vmem:[%s11202_s5 + $0xc8] sm:$0xff] }
 0x42b   : > { %8987 = vmatprep.subr.bf16.mxu0 %v11233_v20  ;;  %8728 = vmatprep.mubr.msk.f32.mxu1 %vm9422_vm2, %v11244_v10  ;;  %v9003_v59 = vpack.c.bf16 %v7681_v45, %v7680_v54  ;;  %v6678_v17 = vsel %vm5047_vm4, %v10675_v15, %v6676_v42  ;;  %v9096_v15 = vpack.c.bf16 %v7758_v28, %v7757_v1  ;;  %v7711_v42 = vld [vmem:[%s11202_s5 + $0x188] sm:$0xff]  ;;  %v1158_v54 = vpop.f32.mrb[136].mxu0 }
 0x42c   : > { %8596 = vmatprep.mubr.msk.f32.mxu0 %vm9422_vm2, %v11244_v10  ;;  %v1160_v45 = vpop.f32.mrb[137].mxu0  ;;  %v7751_v62 = vld [vmem:[%s11202_s5 + $0x288] sm:$0xff]  ;;  %v7195_v54 = vld [vmem:[%s354_s21] sm:$0xf]  ;;  %s358_s21 = scalar_lea.vmem %s11205_s8, %s7330_s14 }
 0x42d   : > { %9061 = vmatpush3.bf16.msra.mxu1 %v9060_v50  ;;  %v5480_v50 = vsel %vm5047_vm4, %v5474_v35, %v5478_v47  ;;  %v9039_v47 = vpack.c.bf16 %v7711_v42, %v7710_v32  ;;  %v1163_v1 = vpop.f32.mrb[138].mxu0  ;;  %v7720_v35 = vld [vmem:[%s11202_s5 + $0x1c0] sm:$0xff]  ;;  %v7772_v32 = vld [vmem:[%s11202_s5 + $0x310] sm:$0xff]  ;;  %v7773_v42 = vld [vmem:[%s11202_s5 + $0x318] sm:$0xff]  ;;  %7197 = vrot.lane.b32.xlu0 %v7195_v54, %s9423_s26 }
 0x42e   : > { %8989 = vmatpush3.bf16.msra.mxu0 %v8988_v30  ;;  %9068 = vmatprep.subr.bf16.mxu1 %v11233_v20  ;;  %v6844_v30 = vld [vmem:[#allocation3 + $0x31] ss:$2 sm:$0x3]  ;;  %v1165_v28 = vpop.f32.mrb[139].mxu0 }
 0x42f   : > { %8990 = vmatprep.subr.bf16.mxu0 %v11233_v20  ;;  %v6846_v40 = vrot.slane %v6844_v30, 6  ;;  %v1168_v43 = vpop.f32.mrb[140].mxu0  ;;  %v7722_v30 = vld [vmem:[%s11202_s5 + $0x1d0] sm:$0xff] }
 0x430   : > { %8729 = vmatmul.mubr.msk.f32.vlgmr.msra.gmra.mrb[14].mxu1 %vm5032_vm3, %v6338_v56  ;;  %v7768_v56 = vld [vmem:[%s11202_s5 + $0x2f8] sm:$0xff] }
 0x431   : > { %8597 = vmatmul.mubr.msk.f32.vlgmr.msra.gmra.mrb[150].mxu0 %vm5032_vm3, %v5306_v3  ;;  %9070 = vmatpush3.bf16.msra.mxu1 %v9069_v24  ;;  %v7686_v24 = vld [vmem:[%s11202_s5 + $0xe8] sm:$0xff]  ;;  %v6848_v19 = vsel %vm5047_vm4, %v10695_v23, %v6846_v40  ;;  %v7688_v3 = vld [vmem:[%s11202_s5 + $0xf8] sm:$0xff]  ;;  %v9108_v23 = vpack.c.bf16 %v7768_v56, %v7767_v14 }
 0x432   : > { %8992 = vmatpush3.bf16.msra.mxu0 %v8991_v52  ;;  %9071 = vmatprep.subr.bf16.mxu1 %v11233_v20  ;;  %v9105_v52 = vpack.c.bf16 %v7766_v49, %v7765_v8  ;;  %v9009_v53 = vpack.c.bf16 %v7686_v24, %v7685_v41  ;;  %v11030_v8 = vld [vmem:[#allocation3 + $0x24] ss:$2 sm:$0x3]  ;;  %v7731_v24 = vld [vmem:[%s11202_s5 + $0x208] sm:$0xff] }
 0x433   : > { %8993 = vmatprep.subr.bf16.mxu0 %v11233_v20  ;;  %8750 = vmatprep.mubr.msk.f32.mxu1 %vm9422_vm2, %v11244_v10  ;;  %v7730_v41 = vld [vmem:[%s11202_s5 + $0x200] sm:$0xff]  ;;  %v6419_v56 = vld [vmem:[#allocation3 + $0x29] ss:$2 sm:$0x3] }
 0x434   : > { %8607 = vmatprep.mubr.msk.f32.mxu0 %vm9422_vm2, %v11244_v10  ;;  %v9063_v46 = vpack.c.bf16 %v7731_v24, %v7730_v41 }
 0x435   : > { %9073 = vmatpush3.bf16.msra.mxu1 %v9072_v38  ;;  %v7014_v38 = vld [vmem:[#allocation3 + $0x33] ss:$2 sm:$0x3] }
 0x436   : > { %8995 = vmatpush3.bf16.msra.mxu0 %v8994_v33  ;;  %9080 = vmatprep.subr.bf16.mxu1 %v11233_v20  ;;  %v9012_v33 = vpack.c.bf16 %v7688_v3, %v7687_v36  ;;  %v7016_v4 = vrot.slane %v7014_v38, 6  ;;  %v7741_v36 = vld [vmem:[%s11202_s5 + $0x248] sm:$0xff]  ;;  %v6421_v3 = vrot.slane %v6419_v56, 6  ;;  %v7743_v38 = vld [vmem:[%s11202_s5 + $0x258] sm:$0xff] }
 0x437   : > { %8996 = vmatprep.subr.bf16.mxu0 %v11233_v20 }
 0x438   : > { %8751 = vmatmul.mubr.msk.f32.vlgmr.msra.gmra.mrb[16].mxu1 %vm5032_vm3, %v6508_v27  ;;  %v7018_v7 = vsel %vm5047_vm4, %v10736_v31, %v7016_v4  ;;  %v7700_v27 = vld [vmem:[%s11202_s5 + $0x140] sm:$0xff] }
 0x439   : > { %8608 = vmatmul.mubr.msk.f32.vlgmr.msra.gmra.mrb[152].mxu0 %vm5032_vm3, %v5393_v6  ;;  %9082 = vmatpush3.bf16.msra.mxu1 %v9081_v18  ;;  %v5648_v18 = vld [vmem:[#allocation3 + $0xa] ss:$2 sm:$0x3]  ;;  %v9027_v44 = vpack.c.bf16 %v7701_v25, %v7700_v27  ;;  %v5735_v6 = vld [vmem:[#allocation3 + $0xb] ss:$2 sm:$0x3] }
 0x43a   : > { %8998 = vmatpush3.bf16.msra.mxu0 %v8997_v48  ;;  %9083 = vmatprep.subr.bf16.mxu1 %v11233_v20  ;;  %v7692_v48 = vld [vmem:[%s11202_s5 + $0x110] sm:$0xff]  ;;  %v5654_v63 = vsel %vm5047_vm4, %v5648_v18, %v5652_v60 }
 0x43b   : > { %8999 = vmatprep.subr.bf16.mxu0 %v11233_v20  ;;  %8772 = vmatprep.mubr.msk.f32.mxu1 %vm9422_vm2, %v11244_v10  ;;  %v9018_v31 = vpack.c.bf16 %v7693_v37, %v7692_v48  ;;  %v6759_v48 = vld [vmem:[#allocation3 + $0x30] ss:$2 sm:$0x3] }
 0x43c   : > { %8618 = vmatprep.mubr.msk.f32.mxu0 %vm9422_vm2, %v11244_v10  ;;  %v6761_v27 = vrot.slane %v6759_v48, 6  ;;  %v7762_v25 = vld [vmem:[%s11202_s5 + $0x2d0] sm:$0xff] }
 0x43d   : > { %9085 = vmatpush3.bf16.msra.mxu1 %v9084_v22  ;;  %v7703_v22 = vld [vmem:[%s11202_s5 + $0x158] sm:$0xff] }
 0x43e   : > { %9001 = vmatpush3.bf16.msra.mxu0 %v9000_v26  ;;  %9092 = vmatprep.subr.bf16.mxu1 %v11233_v20  ;;  %v5741_v26 = vsel %vm5047_vm4, %v5735_v6, %v5739_v29  ;;  %v9030_v16 = vpack.c.bf16 %v7703_v22, %v7702_v9  ;;  %v7763_v29 = vld [vmem:[%s11202_s5 + $0x2d8] sm:$0xff]  ;;  %v6929_v6 = vld [vmem:[#allocation3 + $0x32] ss:$2 sm:$0x3]  ;;  %v7770_v22 = vld [vmem:[%s11202_s5 + $0x300] sm:$0xff] }
 0x43f   : > { %9002 = vmatprep.subr.bf16.mxu0 %v11233_v20  ;;  %v9102_v9 = vpack.c.bf16 %v7763_v29, %v7762_v25 }
 0x440   : > { %8773 = vmatmul.mubr.msk.f32.vlgmr.msra.gmra.mrb[18].mxu1 %vm5032_vm3, %v6678_v17 }
 0x441   : > { %8619 = vmatmul.mubr.msk.f32.vlgmr.msra.gmra.mrb[154].mxu0 %vm5032_vm3, %v5480_v50  ;;  %9094 = vmatpush3.bf16.msra.mxu1 %v9093_v55  ;;  %v7712_v55 = vld [vmem:[%s11202_s5 + $0x190] sm:$0xff]  ;;  %v1170_v50 = vpop.f32.mrb[141].mxu0 }
 0x442   : > { %9004 = vmatpush3.bf16.msra.mxu0 %v9003_v59  ;;  %9095 = vmatprep.subr.bf16.mxu1 %v11233_v20  ;;  %v7713_v59 = vld [vmem:[%s11202_s5 + $0x198] sm:$0xff] }
 0x443   : > { %9005 = vmatprep.subr.bf16.mxu0 %v11233_v20  ;;  %8794 = vmatprep.mubr.msk.f32.mxu1 %vm9422_vm2, %v11244_v10  ;;  %v9042_v17 = vpack.c.bf16 %v7713_v59, %v7712_v55  ;;  %v9114_v55 = vpack.c.bf16 %v7773_v42, %v7772_v32 }
 0x444   : > { %8629 = vmatprep.mubr.msk.f32.mxu0 %vm9422_vm2, %v11244_v10 }
 0x445   : > { %9097 = vmatpush3.bf16.msra.mxu1 %v9096_v15  ;;  %v7723_v15 = vld [vmem:[%s11202_s5 + $0x1d8] sm:$0xff] }
 0x446   : > { %9007 = vmatpush3.bf16.msra.mxu0 %v9006_v11  ;;  %9104 = vmatprep.subr.bf16.mxu1 %v11233_v20  ;;  %v1173_v11 = vpop.f32.mrb[142].mxu0  ;;  %v9054_v40 = vpack.c.bf16 %v7723_v15, %v7722_v30 }
 0x447   : > { %9008 = vmatprep.subr.bf16.mxu0 %v11233_v20  ;;  %v1175_v49 = vpop.f32.mrb[143].mxu0 }
 0x448   : > { %8795 = vmatmul.mubr.msk.f32.vlgmr.msra.gmra.mrb[20].mxu1 %vm5032_vm3, %v6848_v19 }
 0x449   : > { %8630 = vmatmul.mubr.msk.f32.vlgmr.msra.gmra.mrb[156].mxu0 %vm5032_vm3, %v5567_v58  ;;  %9106 = vmatpush3.bf16.msra.mxu1 %v9105_v52  ;;  %v7732_v52 = vld [vmem:[%s11202_s5 + $0x210] sm:$0xff] }
 0x44a   : > { %9010 = vmatpush3.bf16.msra.mxu0 %v9009_v53  ;;  %9107 = vmatprep.subr.bf16.mxu1 %v11233_v20  ;;  %v7733_v53 = vld [vmem:[%s11202_s5 + $0x218] sm:$0xff]  ;;  %v7742_v58 = vld [vmem:[%s11202_s5 + $0x250] sm:$0xff] }
 0x44b   : > { %9011 = vmatprep.subr.bf16.mxu0 %v11233_v20  ;;  %8816 = vmatprep.mubr.msk.f32.mxu1 %vm9422_vm2, %v11244_v10  ;;  %v9066_v19 = vpack.c.bf16 %v7733_v53, %v7732_v52  ;;  %v9078_v4 = vpack.c.bf16 %v7743_v38, %v7742_v58 }
 0x44c   : > { %8640 = vmatprep.mubr.msk.f32.mxu0 %vm9422_vm2, %v11244_v10 }
 0x44d   : > { %9109 = vmatpush3.bf16.msra.mxu1 %v9108_v23  ;;  %v6423_v23 = vsel %vm5047_vm4, %v10908_v61, %v6421_v3  ;;  %v9087_v61 = vpack.c.bf16 %v7751_v62, %v7750_v57 }
 0x44e   : > { %9013 = vmatpush3.bf16.msra.mxu0 %v9012_v33  ;;  %v6589_v33 = vld [vmem:[#allocation3 + $0x2b] ss:$2 sm:$0x3] }
 0x44f   : > { %9014 = vmatprep.subr.bf16.mxu0 %v11233_v20  ;;  %v6591_v60 = vrot.slane %v6589_v33, 6 }
 0x450   : > { %8817 = vmatmul.mubr.msk.f32.vlgmr.msra.gmra.mrb[22].mxu1 %vm5032_vm3, %v7018_v7  ;;  %v7753_v7 = vld [vmem:[%s11202_s5 + $0x298] sm:$0xff] }
 0x451   : > { %8641 = vmatmul.mubr.msk.f32.vlgmr.msra.gmra.mrb[158].mxu0 %vm5032_vm3, %v5654_v63  ;;  %v6593_v18 = vsel %vm5047_vm4, %v10973_v13, %v6591_v60  ;;  %v7760_v63 = vld [vmem:[%s11202_s5 + $0x2c0] sm:$0xff] }
 0x452   : > { %9016 = vmatpush3.bf16.msra.mxu0 %v9015_v0  ;;  %8651 = vmatprep.mubr.msk.f32.mxu0 %vm9422_vm2, %v11244_v10  ;;  %v7752_v0 = vld [vmem:[%s11202_s5 + $0x290] sm:$0xff] }
 0x453   : > { %9017 = vmatprep.subr.bf16.mxu0 %v11233_v20  ;;  %v9090_v37 = vpack.c.bf16 %v7753_v7, %v7752_v0 }
 0x456   : > { %9019 = vmatpush3.bf16.msra.mxu0 %v9018_v31  ;;  %v7761_v31 = vld [vmem:[%s11202_s5 + $0x2c8] sm:$0xff] }
 0x457   : > { %9026 = vmatprep.subr.bf16.mxu0 %v11233_v20  ;;  %v9099_v13 = vpack.c.bf16 %v7761_v31, %v7760_v63 }
 0x459   : > { %8652 = vmatmul.mubr.msk.f32.vlgmr.msra.gmra.mrb[160].mxu0 %vm5032_vm3, %v5741_v26  ;;  %v7771_v26 = vld [vmem:[%s11202_s5 + $0x308] sm:$0xff] }
 0x45a   : > { %9028 = vmatpush3.bf16.msra.mxu0 %v9027_v44  ;;  %8673 = vmatprep.mubr.msk.f32.mxu0 %vm9422_vm2, %v11244_v10  ;;  %v6763_v44 = vsel %vm5047_vm4, %v10771_v51, %v6761_v27  ;;  %v9111_v51 = vpack.c.bf16 %v7771_v26, %v7770_v22 }
 0x45b   : > { %9029 = vmatprep.subr.bf16.mxu0 %v11233_v20 }
 0x45e   : > { %9031 = vmatpush3.bf16.msra.mxu0 %v9030_v16  ;;  %v6931_v16 = vrot.slane %v6929_v6, 6 }
 0x45f   : > { %9038 = vmatprep.subr.bf16.mxu0 %v11233_v20 }
 0x460   : > { %v6933_v45 = vsel %vm5047_vm4, %v10776_v21, %v6931_v16 }
 0x461   : > { %8674 = vmatmul.mubr.msk.f32.vlgmr.msra.gmra.mrb[162].mxu0 %vm5032_vm3, %v10784_v5  ;;  %v9051_v5 = vpack.c.bf16 %v7721_v39, %v7720_v35 }
 0x462   : > { %9040 = vmatpush3.bf16.msra.mxu0 %v9039_v47  ;;  %8695 = vmatprep.mubr.msk.f32.mxu0 %vm9422_vm2, %v11244_v10  ;;  %v7099_v47 = vld [vmem:[#allocation3 + $0x34] ss:$2 sm:$0x3] }
 0x463   : > { %9041 = vmatprep.subr.bf16.mxu0 %v11233_v20  ;;  %v7101_v59 = vrot.slane %v7099_v47, 6 }
 0x465   : > { %v7103_v1 = vsel %vm5047_vm4, %v11030_v8, %v7101_v59 }
 0x466   : > { %9043 = vmatpush3.bf16.msra.mxu0 %v9042_v17 }
 0x467   : > { %9050 = vmatprep.subr.bf16.mxu0 %v11233_v20 }
 0x469   : > { %8696 = vmatmul.mubr.msk.f32.vlgmr.msra.gmra.mrb[164].mxu0 %vm5032_vm3, %v10794_v2  ;;  %v6251_v2 = vrot.slane %v11030_v8, 6 }
 0x46a   : > { %9052 = vmatpush3.bf16.msra.mxu0 %v9051_v5  ;;  %8717 = vmatprep.mubr.msk.f32.mxu0 %vm9422_vm2, %v11244_v10 }
 0x46b   : > { %9053 = vmatprep.subr.bf16.mxu0 %v11233_v20  ;;  %v6253_v14 = vsel %vm5047_vm4, %v10828_v12, %v6251_v2  ;;  %v9075_v12 = vpack.c.bf16 %v7741_v36, %v7740_v34 }
 0x46e   : > { %9055 = vmatpush3.bf16.msra.mxu0 %v9054_v40 }
 0x46f   : > { %9062 = vmatprep.subr.bf16.mxu0 %v11233_v20 }
 0x471   : > { %8718 = vmatmul.mubr.msk.f32.vlgmr.msra.gmra.mrb[166].mxu0 %vm5032_vm3, %v6253_v14 }
 0x472   : > { %9064 = vmatpush3.bf16.msra.mxu0 %v9063_v46  ;;  %8739 = vmatprep.mubr.msk.f32.mxu0 %vm9422_vm2, %v11244_v10 }
 0x473   : > { %9065 = vmatprep.subr.bf16.mxu0 %v11233_v20 }
 0x476   : > { %9067 = vmatpush3.bf16.msra.mxu0 %v9066_v19 }
 0x477   : > { %9074 = vmatprep.subr.bf16.mxu0 %v11233_v20 }
 0x479   : > { %8740 = vmatmul.mubr.msk.f32.vlgmr.msra.gmra.mrb[168].mxu0 %vm5032_vm3, %v6423_v23 }
 0x47a   : > { %9076 = vmatpush3.bf16.msra.mxu0 %v9075_v12  ;;  %8761 = vmatprep.mubr.msk.f32.mxu0 %vm9422_vm2, %v11244_v10 }
 0x47b   : > { %9077 = vmatprep.subr.bf16.mxu0 %v11233_v20 }
 0x47e   : > { %9079 = vmatpush3.bf16.msra.mxu0 %v9078_v4 }
 0x47f   : > { %9086 = vmatprep.subr.bf16.mxu0 %v11233_v20 }
 0x481   : > { %8762 = vmatmul.mubr.msk.f32.vlgmr.msra.gmra.mrb[170].mxu0 %vm5032_vm3, %v6593_v18 }
 0x482   : > { %9088 = vmatpush3.bf16.msra.mxu0 %v9087_v61  ;;  %8783 = vmatprep.mubr.msk.f32.mxu0 %vm9422_vm2, %v11244_v10 }
 0x483   : > { %9089 = vmatprep.subr.bf16.mxu0 %v11233_v20 }
 0x486   : > { %9091 = vmatpush3.bf16.msra.mxu0 %v9090_v37 }
 0x487   : > { %9098 = vmatprep.subr.bf16.mxu0 %v11233_v20 }
 0x489   : > { %8784 = vmatmul.mubr.msk.f32.vlgmr.msra.gmra.mrb[172].mxu0 %vm5032_vm3, %v6763_v44 }
 0x48a   : > { %9100 = vmatpush3.bf16.msra.mxu0 %v9099_v13  ;;  %8805 = vmatprep.mubr.msk.f32.mxu0 %vm9422_vm2, %v11244_v10 }
 0x48b   : > { %9101 = vmatprep.subr.bf16.mxu0 %v11233_v20 }
 0x48e   : > { %9103 = vmatpush3.bf16.msra.mxu0 %v9102_v9 }
 0x48f   : > { %9110 = vmatprep.subr.bf16.mxu0 %v11233_v20 }
 0x491   : > { %8806 = vmatmul.mubr.msk.f32.vlgmr.msra.gmra.mrb[174].mxu0 %vm5032_vm3, %v6933_v45 }
 0x492   : > { %9112 = vmatpush3.bf16.msra.mxu0 %v9111_v51  ;;  %8827 = vmatprep.mubr.msk.f32.mxu0 %vm9422_vm2, %v11244_v10 }
 0x493   : > { %9113 = vmatprep.subr.bf16.mxu0 %v11233_v20 }
 0x496   : > { %9115 = vmatpush3.bf16.msra.mxu0 %v9114_v55 }
 0x499   : > { %8828 = vmatmul.mubr.msk.f32.vlgmr.msra.gmra.mrb[176].mxu0 %vm5032_vm3, %v7103_v1 }
 0x4eb   : > { %v5903_v21 = vpop.f32.mrb[8].mxu1 }
 0x4ec   : > { %v5135_v28 = vpop.f32.mrb[144].mxu0  ;;  %v8664_v17 = vpop.f32.mrb[9].mxu1 }
 0x4ed   : > { %v8565_v35 = vpop.f32.mrb[145].mxu0 }
 0x4f3   : > { %v6073_v39 = vpop.f32.mrb[10].mxu1 }
 0x4f4   : > { %v5208_v43 = vpop.f32.mrb[146].mxu0  ;;  %v8686_v50 = vpop.f32.mrb[11].mxu1 }
 0x4f5   : > { %v5209_v5 = vadd.f32 %v5208_v43, %v5135_v28  ;;  %v8576_v30 = vpop.f32.mrb[147].mxu0 }
 0x4f6   : > { %v7775_v30 = vld [vmem:[%s11203_s6] ss:$0 sm:$0xff] }
 0x4fb   : > { %v6243_v15 = vpop.f32.mrb[12].mxu1 }
 0x4fc   : > { %v5294_v10 = vpop.f32.mrb[148].mxu0  ;;  %v8708_v11 = vpop.f32.mrb[13].mxu1 }
 0x4fd   : > { %v5298_v20 = vadd.f32 %v5294_v10, %v5209_v5  ;;  %v8587_v49 = vpop.f32.mrb[149].mxu0 }
 0x503   : > { %v6413_v40 = vpop.f32.mrb[14].mxu1 }
 0x504   : > { %v5381_v41 = vpop.f32.mrb[150].mxu0  ;;  %v8730_v24 = vpop.f32.mrb[15].mxu1 }
 0x505   : > { %v5385_v8 = vadd.f32 %v5381_v41, %v5298_v20  ;;  %v8598_v2 = vpop.f32.mrb[151].mxu0 }
 0x50b   : > { %v6583_v46 = vpop.f32.mrb[16].mxu1 }
 0x50c   : > { %v5468_v52 = vpop.f32.mrb[152].mxu0  ;;  %v8752_v53 = vpop.f32.mrb[17].mxu1 }
 0x50d   : > { %v5472_v14 = vadd.f32 %v5468_v52, %v5385_v8  ;;  %v8609_v56 = vpop.f32.mrb[153].mxu0 }
 0x513   : > { %v6753_v19 = vpop.f32.mrb[18].mxu1 }
 0x514   : > { %v5555_v34 = vpop.f32.mrb[154].mxu0  ;;  %v8774_v36 = vpop.f32.mrb[19].mxu1 }
 0x515   : > { %v5559_v3 = vadd.f32 %v5555_v34, %v5472_v14  ;;  %v8620_v12 = vpop.f32.mrb[155].mxu0 }
 0x51b   : > { %v6923_v58 = vpop.f32.mrb[20].mxu1 }
 0x51c   : > { %v5642_v38 = vpop.f32.mrb[156].mxu0  ;;  %v8796_v23 = vpop.f32.mrb[21].mxu1 }
 0x51d   : > { %v5646_v33 = vadd.f32 %v5642_v38, %v5559_v3  ;;  %v8631_v4 = vpop.f32.mrb[157].mxu0 }
 0x523   : > { %v7093_v57 = vpop.f32.mrb[22].mxu1 }
 0x524   : > { %v5729_v62 = vpop.f32.mrb[158].mxu0  ;;  %v8818_v60 = vpop.f32.mrb[23].mxu1 }
 0x525   : > { %v5733_v61 = vadd.f32 %v5729_v62, %v5646_v33  ;;  %v8642_v0 = vpop.f32.mrb[159].mxu0 }
 0x52c   : > { %v5816_v7 = vpop.f32.mrb[160].mxu0 }
 0x52d   : > { %v5820_v18 = vadd.f32 %v5816_v7, %v5733_v61  ;;  %v8653_v48 = vpop.f32.mrb[161].mxu0 }
 0x52f   : > { %v5907_v37 = vadd.f32 %v5903_v21, %v5820_v18 }
 0x534   : > { %v5988_v63 = vpop.f32.mrb[162].mxu0 }
 0x535   : > { %v5992_v31 = vadd.f32 %v5988_v63, %v5907_v37  ;;  %v8675_v27 = vpop.f32.mrb[163].mxu0 }
 0x537   : > { %v6077_v13 = vadd.f32 %v6073_v39, %v5992_v31 }
 0x53c   : > { %v6158_v25 = vpop.f32.mrb[164].mxu0 }
 0x53d   : > { %v6162_v29 = vadd.f32 %v6158_v25, %v6077_v13  ;;  %v8697_v44 = vpop.f32.mrb[165].mxu0 }
 0x53f   : > { %v6247_v6 = vadd.f32 %v6243_v15, %v6162_v29 }
 0x544   : > { %v6328_v9 = vpop.f32.mrb[166].mxu0 }
 0x545   : > { %v6332_v22 = vadd.f32 %v6328_v9, %v6247_v6  ;;  %v8719_v26 = vpop.f32.mrb[167].mxu0 }
 0x547   : > { %v6417_v16 = vadd.f32 %v6413_v40, %v6332_v22  ;;  %v7198_v40 = vpop.permute.xlu0 %7197 }
 0x54c   : > { %v6498_v51 = vpop.f32.mrb[168].mxu0 }
 0x54d   : > { %v6502_v32 = vadd.f32 %v6498_v51, %v6417_v16  ;;  %v8741_v42 = vpop.f32.mrb[169].mxu0 }
 0x54f   : > { %v6587_v54 = vadd.f32 %v6583_v46, %v6502_v32 }
 0x554   : > { %v6668_v45 = vpop.f32.mrb[170].mxu0 }
 0x555   : > { %v6672_v47 = vadd.f32 %v6668_v45, %v6587_v54  ;;  %v8763_v55 = vpop.f32.mrb[171].mxu0 }
 0x557   : > { %v6757_v59 = vadd.f32 %v6753_v19, %v6672_v47 }
 0x55c   : > { %v6838_v1 = vpop.f32.mrb[172].mxu0 }
 0x55d   : > { %v6842_v21 = vadd.f32 %v6838_v1, %v6757_v59  ;;  %v8785_v28 = vpop.f32.mrb[173].mxu0 }
 0x55f   : > { %v6927_v17 = vadd.f32 %v6923_v58, %v6842_v21 }
 0x564   : > { %v7008_v35 = vpop.f32.mrb[174].mxu0 }
 0x565   : > { %v7012_v39 = vadd.f32 %v7008_v35, %v6927_v17  ;;  %v8807_v43 = vpop.f32.mrb[175].mxu0 }
 0x567   : > { %v7097_v50 = vadd.f32 %v7093_v57, %v7012_v39 }
 0x56c   : > { %v7178_v5 = vpop.f32.mrb[176].mxu0 }
 0x56d   : > { %v7182_v15 = vadd.f32 %v7178_v5, %v7097_v50  ;;  %v8829_v10 = vpop.f32.mrb[177].mxu0 }
 0x56f   : > { %v7190_v11 = vadd.f32 %v7775_v30, %v7182_v15 }
 0x571   : > { %7191 = vst [vmem:[%s358_s21] sm:$0xf] %v7190_v11  ;;  %v7192_v20 = vmul.f32 0.5, %v7190_v11  ;;  %s9362_s21 = scalar_lea.vmem %s9361_s17, 128 }
 0x572   : > { %p9364_p1 = scmp.lt.s32.totalorder %s9362_s21, %s9356_s16 }
 0x573   : > { %v7193_v49 = vmul.f32 1.442695, %v7192_v20 }
 0x574   : > { %p9365_p2 = por %p9364_p1, %p9363_p0 }
 0x575   : > { %9352 = vpow2.f32 %v7193_v49 }
 0x576   : > { %p9366_p3 = pnand %p9365_p2, %p9359_p13 }
 0x57f   : > { %v9353_v41 = vpop.eup %9352 }
 0x580   : > { %v7200_v24 = vmul.f32 %v9353_v41, %v7198_v40 }
 0x582   : > { %7202 = vrot.lane.b32.xlu0 %v7200_v24, %s9423_s26  ;;  %s7213_s26 = scalar_lea.sflag [#allocation5], %s343_s22 }
 0x5f4   : > { %v7203_v8 = vpop.permute.xlu0 %7202 }
 0x5f5   : > { %v7205_v2 = vadd.f32 %v7203_v8, %v7190_v11 }
 0x5f7   : > { %7207 = vst.msk [vmem:[%s345_s25] sm:$0xf] %vm7206_vm5, %v7205_v2 }
 0x5f8   : > { %9369 = shalt.err (!%p9366_p3)
}
 0x5f9   : > { %s9370_s22 = scalar_lea.hbm %s11155_s28, 64  ;;  %s9374_s25 = scalar_lea.hbm %s11206_s9, 128 }
 0x5fa   : > { %p9371_p4 = scmp.ne.s32.totalorder %s11155_s28, %s9370_s22  ;;  %p9375_p9 = scmp.lt.u32.totalorder %s11155_s28, %s11206_s9 }
 0x5fb   : > { %p9376_p10 = scmp.lt.u32.totalorder %s9374_s25, %s9370_s22  ;;  %p9378_p12 = scmp.lt.u32.totalorder %s9370_s22, %s11155_s28 }
 0x5fc   : > { %p9372_p7 = pnand %p9371_p4, %p9513_p5 }
 0x5fd   : > { %p9377_p11 = por %p9376_p10, %p9375_p9 }
 0x5fe   : > { %p9373_p8 = pneg %p9372_p7 }
 0x5ff   : > { %p9379_p13 = por %p9378_p12, %p9377_p11 }
 0x601   : > { %p9380_p0 = pnand %p9379_p13, %p9373_p8 }
 0x603   : > { %9383 = shalt.err (!%p9380_p0)
}
 0x604   : > { %9309 = dma.vmem_to_hbm [thread:$0]  (%p9513_p5), %s11157_s29, 64, %s11155_s28, %s7213_s26  }
 0x605 PF: > { %p9315_p1 = scmp.ge.s32.totalorder %s9418_s12, 2  ;;  %s7248_s16 = sand.u32 1, %s9406_s30  }
 0x606   : > { %s7249_s13 = scalar_lea.sflag [#allocation5], %s7248_s16 }
 0x607   : > { %p9312_p2 = pnand %p9315_p1, %p9517_p6 }
 0x609   : > { %9401 = dma.done.wait (!%p9312_p2), %s7249_s13, 64  }
 0x60a   : > { %9403 = vsyncadd (!%p9312_p2), %s7249_s13, 4294967232  ;;  %p20_p3 = scmp.ge.s32.totalorder %s9500_s15, 4   ;;  %s11245_s30 = smov %s9410_s10 }
 0x60b   : > { %s11246_s10 = smov %s9414_s11  ;;  %s11247_s11 = smov %s9511_s18 }
 0x60c   : > { %s11248_s12 = smov %s9500_s15  ;;  %22 = sbr.rel (!%p20_p3) target bundleno = 3 (0x3), region = 188 }
 0x613   :  { %7254 = vsyncpa [#allocation5], 1 }
 0x614   :  { %7256 = vsyncpa [#allocation5 + $0x1], 1 }

</bundles_post_ra>
